<compile_context>
chip_gen: v7x
topology: tpu7x:2x2x1
jax: 0.10.0
libtpu: 0.0.40
codegen_flags: <defaults>
</compile_context>

<pallas_src>
import functools

import jax
import jax.numpy as jnp
from jax.experimental import pallas as pl
from jax.experimental.pallas import tpu as pltpu


def _round_up(a, b):
    return (a + b - 1) // b * b


def _layernorm(v, gamma, beta, eps=1e-5):
    """f32 LayerNorm over the last dim (matches torch.nn.LayerNorm)."""
    mu = jnp.mean(v, axis=-1, keepdims=True)
    var = jnp.mean(jnp.square(v - mu), axis=-1, keepdims=True)
    return (v - mu) * jax.lax.rsqrt(var + eps) * gamma + beta


def _vmem_estimate(te, w, n_pad, d, ed):
    """Rough VMEM high-water mark in bytes: double-buffered edge tiles + one-hot + residents."""
    per_tile = te * 2 * d * 2 + te * ed * 4 + te * ed * 4 + te * 4        # xsd + e_in + e_out + dst
    onehot = 2 * w * te * 2                                               # bf16 one-hot (+ temp)
    resident = 3 * n_pad * d * 4 + n_pad * 128 * 4                        # x, x_out, sum, icnt(lane pad)
    weights = (2 * d * (ed + d) + 3 * ed * ed + ed * d + 2 * d * d) * 2 + 5 * (ed + d) * 4
    return 2 * per_tile + onehot + resident + weights + (1 << 20)


def _gene_conv_kernel(
    win_ref,        # SMEM [num_tiles] int32: aligned node-window start per edge tile
    dst_ref,        # [1, 1, TE] int32   window-local dst per edge (-1 for padding)
    xsd_ref,        # [TE, 2D] bf16      concat [x[src], x[dst]]
    e_ref,          # [TE, Ed] f32       edge_attr
    x_ref,          # [N_pad, D] f32     (resident; used only at the last grid step)
    icnt_ref,       # [N_pad, 1] f32     1 / max(in_degree, 1)  (precomputed in wrapper)
    wx_ref,         # [2D, Ed+D] bf16    fused first-layer weight  [we1x | wm1x]
    we1e_ref, we2_ref, we3_ref,          # edge MLP weights (bf16)
    wm1e_ref, wm2_ref, wm3_ref,          # node message MLP weights (bf16)
    evec_ref,       # [5, Ed] f32  rows: be1, be2, be3, gamma_e, beta_e
    nvec_ref,       # [5, D]  f32  rows: bm1, bm2, bm3, gamma_n, beta_n
    x_out_ref,      # [N_pad, D] f32
    e_out_ref,      # [TE, Ed] f32
    sum_ref,        # VMEM scratch [N_pad, D] f32  (segment sums, persists across tiles)
    *, win_size,
):
    f32, bf16 = jnp.float32, jnp.bfloat16
    t = pl.program_id(0)
    ed = e_ref.shape[1]

    @pl.when(t == 0)
    def _init():
        sum_ref[...] = jnp.zeros_like(sum_ref)

    xsd = xsd_ref[...]            # [TE, 2D] bf16
    e = e_ref[...]                # [TE, Ed] f32
    ev = evec_ref[...]            # [5, Ed] f32
    nv = nvec_ref[...]            # [5, D]  f32

    # ---- fused shared first layer: one MXU push covers both MLPs' xsd terms.
    hx = jnp.dot(xsd, wx_ref[...], preferred_element_type=f32)   # [TE, Ed+D]
    hx_e = hx[:, :ed]       # edge-MLP half
    hx_m = hx[:, ed:]       # message-MLP half

    # ---- edge_message_func + residual + LayerNorm(edge_dims)  (edge_dropout = identity)
    h = hx_e + jnp.dot(e.astype(bf16), we1e_ref[...], preferred_element_type=f32) + ev[0:1, :]
    h = jnp.maximum(h, 0.0)
    h = jnp.dot(h.astype(bf16), we2_ref[...], preferred_element_type=f32) + ev[1:2, :]
    h = jnp.maximum(h, 0.0)
    e_dh = jnp.dot(h.astype(bf16), we3_ref[...], preferred_element_type=f32) + ev[2:3, :]
    e_new = _layernorm(e + e_dh, ev[3:4, :], ev[4:5, :])
    e_out_ref[...] = e_new.astype(e_out_ref.dtype)

    # ---- GeneConv.message_func on [x_j, edge_attr, x_i] = [x[src], e', x[dst]]
    m = hx_m + jnp.dot(e_new.astype(bf16), wm1e_ref[...], preferred_element_type=f32) + nv[0:1, :]
    m = jnp.maximum(m, 0.0)
    m = jnp.dot(m.astype(bf16), wm2_ref[...], preferred_element_type=f32) + nv[1:2, :]
    m = jnp.maximum(m, 0.0)
    m = jnp.dot(m.astype(bf16), wm3_ref[...], preferred_element_type=f32) + nv[2:3, :]  # [TE, D]

    # ---- windowed scatter-add over dst.  Edges are dst-sorted, so this tile touches
    # only node rows [win_start, win_start + win_size).  One-hot is built directly in
    # bf16 (0/1 is exact); padded edges carry dst = -1 and contribute nothing.
    dst = dst_ref[0]                                                    # [1, TE] int32
    rows = jax.lax.broadcasted_iota(jnp.int32, (win_size, 1), 0)        # [W, 1]
    onehot = (rows == dst).astype(bf16)                                 # [W, TE]
    seg = jnp.dot(onehot, m.astype(bf16), preferred_element_type=f32)   # [W, D] f32
    start = pl.multiple_of(win_ref[t], 8)
    sum_ref[pl.ds(start, win_size), :] += seg

    # ---- finalize: mean-aggregate, residual, LayerNorm(node_dims) in f32.
    @pl.when(t == pl.num_programs(0) - 1)
    def _finalize():
        dh = sum_ref[...] * icnt_ref[...]
        x_out_ref[...] = _layernorm(x_ref[...] + dh,
                                    nv[3:4, :], nv[4:5, :]).astype(x_out_ref.dtype)


def _pack_params(p, D, Ed, dtype=jnp.bfloat16):
    """Split/fuse the PyTorch-layout weights for the kernel and pack the tiny vectors."""
    We1, Wm1 = p["We1"], p["Wm1"]
    # edge MLP layer 1 input order: [x_src, edge_attr, x_dst]
    we1x = jnp.concatenate([We1[:D], We1[D + Ed:]], axis=0)                 # [2D, Ed]
    we1e = We1[D:D + Ed]                                                    # [Ed, Ed]
    # node message layer 1 input order: [x_j, edge_attr, x_i] = [x_src, e', x_dst]
    wm1x = jnp.concatenate([Wm1[:D], Wm1[D + Ed:]], axis=0)                 # [2D, D]
    wm1e = Wm1[D:D + Ed]                                                    # [Ed, D]
    # fuse the two xsd first-layer matmuls (shared LHS) into one [2D, Ed+D] weight
    wx = jnp.concatenate([we1x, wm1x], axis=1).astype(dtype)                # [2D, Ed+D]
    return dict(
        wx=wx,
        we1e=we1e.astype(dtype),
        we2=p["We2"].astype(dtype), we3=p["We3"].astype(dtype),
        wm1e=wm1e.astype(dtype),
        wm2=p["Wm2"].astype(dtype), wm3=p["Wm3"].astype(dtype),
        evec=jnp.stack([p["be1"], p["be2"], p["be3"], p["ge"], p["be_ln"]], 0),  # [5, Ed] f32
        nvec=jnp.stack([p["bm1"], p["bm2"], p["bm3"], p["gn"], p["bn_ln"]], 0),  # [5, D]  f32
    )


def gene_conv_layer(x, edge_index, edge_attr, params, *,
                    max_edge_tile=2048, vmem_budget_bytes=48 * 1024 * 1024):
    """x: [N, D] f32, edge_index: [2, E] int32, edge_attr: [E, Ed] f32 -> (x', e')."""
    N, D = x.shape
    E, Ed = edge_attr.shape
    src = edge_index[0].astype(jnp.int32)
    dst = edge_index[1].astype(jnp.int32)
    N_pad = _round_up(N, 8)

    # ---- sort edges by destination so each edge tile only touches a small contiguous
    # node window (bounds the per-tile one-hot to [W, TE] instead of [N_pad, TE]).
    perm = jnp.argsort(dst)
    src_s, dst_s, e_s = src[perm], dst[perm], edge_attr[perm]

    def plan(te_req):
        te_ = _round_up(min(max(te_req, 128), _round_up(E, 128)), 128)
        e_pad = _round_up(E, te_)
        nt = e_pad // te_
        first = jnp.arange(nt) * te_                               # first edge of tile (< E)
        last = jnp.minimum((jnp.arange(nt) + 1) * te_, E) - 1      # last real edge of tile
        lo, hi = dst_s[first], dst_s[last]
        try:
            # eager (concrete) path: tight static node window derived from the data
            span = int(jnp.max(hi - (lo // 8) * 8)) + 1
            w = min(_round_up(max(span, 8), 8), N_pad)
        except Exception:
            # traced (jit) path: per-tile node span unknown at trace time ->
            # fall back to the full node range (still correct, just unwindowed).
            w = N_pad
        return te_, e_pad, nt, lo, w

    te, E_pad, num_tiles, tile_lo, W = plan(max_edge_tile)
    # VMEM-budget guard (v7x has only 64 MiB physical VMEM): shrink the edge tile if needed.
    while te > 128 and _vmem_estimate(te, W, N_pad, D, Ed) > vmem_budget_bytes:
        te, E_pad, num_tiles, tile_lo, W = plan(te // 2)

    # per-tile window starts: sublane-aligned and clamped so [start, start+W) fits N_pad.
    win_start = jnp.clip((tile_lo // 8) * 8, 0, N_pad - W).astype(jnp.int32)   # [num_tiles]

    # window-local dst indices (padding edges -> -1, never hit the one-hot).
    pad_e = E_pad - E
    dst_pad = jnp.concatenate([dst_s, jnp.full((pad_e,), -1, jnp.int32)])
    tile_of_edge = jnp.arange(E_pad) // te
    dst_local = jnp.where(dst_pad >= 0, dst_pad - win_start[tile_of_edge], -1)
    dst_tiles = dst_local.astype(jnp.int32).reshape(num_tiles, 1, te)

    # ---- JAX glue: gathers + padding (no dense [N, E] matrix is ever built)
    xsd = jnp.concatenate([x[src_s], x[dst_s]], axis=-1).astype(jnp.bfloat16)   # [E, 2D]
    xsd = jnp.pad(xsd, ((0, pad_e), (0, 0)))
    e_in = jnp.pad(e_s.astype(jnp.float32), ((0, pad_e), (0, 0)))
    x_pad = jnp.pad(x.astype(jnp.float32), ((0, N_pad - N), (0, 0)))

    # inverse in-degree counts, computed once in XLA (drops the per-tile XLU lane-reduce).
    cnt = jax.ops.segment_sum(jnp.ones((E,), jnp.float32), dst, num_segments=N)
    icnt = 1.0 / jnp.maximum(cnt, 1.0)
    icnt = jnp.pad(icnt.reshape(N, 1), ((0, N_pad - N), (0, 0)), constant_values=1.0)

    kp = _pack_params(params, D, Ed)

    tile2 = lambda t, ws: (t, 0)        # per-edge-tile 2-D blocks
    tile3 = lambda t, ws: (t, 0, 0)     # per-edge-tile dst block (3-D so last dims are full)
    whole = lambda t, ws: (0, 0)        # resident blocks (weights, x, icnt, x_out)

    in_specs = [
        pl.BlockSpec((1, 1, te), tile3),            # window-local dst indices
        pl.BlockSpec((te, 2 * D), tile2),           # [x_src | x_dst]
        pl.BlockSpec((te, Ed), tile2),              # edge_attr
        pl.BlockSpec((N_pad, D), whole),            # x (resident, used at finalize)
        pl.BlockSpec((N_pad, 1), whole),            # 1 / in-degree
        pl.BlockSpec((2 * D, Ed + D), whole),       # fused first-layer weight
        pl.BlockSpec((Ed, Ed), whole),              # we1e
        pl.BlockSpec((Ed, Ed), whole),              # we2
        pl.BlockSpec((Ed, Ed), whole),              # we3
        pl.BlockSpec((Ed, D), whole),               # wm1e
        pl.BlockSpec((D, D), whole),                # wm2
        pl.BlockSpec((D, D), whole),                # wm3
        pl.BlockSpec((5, Ed), whole),               # packed edge biases / LN affine
        pl.BlockSpec((5, D), whole),                # packed node biases / LN affine
    ]
    out_specs = (
        pl.BlockSpec((N_pad, D), whole),            # x_out (written once, last step)
        pl.BlockSpec((te, Ed), tile2),              # e_out (written every tile)
    )
    out_shape = (
        jax.ShapeDtypeStruct((N_pad, D), jnp.float32),
        jax.ShapeDtypeStruct((E_pad, Ed), jnp.float32),
    )
    scratch_shapes = [
        pltpu.VMEM((N_pad, D), jnp.float32),        # segment-sum accumulator
    ]

    vmem_limit = int(min(100 * 1024 * 1024,
                         max(32 * 1024 * 1024, 2 * _vmem_estimate(te, W, N_pad, D, Ed))))

    x_out, e_sorted = pl.pallas_call(
        functools.partial(_gene_conv_kernel, win_size=W),
        out_shape=out_shape,
        grid_spec=pltpu.PrefetchScalarGridSpec(
            num_scalar_prefetch=1,                  # win_start -> SMEM, available to index_maps
            grid=(num_tiles,),
            in_specs=in_specs,
            out_specs=out_specs,
            scratch_shapes=scratch_shapes,
        ),
        compiler_params=pltpu.CompilerParams(
            # The edge-tile axis carries the node accumulator -> must stay sequential.
            dimension_semantics=("arbitrary",),
            vmem_limit_bytes=vmem_limit,
        ),
    )(win_start, dst_tiles, xsd, e_in, x_pad, icnt,
      kp["wx"], kp["we1e"], kp["we2"], kp["we3"],
      kp["wm1e"], kp["wm2"], kp["wm3"],
      kp["evec"], kp["nvec"])

    # undo the dst sort so e' is returned in the original edge order
    e_out = jnp.take(e_sorted[:E], jnp.argsort(perm), axis=0)
    return x_out[:N], e_out


def init_params(key, node_dims, edge_dims):
    """Parameters in their natural (PyTorch-like) layout."""
    D, Ed = node_dims, edge_dims
    ks = jax.random.split(key, 12)

    def lin_w(k, fi, fo):
        return jax.random.normal(k, (fi, fo), jnp.float32) / jnp.sqrt(float(fi))

    def lin_b(k, fo):
        return 0.01 * jax.random.normal(k, (fo,), jnp.float32)

    return dict(
        # edge_message_func: Linear(2D+Ed->Ed), ReLU, Linear(Ed->Ed), ReLU, Linear(Ed->Ed)
        We1=lin_w(ks[0], 2 * D + Ed, Ed), be1=lin_b(ks[1], Ed),
        We2=lin_w(ks[2], Ed, Ed),         be2=lin_b(ks[3], Ed),
        We3=lin_w(ks[4], Ed, Ed),         be3=lin_b(ks[5], Ed),
        ge=jnp.ones((Ed,), jnp.float32),  be_ln=jnp.zeros((Ed,), jnp.float32),
        # GeneConv.message_func: Linear(2D+Ed->D), ReLU, Linear(D->D), ReLU, Linear(D->D)
        Wm1=lin_w(ks[6], 2 * D + Ed, D),  bm1=lin_b(ks[7], D),
        Wm2=lin_w(ks[8], D, D),           bm2=lin_b(ks[9], D),
        Wm3=lin_w(ks[10], D, D),          bm3=lin_b(ks[11], D),
        gn=jnp.ones((D,), jnp.float32),   bn_ln=jnp.zeros((D,), jnp.float32),
    )


def reference(x, edge_index, edge_attr, p):
    """Pure-JAX f32 reference of GeneConvLayer.forward (eval mode)."""
    src, dst = edge_index[0], edge_index[1]
    xs, xd = x[src], x[dst]

    def ln(v, g, b, eps=1e-5):
        mu = v.mean(-1, keepdims=True)
        var = ((v - mu) ** 2).mean(-1, keepdims=True)
        return (v - mu) / jnp.sqrt(var + eps) * g + b

    xe = jnp.concatenate([xs, edge_attr, xd], axis=-1)
    h = jnp.maximum(xe @ p["We1"] + p["be1"], 0.0)
    h = jnp.maximum(h @ p["We2"] + p["be2"], 0.0)
    e_new = ln(edge_attr + h @ p["We3"] + p["be3"], p["ge"], p["be_ln"])

    me = jnp.concatenate([xs, e_new, xd], axis=-1)
    m = jnp.maximum(me @ p["Wm1"] + p["bm1"], 0.0)
    m = jnp.maximum(m @ p["Wm2"] + p["bm2"], 0.0)
    m = m @ p["Wm3"] + p["bm3"]

    N = x.shape[0]
    sums = jax.ops.segment_sum(m, dst, num_segments=N)
    cnts = jax.ops.segment_sum(jnp.ones((m.shape[0], 1), jnp.float32), dst, num_segments=N)
    dh = sums / jnp.maximum(cnts, 1.0)

    x_new = ln(x + dh, p["gn"], p["bn_ln"])
    return x_new, e_new


if __name__ == "__main__":
    key = jax.random.PRNGKey(0)
    node_dims, edge_dims = 32, 16
    N, E = 80, 600          # N = bsz * n_node (e.g. 2 * 40)

    k_x, k_e, k_src, k_dst, k_p = jax.random.split(key, 5)
    x = jax.random.normal(k_x, (N, node_dims), jnp.float32)
    edge_attr = jax.random.normal(k_e, (E, edge_dims), jnp.float32)
    src = jax.random.randint(k_src, (E,), 0, N, dtype=jnp.int32)
    dst = jax.random.randint(k_dst, (E,), 0, N, dtype=jnp.int32)
    edge_index = jnp.stack([src, dst])

    params = init_params(k_p, node_dims, edge_dims)

    # small max_edge_tile so the demo exercises the multi-tile accumulation + windowing
    # path even at this tiny E (the production default is 2048).
    x_out, e_out = gene_conv_layer(x, edge_index, edge_attr, params, max_edge_tile=256)
    jax.block_until_ready((x_out, e_out))

    x_ref, e_ref = reference(x, edge_index, edge_attr, params)
    assert x_out.shape == (N, node_dims) and e_out.shape == (E, edge_dims)
    # bf16 matmul operands (f32 accumulation / f32 LayerNorms) -> slightly looser tolerance.
    assert jnp.allclose(x_out, x_ref, atol=5e-2, rtol=5e-2), "node output mismatch"
    assert jnp.allclose(e_out, e_ref, atol=5e-2, rtol=5e-2), "edge output mismatch"

    print("KERNEL_OK")
</pallas_src>

<mosaic_0001>
module attributes {stable_mosaic.version = 11 : i64} {
  func.func @_gene_conv_kernel(%arg0: i32, %arg1: memref<3xi32, #tpu.memory_space<smem>>, %arg2: memref<1x1x256xi32, #tpu.memory_space<vmem>>, %arg3: memref<256x64xbf16, #tpu.memory_space<vmem>>, %arg4: memref<256x16xf32, #tpu.memory_space<vmem>>, %arg5: memref<80x32xf32, #tpu.memory_space<vmem>>, %arg6: memref<80x1xf32, #tpu.memory_space<vmem>>, %arg7: memref<64x48xbf16, #tpu.memory_space<vmem>>, %arg8: memref<16x16xbf16, #tpu.memory_space<vmem>>, %arg9: memref<16x16xbf16, #tpu.memory_space<vmem>>, %arg10: memref<16x16xbf16, #tpu.memory_space<vmem>>, %arg11: memref<16x32xbf16, #tpu.memory_space<vmem>>, %arg12: memref<32x32xbf16, #tpu.memory_space<vmem>>, %arg13: memref<32x32xbf16, #tpu.memory_space<vmem>>, %arg14: memref<5x16xf32, #tpu.memory_space<vmem>>, %arg15: memref<5x32xf32, #tpu.memory_space<vmem>>, %arg16: memref<80x32xf32, #tpu.memory_space<vmem>>, %arg17: memref<256x16xf32, #tpu.memory_space<vmem>>, %arg18: memref<80x32xf32, #tpu.memory_space<vmem>>) attributes {dimension_semantics = [#tpu.dimension_semantics<arbitrary>], iteration_bounds = array<i64: 3>, scalar_prefetch = 1 : i64, scratch_operands = 1 : i64, tpu.core_type = #tpu.core_type<tc>, window_params = [{transform_indices = @transform_0, window_bounds = array<i64: 1, 1, 256>}, {transform_indices = @transform_1, window_bounds = array<i64: 256, 64>}, {transform_indices = @transform_2, window_bounds = array<i64: 256, 16>}, {pipeline_mode = #tpu.pipeline_mode<synchronous>, transform_indices = @transform_3, window_bounds = array<i64: 80, 32>}, {pipeline_mode = #tpu.pipeline_mode<synchronous>, transform_indices = @transform_4, window_bounds = array<i64: 80, 1>}, {pipeline_mode = #tpu.pipeline_mode<synchronous>, transform_indices = @transform_5, window_bounds = array<i64: 64, 48>}, {pipeline_mode = #tpu.pipeline_mode<synchronous>, transform_indices = @transform_6, window_bounds = array<i64: 16, 16>}, {pipeline_mode = #tpu.pipeline_mode<synchronous>, transform_indices = @transform_7, window_bounds = array<i64: 16, 16>}, {pipeline_mode = #tpu.pipeline_mode<synchronous>, transform_indices = @transform_8, window_bounds = array<i64: 16, 16>}, {pipeline_mode = #tpu.pipeline_mode<synchronous>, transform_indices = @transform_9, window_bounds = array<i64: 16, 32>}, {pipeline_mode = #tpu.pipeline_mode<synchronous>, transform_indices = @transform_10, window_bounds = array<i64: 32, 32>}, {pipeline_mode = #tpu.pipeline_mode<synchronous>, transform_indices = @transform_11, window_bounds = array<i64: 32, 32>}, {pipeline_mode = #tpu.pipeline_mode<synchronous>, transform_indices = @transform_12, window_bounds = array<i64: 5, 16>}, {pipeline_mode = #tpu.pipeline_mode<synchronous>, transform_indices = @transform_13, window_bounds = array<i64: 5, 32>}, {pipeline_mode = #tpu.pipeline_mode<synchronous>, transform_indices = @transform_14, window_bounds = array<i64: 80, 32>}, {transform_indices = @transform_15, window_bounds = array<i64: 256, 16>}]} {
    %c0_i32 = arith.constant 0 : i32
    %0 = arith.cmpi eq, %arg0, %c0_i32 : i32
    %1 = arith.extui %0 : i1 to i32
    %c0_i32_0 = arith.constant 0 : i32
    %2 = arith.cmpi ne, %1, %c0_i32_0 : i32
    scf.if %2 {
      %cst_46 = arith.constant 0.000000e+00 : f32
      %105 = vector.broadcast %cst_46 : f32 to vector<80x32xf32>
      %c0_47 = arith.constant 0 : index
      %c0_48 = arith.constant 0 : index
      %106 = vector.load %arg18[%c0_47, %c0_48] : memref<80x32xf32, #tpu.memory_space<vmem>>, vector<80x32xf32>
      tpu.vector_store %arg18[%c0_47, %c0_48], %105 {strides = array<i32>} : memref<80x32xf32, #tpu.memory_space<vmem>>, vector<80x32xf32>,
    } else {
    }
    %c0 = arith.constant 0 : index
    %c0_1 = arith.constant 0 : index
    %3 = vector.load %arg3[%c0, %c0_1] : memref<256x64xbf16, #tpu.memory_space<vmem>>, vector<256x64xbf16>
    %c0_2 = arith.constant 0 : index
    %c0_3 = arith.constant 0 : index
    %4 = vector.load %arg4[%c0_2, %c0_3] : memref<256x16xf32, #tpu.memory_space<vmem>>, vector<256x16xf32>
    %c0_4 = arith.constant 0 : index
    %c0_5 = arith.constant 0 : index
    %5 = vector.load %arg14[%c0_4, %c0_5] : memref<5x16xf32, #tpu.memory_space<vmem>>, vector<5x16xf32>
    %c0_6 = arith.constant 0 : index
    %c0_7 = arith.constant 0 : index
    %6 = vector.load %arg15[%c0_6, %c0_7] : memref<5x32xf32, #tpu.memory_space<vmem>>, vector<5x32xf32>
    %c0_8 = arith.constant 0 : index
    %c0_9 = arith.constant 0 : index
    %7 = vector.load %arg7[%c0_8, %c0_9] : memref<64x48xbf16, #tpu.memory_space<vmem>>, vector<64x48xbf16>
    %cst = arith.constant dense<0.000000e+00> : vector<256x48xf32>
    %8 = tpu.matmul %3, %7, %cst {dimension_numbers = #tpu.dot_dimension_numbers<[1], [0], [0], [1], [0, 0, 1, 1], [], []>} : vector<256x64xbf16>, vector<64x48xbf16>, vector<256x48xf32> -> vector<256x48xf32>
    %9 = vector.extract_strided_slice %8 {offsets = [0, 0], sizes = [256, 16], strides = [1, 1]} : vector<256x48xf32> to vector<256x16xf32>
    %10 = vector.extract_strided_slice %8 {offsets = [0, 16], sizes = [256, 32], strides = [1, 1]} : vector<256x48xf32> to vector<256x32xf32>
    %11 = arith.truncf %4 : vector<256x16xf32> to vector<256x16xbf16>
    %c0_10 = arith.constant 0 : index
    %c0_11 = arith.constant 0 : index
    %12 = vector.load %arg8[%c0_10, %c0_11] : memref<16x16xbf16, #tpu.memory_space<vmem>>, vector<16x16xbf16>
    %cst_12 = arith.constant dense<0.000000e+00> : vector<256x16xf32>
    %13 = tpu.matmul %11, %12, %cst_12 {dimension_numbers = #tpu.dot_dimension_numbers<[1], [0], [0], [1], [0, 0, 1, 1], [], []>} : vector<256x16xbf16>, vector<16x16xbf16>, vector<256x16xf32> -> vector<256x16xf32>
    %14 = arith.addf %9, %13 : vector<256x16xf32>
    %15 = vector.extract_strided_slice %5 {offsets = [0, 0], sizes = [1, 16], strides = [1, 1]} : vector<5x16xf32> to vector<1x16xf32>
    %16 = vector.broadcast %15 : vector<1x16xf32> to vector<256x16xf32>
    %17 = arith.addf %14, %16 : vector<256x16xf32>
    %cst_13 = arith.constant 0.000000e+00 : f32
    %18 = vector.broadcast %cst_13 : f32 to vector<256x16xf32>
    %19 = arith.maximumf %17, %18 : vector<256x16xf32>
    %20 = arith.truncf %19 : vector<256x16xf32> to vector<256x16xbf16>
    %c0_14 = arith.constant 0 : index
    %c0_15 = arith.constant 0 : index
    %21 = vector.load %arg9[%c0_14, %c0_15] : memref<16x16xbf16, #tpu.memory_space<vmem>>, vector<16x16xbf16>
    %cst_16 = arith.constant dense<0.000000e+00> : vector<256x16xf32>
    %22 = tpu.matmul %20, %21, %cst_16 {dimension_numbers = #tpu.dot_dimension_numbers<[1], [0], [0], [1], [0, 0, 1, 1], [], []>} : vector<256x16xbf16>, vector<16x16xbf16>, vector<256x16xf32> -> vector<256x16xf32>
    %23 = vector.extract_strided_slice %5 {offsets = [1, 0], sizes = [1, 16], strides = [1, 1]} : vector<5x16xf32> to vector<1x16xf32>
    %24 = vector.broadcast %23 : vector<1x16xf32> to vector<256x16xf32>
    %25 = arith.addf %22, %24 : vector<256x16xf32>
    %cst_17 = arith.constant 0.000000e+00 : f32
    %26 = vector.broadcast %cst_17 : f32 to vector<256x16xf32>
    %27 = arith.maximumf %25, %26 : vector<256x16xf32>
    %28 = arith.truncf %27 : vector<256x16xf32> to vector<256x16xbf16>
    %c0_18 = arith.constant 0 : index
    %c0_19 = arith.constant 0 : index
    %29 = vector.load %arg10[%c0_18, %c0_19] : memref<16x16xbf16, #tpu.memory_space<vmem>>, vector<16x16xbf16>
    %cst_20 = arith.constant dense<0.000000e+00> : vector<256x16xf32>
    %30 = tpu.matmul %28, %29, %cst_20 {dimension_numbers = #tpu.dot_dimension_numbers<[1], [0], [0], [1], [0, 0, 1, 1], [], []>} : vector<256x16xbf16>, vector<16x16xbf16>, vector<256x16xf32> -> vector<256x16xf32>
    %31 = vector.extract_strided_slice %5 {offsets = [2, 0], sizes = [1, 16], strides = [1, 1]} : vector<5x16xf32> to vector<1x16xf32>
    %32 = vector.broadcast %31 : vector<1x16xf32> to vector<256x16xf32>
    %33 = arith.addf %30, %32 : vector<256x16xf32>
    %34 = arith.addf %4, %33 : vector<256x16xf32>
    %35 = vector.extract_strided_slice %5 {offsets = [3, 0], sizes = [1, 16], strides = [1, 1]} : vector<5x16xf32> to vector<1x16xf32>
    %36 = vector.extract_strided_slice %5 {offsets = [4, 0], sizes = [1, 16], strides = [1, 1]} : vector<5x16xf32> to vector<1x16xf32>
    %cst_21 = arith.constant dense<0.000000e+00> : vector<256xf32>
    %37 = vector.multi_reduction <add>, %34, %cst_21 [1] : vector<256x16xf32> to vector<256xf32>
    %38 = vector.shape_cast %37 : vector<256xf32> to vector<256x1xf32>
    %cst_22 = arith.constant 1.600000e+01 : f32
    %39 = vector.broadcast %cst_22 : f32 to vector<256x1xf32>
    %40 = arith.divf %38, %39 : vector<256x1xf32>
    %41 = vector.broadcast %40 : vector<256x1xf32> to vector<256x16xf32>
    %42 = arith.subf %34, %41 : vector<256x16xf32>
    %43 = arith.mulf %42, %42 : vector<256x16xf32>
    %cst_23 = arith.constant dense<0.000000e+00> : vector<256xf32>
    %44 = vector.multi_reduction <add>, %43, %cst_23 [1] : vector<256x16xf32> to vector<256xf32>
    %45 = vector.shape_cast %44 : vector<256xf32> to vector<256x1xf32>
    %cst_24 = arith.constant 1.600000e+01 : f32
    %46 = vector.broadcast %cst_24 : f32 to vector<256x1xf32>
    %47 = arith.divf %45, %46 : vector<256x1xf32>
    %48 = vector.broadcast %40 : vector<256x1xf32> to vector<256x16xf32>
    %49 = arith.subf %34, %48 : vector<256x16xf32>
    %cst_25 = arith.constant 9.99999974E-6 : f32
    %50 = vector.broadcast %cst_25 : f32 to vector<256x1xf32>
    %51 = arith.addf %47, %50 : vector<256x1xf32>
    %52 = math.rsqrt %51 : vector<256x1xf32>
    %53 = vector.broadcast %52 : vector<256x1xf32> to vector<256x16xf32>
    %54 = arith.mulf %49, %53 : vector<256x16xf32>
    %55 = vector.broadcast %35 : vector<1x16xf32> to vector<256x16xf32>
    %56 = arith.mulf %54, %55 : vector<256x16xf32>
    %57 = vector.broadcast %36 : vector<1x16xf32> to vector<256x16xf32>
    %58 = arith.addf %56, %57 : vector<256x16xf32>
    %c0_26 = arith.constant 0 : index
    %c0_27 = arith.constant 0 : index
    %59 = vector.load %arg17[%c0_26, %c0_27] : memref<256x16xf32, #tpu.memory_space<vmem>>, vector<256x16xf32>
    tpu.vector_store %arg17[%c0_26, %c0_27], %58 {strides = array<i32>} : memref<256x16xf32, #tpu.memory_space<vmem>>, vector<256x16xf32>,
    %60 = arith.truncf %58 : vector<256x16xf32> to vector<256x16xbf16>
    %c0_28 = arith.constant 0 : index
    %c0_29 = arith.constant 0 : index
    %61 = vector.load %arg11[%c0_28, %c0_29] : memref<16x32xbf16, #tpu.memory_space<vmem>>, vector<16x32xbf16>
    %cst_30 = arith.constant dense<0.000000e+00> : vector<256x32xf32>
    %62 = tpu.matmul %60, %61, %cst_30 {dimension_numbers = #tpu.dot_dimension_numbers<[1], [0], [0], [1], [0, 0, 1, 1], [], []>} : vector<256x16xbf16>, vector<16x32xbf16>, vector<256x32xf32> -> vector<256x32xf32>
    %63 = arith.addf %10, %62 : vector<256x32xf32>
    %64 = vector.extract_strided_slice %6 {offsets = [0, 0], sizes = [1, 32], strides = [1, 1]} : vector<5x32xf32> to vector<1x32xf32>
    %65 = vector.broadcast %64 : vector<1x32xf32> to vector<256x32xf32>
    %66 = arith.addf %63, %65 : vector<256x32xf32>
    %cst_31 = arith.constant 0.000000e+00 : f32
    %67 = vector.broadcast %cst_31 : f32 to vector<256x32xf32>
    %68 = arith.maximumf %66, %67 : vector<256x32xf32>
    %69 = arith.truncf %68 : vector<256x32xf32> to vector<256x32xbf16>
    %c0_32 = arith.constant 0 : index
    %c0_33 = arith.constant 0 : index
    %70 = vector.load %arg12[%c0_32, %c0_33] : memref<32x32xbf16, #tpu.memory_space<vmem>>, vector<32x32xbf16>
    %cst_34 = arith.constant dense<0.000000e+00> : vector<256x32xf32>
    %71 = tpu.matmul %69, %70, %cst_34 {dimension_numbers = #tpu.dot_dimension_numbers<[1], [0], [0], [1], [0, 0, 1, 1], [], []>} : vector<256x32xbf16>, vector<32x32xbf16>, vector<256x32xf32> -> vector<256x32xf32>
    %72 = vector.extract_strided_slice %6 {offsets = [1, 0], sizes = [1, 32], strides = [1, 1]} : vector<5x32xf32> to vector<1x32xf32>
    %73 = vector.broadcast %72 : vector<1x32xf32> to vector<256x32xf32>
    %74 = arith.addf %71, %73 : vector<256x32xf32>
    %cst_35 = arith.constant 0.000000e+00 : f32
    %75 = vector.broadcast %cst_35 : f32 to vector<256x32xf32>
    %76 = arith.maximumf %74, %75 : vector<256x32xf32>
    %77 = arith.truncf %76 : vector<256x32xf32> to vector<256x32xbf16>
    %c0_36 = arith.constant 0 : index
    %c0_37 = arith.constant 0 : index
    %78 = vector.load %arg13[%c0_36, %c0_37] : memref<32x32xbf16, #tpu.memory_space<vmem>>, vector<32x32xbf16>
    %cst_38 = arith.constant dense<0.000000e+00> : vector<256x32xf32>
    %79 = tpu.matmul %77, %78, %cst_38 {dimension_numbers = #tpu.dot_dimension_numbers<[1], [0], [0], [1], [0, 0, 1, 1], [], []>} : vector<256x32xbf16>, vector<32x32xbf16>, vector<256x32xf32> -> vector<256x32xf32>
    %80 = vector.extract_strided_slice %6 {offsets = [2, 0], sizes = [1, 32], strides = [1, 1]} : vector<5x32xf32> to vector<1x32xf32>
    %81 = vector.broadcast %80 : vector<1x32xf32> to vector<256x32xf32>
    %82 = arith.addf %79, %81 : vector<256x32xf32>
    %c0_39 = arith.constant 0 : index
    %c0_40 = arith.constant 0 : index
    %c0_41 = arith.constant 0 : index
    %83 = vector.load %arg2[%c0_39, %c0_40, %c0_41] : memref<1x1x256xi32, #tpu.memory_space<vmem>>, vector<1x1x256xi32>
    %84 = vector.shape_cast %83 : vector<1x1x256xi32> to vector<1x256xi32>
    %85 = tpu.iota {dimensions = array<i32: 0>} : vector<40x1xi32>
    %86 = vector.broadcast %85 : vector<40x1xi32> to vector<40x256xi32>
    %87 = vector.broadcast %84 : vector<1x256xi32> to vector<40x256xi32>
    %88 = arith.cmpi eq, %86, %87 : vector<40x256xi32>
    %89 = arith.extui %88 : vector<40x256xi1> to vector<40x256xi32>
    %90 = arith.sitofp %89 : vector<40x256xi32> to vector<40x256xf32>
    %91 = arith.truncf %90 : vector<40x256xf32> to vector<40x256xbf16>
    %92 = arith.truncf %82 : vector<256x32xf32> to vector<256x32xbf16>
    %cst_42 = arith.constant dense<0.000000e+00> : vector<40x32xf32>
    %93 = tpu.matmul %91, %92, %cst_42 {dimension_numbers = #tpu.dot_dimension_numbers<[1], [0], [0], [1], [0, 0, 1, 1], [], []>} : vector<40x256xbf16>, vector<256x32xbf16>, vector<40x32xf32> -> vector<40x32xf32>
    %94 = arith.index_cast %arg0 : i32 to index
    %95 = memref.load %arg1[%94] : memref<3xi32, #tpu.memory_space<smem>>
    %96 = tpu.assume_multiple %95, 8 : i32
    %97 = arith.index_cast %96 : i32 to index
    %c0_43 = arith.constant 0 : index
    %98 = vector.load %arg18[%97, %c0_43] : memref<80x32xf32, #tpu.memory_space<vmem>>, vector<40x32xf32>
    %99 = arith.addf %98, %93 : vector<40x32xf32>
    %100 = arith.index_cast %96 : i32 to index
    %c0_44 = arith.constant 0 : index
    %101 = vector.load %arg18[%100, %c0_44] : memref<80x32xf32, #tpu.memory_space<vmem>>, vector<40x32xf32>
    tpu.vector_store %arg18[%100, %c0_44], %99 {strides = array<i32>} : memref<80x32xf32, #tpu.memory_space<vmem>>, vector<40x32xf32>,
    %c2_i32 = arith.constant 2 : i32
    %102 = arith.cmpi eq, %arg0, %c2_i32 : i32
    %103 = arith.extui %102 : i1 to i32
    %c0_i32_45 = arith.constant 0 : i32
    %104 = arith.cmpi ne, %103, %c0_i32_45 : i32
    scf.if %104 {
      %c0_46 = arith.constant 0 : index
      %c0_47 = arith.constant 0 : index
      %105 = vector.load %arg18[%c0_46, %c0_47] : memref<80x32xf32, #tpu.memory_space<vmem>>, vector<80x32xf32>
      %c0_48 = arith.constant 0 : index
      %c0_49 = arith.constant 0 : index
      %106 = vector.load %arg6[%c0_48, %c0_49] : memref<80x1xf32, #tpu.memory_space<vmem>>, vector<80x1xf32>
      %107 = vector.broadcast %106 : vector<80x1xf32> to vector<80x32xf32>
      %108 = arith.mulf %105, %107 : vector<80x32xf32>
      %c0_50 = arith.constant 0 : index
      %c0_51 = arith.constant 0 : index
      %109 = vector.load %arg5[%c0_50, %c0_51] : memref<80x32xf32, #tpu.memory_space<vmem>>, vector<80x32xf32>
      %110 = arith.addf %109, %108 : vector<80x32xf32>
      %111 = vector.extract_strided_slice %6 {offsets = [3, 0], sizes = [1, 32], strides = [1, 1]} : vector<5x32xf32> to vector<1x32xf32>
      %112 = vector.extract_strided_slice %6 {offsets = [4, 0], sizes = [1, 32], strides = [1, 1]} : vector<5x32xf32> to vector<1x32xf32>
      %cst_52 = arith.constant dense<0.000000e+00> : vector<80xf32>
      %113 = vector.multi_reduction <add>, %110, %cst_52 [1] : vector<80x32xf32> to vector<80xf32>
      %114 = vector.shape_cast %113 : vector<80xf32> to vector<80x1xf32>
      %cst_53 = arith.constant 3.200000e+01 : f32
      %115 = vector.broadcast %cst_53 : f32 to vector<80x1xf32>
      %116 = arith.divf %114, %115 : vector<80x1xf32>
      %117 = vector.broadcast %116 : vector<80x1xf32> to vector<80x32xf32>
      %118 = arith.subf %110, %117 : vector<80x32xf32>
      %119 = arith.mulf %118, %118 : vector<80x32xf32>
      %cst_54 = arith.constant dense<0.000000e+00> : vector<80xf32>
      %120 = vector.multi_reduction <add>, %119, %cst_54 [1] : vector<80x32xf32> to vector<80xf32>
      %121 = vector.shape_cast %120 : vector<80xf32> to vector<80x1xf32>
      %cst_55 = arith.constant 3.200000e+01 : f32
      %122 = vector.broadcast %cst_55 : f32 to vector<80x1xf32>
      %123 = arith.divf %121, %122 : vector<80x1xf32>
      %124 = vector.broadcast %116 : vector<80x1xf32> to vector<80x32xf32>
      %125 = arith.subf %110, %124 : vector<80x32xf32>
      %cst_56 = arith.constant 9.99999974E-6 : f32
      %126 = vector.broadcast %cst_56 : f32 to vector<80x1xf32>
      %127 = arith.addf %123, %126 : vector<80x1xf32>
      %128 = math.rsqrt %127 : vector<80x1xf32>
      %129 = vector.broadcast %128 : vector<80x1xf32> to vector<80x32xf32>
      %130 = arith.mulf %125, %129 : vector<80x32xf32>
      %131 = vector.broadcast %111 : vector<1x32xf32> to vector<80x32xf32>
      %132 = arith.mulf %130, %131 : vector<80x32xf32>
      %133 = vector.broadcast %112 : vector<1x32xf32> to vector<80x32xf32>
      %134 = arith.addf %132, %133 : vector<80x32xf32>
      %c0_57 = arith.constant 0 : index
      %c0_58 = arith.constant 0 : index
      %135 = vector.load %arg16[%c0_57, %c0_58] : memref<80x32xf32, #tpu.memory_space<vmem>>, vector<80x32xf32>
      tpu.vector_store %arg16[%c0_57, %c0_58], %134 {strides = array<i32>} : memref<80x32xf32, #tpu.memory_space<vmem>>, vector<80x32xf32>,
    } else {
    }
    return
  }
  func.func @transform_0(%arg0: i32, %arg1: memref<3xi32, #tpu.memory_space<smem>>) -> (i32, i32, i32) {
    %c0_i32 = arith.constant 0 : i32
    %c0_i32_0 = arith.constant 0 : i32
    %c0_i32_1 = arith.constant 0 : i32
    return %arg0, %c0_i32, %c0_i32_0 : i32, i32, i32
  }
  func.func @transform_1(%arg0: i32, %arg1: memref<3xi32, #tpu.memory_space<smem>>) -> (i32, i32) {
    %c0_i32 = arith.constant 0 : i32
    %c0_i32_0 = arith.constant 0 : i32
    return %arg0, %c0_i32 : i32, i32
  }
  func.func @transform_2(%arg0: i32, %arg1: memref<3xi32, #tpu.memory_space<smem>>) -> (i32, i32) {
    %c0_i32 = arith.constant 0 : i32
    %c0_i32_0 = arith.constant 0 : i32
    return %arg0, %c0_i32 : i32, i32
  }
  func.func @transform_3(%arg0: i32, %arg1: memref<3xi32, #tpu.memory_space<smem>>) -> (i32, i32) {
    %c0_i32 = arith.constant 0 : i32
    %c0_i32_0 = arith.constant 0 : i32
    %c0_i32_1 = arith.constant 0 : i32
    return %c0_i32, %c0_i32_0 : i32, i32
  }
  func.func @transform_4(%arg0: i32, %arg1: memref<3xi32, #tpu.memory_space<smem>>) -> (i32, i32) {
    %c0_i32 = arith.constant 0 : i32
    %c0_i32_0 = arith.constant 0 : i32
    %c0_i32_1 = arith.constant 0 : i32
    return %c0_i32, %c0_i32_0 : i32, i32
  }
  func.func @transform_5(%arg0: i32, %arg1: memref<3xi32, #tpu.memory_space<smem>>) -> (i32, i32) {
    %c0_i32 = arith.constant 0 : i32
    %c0_i32_0 = arith.constant 0 : i32
    %c0_i32_1 = arith.constant 0 : i32
    return %c0_i32, %c0_i32_0 : i32, i32
  }
  func.func @transform_6(%arg0: i32, %arg1: memref<3xi32, #tpu.memory_space<smem>>) -> (i32, i32) {
    %c0_i32 = arith.constant 0 : i32
    %c0_i32_0 = arith.constant 0 : i32
    %c0_i32_1 = arith.constant 0 : i32
    return %c0_i32, %c0_i32_0 : i32, i32
  }
  func.func @transform_7(%arg0: i32, %arg1: memref<3xi32, #tpu.memory_space<smem>>) -> (i32, i32) {
    %c0_i32 = arith.constant 0 : i32
    %c0_i32_0 = arith.constant 0 : i32
    %c0_i32_1 = arith.constant 0 : i32
    return %c0_i32, %c0_i32_0 : i32, i32
  }
  func.func @transform_8(%arg0: i32, %arg1: memref<3xi32, #tpu.memory_space<smem>>) -> (i32, i32) {
    %c0_i32 = arith.constant 0 : i32
    %c0_i32_0 = arith.constant 0 : i32
    %c0_i32_1 = arith.constant 0 : i32
    return %c0_i32, %c0_i32_0 : i32, i32
  }
  func.func @transform_9(%arg0: i32, %arg1: memref<3xi32, #tpu.memory_space<smem>>) -> (i32, i32) {
    %c0_i32 = arith.constant 0 : i32
    %c0_i32_0 = arith.constant 0 : i32
    %c0_i32_1 = arith.constant 0 : i32
    return %c0_i32, %c0_i32_0 : i32, i32
  }
  func.func @transform_10(%arg0: i32, %arg1: memref<3xi32, #tpu.memory_space<smem>>) -> (i32, i32) {
    %c0_i32 = arith.constant 0 : i32
    %c0_i32_0 = arith.constant 0 : i32
    %c0_i32_1 = arith.constant 0 : i32
    return %c0_i32, %c0_i32_0 : i32, i32
  }
  func.func @transform_11(%arg0: i32, %arg1: memref<3xi32, #tpu.memory_space<smem>>) -> (i32, i32) {
    %c0_i32 = arith.constant 0 : i32
    %c0_i32_0 = arith.constant 0 : i32
    %c0_i32_1 = arith.constant 0 : i32
    return %c0_i32, %c0_i32_0 : i32, i32
  }
  func.func @transform_12(%arg0: i32, %arg1: memref<3xi32, #tpu.memory_space<smem>>) -> (i32, i32) {
    %c0_i32 = arith.constant 0 : i32
    %c0_i32_0 = arith.constant 0 : i32
    %c0_i32_1 = arith.constant 0 : i32
    return %c0_i32, %c0_i32_0 : i32, i32
  }
  func.func @transform_13(%arg0: i32, %arg1: memref<3xi32, #tpu.memory_space<smem>>) -> (i32, i32) {
    %c0_i32 = arith.constant 0 : i32
    %c0_i32_0 = arith.constant 0 : i32
    %c0_i32_1 = arith.constant 0 : i32
    return %c0_i32, %c0_i32_0 : i32, i32
  }
  func.func @transform_14(%arg0: i32, %arg1: memref<3xi32, #tpu.memory_space<smem>>) -> (i32, i32) {
    %c0_i32 = arith.constant 0 : i32
    %c0_i32_0 = arith.constant 0 : i32
    %c0_i32_1 = arith.constant 0 : i32
    return %c0_i32, %c0_i32_0 : i32, i32
  }
  func.func @transform_15(%arg0: i32, %arg1: memref<3xi32, #tpu.memory_space<smem>>) -> (i32, i32) {
    %c0_i32 = arith.constant 0 : i32
    %c0_i32_0 = arith.constant 0 : i32
    return %arg0, %c0_i32 : i32, i32
  }
}

</mosaic_0001>

<bundles_post_ra>
// kernel: tpu_custom_call.1
= control target key start
LH: loop header
LB: loop body
LE: loop exit
PB: predicated region body
PF: predicated region fallthrough
CT: control target
= control target key end

     0   :  { %s6238_s0 = inlined_call_operand.vmem [shape: s32[3], index: 0, kind: input, shape index: {}]   ;;  %s6239_s1 = inlined_call_operand.vmem [shape: s32[3,1,256], index: 1, kind: input, shape index: {}]   ;;  %s6240_s2 = inlined_call_operand.vmem [shape: bf16[768,64], index: 2, kind: input, shape index: {}]   ;;  %s6241_s3 = inlined_call_operand.vmem [shape: f32[768,16], index: 3, kind: input, shape index: {}]   ;;  %s6242_s4 = inlined_call_operand.vmem [shape: f32[80,32], index: 4, kind: input, shape index: {}]   ;;  %s6243_s5 = inlined_call_operand.vmem [shape: f32[80,1], index: 5, kind: input, shape index: {}]   ;;  %s6244_s6 = inlined_call_operand.vmem [shape: bf16[64,48], index: 6, kind: input, shape index: {}]   ;;  %s6245_s7 = inlined_call_operand.vmem [shape: bf16[16,16], index: 7, kind: input, shape index: {}]   ;;  %s6246_s8 = inlined_call_operand.vmem [shape: bf16[16,16], index: 8, kind: input, shape index: {}]   ;;  %s6247_s9 = inlined_call_operand.vmem [shape: bf16[16,16], index: 9, kind: input, shape index: {}]   ;;  %s6248_s10 = inlined_call_operand.vmem [shape: bf16[16,32], index: 10, kind: input, shape index: {}]   ;;  %s6249_s11 = inlined_call_operand.vmem [shape: bf16[32,32], index: 11, kind: input, shape index: {}]   ;;  %s6250_s12 = inlined_call_operand.vmem [shape: bf16[32,32], index: 12, kind: input, shape index: {}]   ;;  %s6251_s13 = inlined_call_operand.vmem [shape: f32[5,16], index: 13, kind: input, shape index: {}]   ;;  %s6252_s14 = inlined_call_operand.vmem [shape: f32[5,32], index: 14, kind: input, shape index: {}]   ;;  %s6253_s15 = inlined_call_operand.vmem [shape: f32[80,32], index: 15, kind: output, shape index: {0}]   ;;  %s6254_s16 = inlined_call_operand.vmem [shape: f32[768,16], index: 16, kind: output, shape index: {1}]  }
   0x1   :  { %6288 = sst [smem:[#allocation36_spill]] %s6238_s0 }
   0x2   :  { %6289 = sst [smem:[#allocation37_spill]] %s6242_s4  ;;  %s6291_s23 = sld [smem:[#allocation36_spill]] }
   0x3   :  { %6290 = sst [smem:[#allocation38_spill]] %s6253_s15 }
   0x8   :  { %s22_s4 = sshll.u32 %s6291_s23, 4  ;;  %s23_s4 = int_to_ptr.vmem [resolvable:$true] %s22_s4 }
   0x9   :  { %s4596_s24 = scalar_lea.vmem %s23_s4, 16  ;;  %p4601_p1 = scmp.lt.s32.totalorder %s23_s4, %s23_s4 }
   0xa   :  { %p4597_p0 = scmp.ne.s32.totalorder %s23_s4, %s4596_s24  ;;  %p4602_p2 = scmp.lt.s32.totalorder %s4596_s24, %s4596_s24 }
   0xc   :  { %p4603_p3 = por %p4602_p2, %p4601_p1 }
   0xe   :  { %p4604_p4 = pnand %p4603_p3, %p4597_p0 }
  0x10   :  { %4607 = shalt.err (!%p4604_p4)  }
  0x11   :  { %s4618_s25 = smov [#allocation4]  }
  0x12   :  { %25 = dma.vmem_to_smem %s23_s4, 16, %s4618_s25, [#allocation3] }
  0x13   :  { %4612 = dma.done.wait [#allocation3], 16 }
  0x14   :  { %4613 = vsyncadd [#allocation3], 4294967280 }
  0x15   :  { %27 = sfence }
  0x16   :  { %s4712_s26 = smov 0  }
  0x17 LB: > { %6292 = sst [smem:[#allocation6_spill]] %s4616_s26  ;;  %s4718_s27 = sadd.s32 4294967295, %s4616_s26   ;;  %s4616_s26 = sphi %s4712_s26, %s33_s26  }
  0x18   : > { %p3879_p5 = scmp.ge.s32.totalorder %s4616_s26, 1  ;;  %p463_p6 = scmp.lt.s32.totalorder %s4616_s26, 4 }
  0x1a   : > { %p464_p7 = pnand %p3879_p5, %p463_p6 }
  0x1c   : > { %467 = sbr.rel (%p464_p7) target bundleno = 2654 (0xa5e), region = 76 }
  0x23   : > { %p520_p8 = scmp.lt.s32.totalorder %s4718_s27, 2  ;;  %s3881_s4 = sshll.u32 %s4718_s27, 5 }
  0x24   : > { %p525_p9 = scmp.lt.s32.totalorder %s3881_s4, 95  ;;  %p3887_p10 = scmp.ne.s32.totalorder %s4718_s27, 0 }
  0x25   : > { %s521_s28 = scalar_select %p520_p8, %s4718_s27, 2 }
  0x26   : > { %s6357_s4 = smov (!%p525_p9, %s3881_s4), 95  ;;  %546 = sbr.rel (%p3887_p10) target bundleno = 45 (0x2d), region = 80 }
  0x27   : > { %s3880_s29 = sshll.u32 %s521_s28, 1  ;;  %s3882_s18 = sshll.u32 %s6357_s4, 2  ;;  %vm547_vm0 = vcmask (!%p3887_p10), 261120   ;;  %v4619_v0 = vmov (!%p3887_p10), 0.0  }
  0x28   : > { %s4728_s17 = scalar_lea.vmem %s6239_s1, %s3880_s29  ;;  %s4733_s21 = scalar_lea.vmem %s6240_s2, %s3882_s18  ;;  %548 = vst.msk [vmem:[#allocation2] sm:$0xff] (!%p3887_p10), %vm547_vm0, %v4619_v0  ;;  %549 = vst.msk [vmem:[#allocation2 + $0x8] sm:$0xff] (!%p3887_p10), %vm547_vm0, %v4619_v0 }
  0x29   : > { %s3884_s22 = sshll.u32 %s6357_s4, 3  ;;  %550 = vst.msk [vmem:[#allocation2 + $0x10] sm:$0xff] (!%p3887_p10), %vm547_vm0, %v4619_v0  ;;  %551 = vst.msk [vmem:[#allocation2 + $0x18] sm:$0xff] (!%p3887_p10), %vm547_vm0, %v4619_v0 }
  0x2a   : > { %s4738_s25 = scalar_lea.vmem %s6241_s3, %s3884_s22  ;;  %s4743_s28 = scalar_lea.vmem %s6254_s16, %s3884_s22  ;;  %552 = vst.msk [vmem:[#allocation2 + $0x20] sm:$0xff] (!%p3887_p10), %vm547_vm0, %v4619_v0  ;;  %553 = vst.msk [vmem:[#allocation2 + $0x28] sm:$0xff] (!%p3887_p10), %vm547_vm0, %v4619_v0 }
  0x2b   : > { %554 = vst.msk [vmem:[#allocation2 + $0x30] sm:$0xff] (!%p3887_p10), %vm547_vm0, %v4619_v0  ;;  %555 = vst.msk [vmem:[#allocation2 + $0x38] sm:$0xff] (!%p3887_p10), %vm547_vm0, %v4619_v0 }
  0x2c   : > { %556 = vst.msk [vmem:[#allocation2 + $0x40] sm:$0xff] (!%p3887_p10), %vm547_vm0, %v4619_v0  ;;  %557 = vst.msk [vmem:[#allocation2 + $0x48] sm:$0xff] (!%p3887_p10), %vm547_vm0, %v4619_v0 }
  0x2d PF: > { %v4475_v1 = vld [vmem:[%s6244_s6] sm:$0xff]   ;;  %v4476_v2 = vld [vmem:[%s6244_s6 + $0x8] sm:$0xff]   ;;  %v4477_v3 = vld [vmem:[%s6244_s6 + $0x10] sm:$0xff]   ;;  %vm736_vm1 = vcmask 523264   ;;  %vm970_vm2 = vcmask 130048   ;;  %s4620_s20 = smov 16  }
  0x2e   : > { %4211 = vmatprep.subr.bf16.mxu0 %v4475_v1  ;;  %v4479_v4 = vld [vmem:[%s4733_s21] sm:$0xff]   ;;  %v4478_v6 = vld [vmem:[%s6244_s6 + $0x18] sm:$0xff]   ;;  %v4767_v8 = vld [vmem:[%s4738_s25 + $0x28] sm:$0xff]  ;;  %vm2888_vm3 = vcmask 261120   ;;  %p4050_p11 = scmp.ne.s32.totalorder %s4718_s27, 2 }
  0x2f   : > { %4212 = vmatpush3.bf16.msra.mxu0 %v4475_v1  ;;  %4219 = vmatprep.mubr.msk.bf16.mxu0 %vm736_vm1, %v4479_v4  ;;  %v4481_v5 = vld [vmem:[%s6245_s7] sm:$0xff]   ;;  %v4772_v10 = vld [vmem:[%s4738_s25 + $0x30] sm:$0xff]  ;;  %v4775_v11 = vld [vmem:[%s4738_s25 + $0x38] sm:$0xff] }
  0x30   : > { %4213 = vmatprep.subr.bf16.mxu0 %v4476_v2  ;;  %4459 = vmatprep.subr.bf16.mxu1 %v4481_v5  ;;  %v4764_v7 = vld [vmem:[%s4738_s25 + $0x20] sm:$0xff]  ;;  %v949_v12 = vpack.c.bf16 %v4775_v11, %v4772_v10  ;;  %v4784_v14 = vld [vmem:[%s4738_s25 + $0x48] sm:$0xff]  ;;  %v4482_v17 = vld [vmem:[%s4733_s21 + $0x10] sm:$0xff]  }
  0x31   : > { %4460 = vmatpush3.bf16.msra.mxu1 %v4481_v5  ;;  %v948_v9 = vpack.c.bf16 %v4767_v8, %v4764_v7  ;;  %v4781_v13 = vld [vmem:[%s4738_s25 + $0x40] sm:$0xff]  ;;  %v4480_v15 = vld [vmem:[%s4733_s21 + $0x8] sm:$0xff]   ;;  %v4792_v18 = vld [vmem:[%s4738_s25 + $0x50] sm:$0xff] }
  0x32   : > { %v950_v16 = vpack.c.bf16 %v4784_v14, %v4781_v13  ;;  %v4796_v19 = vld [vmem:[%s4738_s25 + $0x58] sm:$0xff]  ;;  %v602_v20 = vld [vmem:[%s4738_s25 + $0x60] sm:$0xff]  ;;  %v603_v21 = vld [vmem:[%s4738_s25 + $0x68] sm:$0xff] }
  0x33   : > { %4214 = vmatpush3.bf16.msra.mxu0 %v4476_v2  ;;  %4257 = vmatprep.mubr.msk.bf16.mxu1 %vm970_vm2, %v948_v9  ;;  %v951_v22 = vpack.c.bf16 %v4796_v19, %v4792_v18  ;;  %v952_v23 = vpack.c.bf16 %v603_v21, %v602_v20  ;;  %v4483_v24 = vld [vmem:[%s4733_s21 + $0x18] sm:$0xff]   ;;  %v4484_v25 = vld [vmem:[%s4733_s21 + $0x20] sm:$0xff]   ;;  %v4808_v26 = vld [vmem:[%s4738_s25 + $0x70] sm:$0xff] }
  0x34   : > { %4215 = vmatprep.subr.bf16.mxu0 %v4477_v3  ;;  %4258 = vmatmul.mubr.msk.bf16.vlgmr.msra.gmra.mrb[0].mxu1 %vm970_vm2, %v949_v12  ;;  %v4812_v27 = vld [vmem:[%s4738_s25 + $0x78] sm:$0xff]  ;;  %v4815_v28 = vld [vmem:[%s4738_s25 + $0x80] sm:$0xff]  ;;  %v607_v29 = vld [vmem:[%s4738_s25 + $0x88] sm:$0xff]  ;;  %v1212_v12 = vlaneseq }
  0x35   : > { %4261 = vmatprep.mubr.msk.bf16.mxu1 %vm970_vm2, %v950_v16  ;;  %v953_v30 = vpack.c.bf16 %v4812_v27, %v4808_v26  ;;  %v954_v31 = vpack.c.bf16 %v607_v29, %v4815_v28  ;;  %v4485_v32 = vld [vmem:[%s4733_s21 + $0x28] sm:$0xff]   ;;  %v4486_v33 = vld [vmem:[%s4733_s21 + $0x30] sm:$0xff]   ;;  %v4831_v35 = vld [vmem:[%s4738_s25 + $0x98] sm:$0xff] }
  0x36   : > { %v4828_v34 = vld [vmem:[%s4738_s25 + $0x90] sm:$0xff]  ;;  %v4834_v36 = vld [vmem:[%s4738_s25 + $0xa0] sm:$0xff]  ;;  %v611_v37 = vld [vmem:[%s4738_s25 + $0xa8] sm:$0xff]  ;;  %v4922_v20 = vshrl.u32 %v1212_v12, 7 }
  0x37   : > { %4216 = vmatpush3.bf16.msra.mxu0 %v4477_v3  ;;  %v955_v38 = vpack.c.bf16 %v4831_v35, %v4828_v34  ;;  %v956_v39 = vpack.c.bf16 %v611_v37, %v4834_v36  ;;  %v4487_v40 = vld [vmem:[%s4733_s21 + $0x38] sm:$0xff]   ;;  %v4846_v41 = vld [vmem:[%s4738_s25 + $0xb0] sm:$0xff]  ;;  %v4488_v43 = vld [vmem:[%s4733_s21 + $0x40] sm:$0xff]  }
  0x38   : > { %4217 = vmatprep.subr.bf16.mxu0 %v4478_v6  ;;  %v4849_v42 = vld [vmem:[%s4738_s25 + $0xb8] sm:$0xff]  ;;  %v4853_v44 = vld [vmem:[%s4738_s25 + $0xc0] sm:$0xff]  ;;  %v4856_v45 = vld [vmem:[%s4738_s25 + $0xc8] sm:$0xff] }
  0x39   : > { %v957_v46 = vpack.c.bf16 %v4849_v42, %v4846_v41  ;;  %v958_v47 = vpack.c.bf16 %v4856_v45, %v4853_v44  ;;  %v4489_v48 = vld [vmem:[%s4733_s21 + $0x48] sm:$0xff]   ;;  %v4868_v49 = vld [vmem:[%s4738_s25 + $0xd0] sm:$0xff]  ;;  %v4871_v50 = vld [vmem:[%s4738_s25 + $0xd8] sm:$0xff] }
  0x3a   : > { %v4490_v51 = vld [vmem:[%s4733_s21 + $0x50] sm:$0xff]   ;;  %v618_v52 = vld [vmem:[%s4738_s25 + $0xe0] sm:$0xff]  ;;  %v619_v53 = vld [vmem:[%s4738_s25 + $0xe8] sm:$0xff]  ;;  %v959_v54 = vpack.c.bf16 %v4871_v50, %v4868_v49 }
  0x3b   : > { %4218 = vmatpush3.bf16.msra.mxu0 %v4478_v6  ;;  %v960_v55 = vpack.c.bf16 %v619_v53, %v618_v52  ;;  %v4491_v56 = vld [vmem:[%s4733_s21 + $0x58] sm:$0xff]   ;;  %v4884_v57 = vld [vmem:[%s4738_s25 + $0xf0] sm:$0xff]  ;;  %v4492_v59 = vld [vmem:[%s4733_s21 + $0x60] sm:$0xff]  }
  0x3c   : > { %4251 = vmatprep.subr.bf16.mxu0 %v4481_v5  ;;  %4262 = vmatmul.mubr.msk.bf16.gmra.mrb[4].mxu1 %vm970_vm2, %v951_v22  ;;  %6293 = vst [vmem:[#allocation7_spill] sm:$0xff] %v4884_v57  ;;  %v4887_v58 = vld [vmem:[%s4738_s25 + $0xf8] sm:$0xff]  ;;  %v4493_v61 = vld [vmem:[%s4733_s21 + $0x68] sm:$0xff]   ;;  %v4494_v62 = vld [vmem:[%s4733_s21 + $0x70] sm:$0xff]  }
  0x3d   : > { %4265 = vmatprep.mubr.msk.bf16.mxu1 %vm970_vm2, %v952_v23  ;;  %6294 = vst [vmem:[#allocation8_spill] sm:$0xff] %v4887_v58  ;;  %v961_v60 = vpack.c.bf16 %v4887_v58, %v4884_v57  ;;  %v4900_v63 = vld [vmem:[%s4738_s25] sm:$0xff]  ;;  %v4903_v0 = vld [vmem:[%s4738_s25 + $0x8] sm:$0xff]  ;;  %v4495_v1 = vld [vmem:[%s4733_s21 + $0x78] sm:$0xff]   ;;  %s4621_s21 = smov 112  }
  0x3e   : > { %4220 = vmatmul.mubr.msk.bf16.vlgmr.msra.gmra.mrb[0].mxu0 %vm736_vm1, %v4480_v15  ;;  %v946_v2 = vpack.c.bf16 %v4903_v0, %v4900_v63  ;;  %v4911_v3 = vld [vmem:[%s4738_s25 + $0x10] sm:$0xff]  ;;  %v4914_v4 = vld [vmem:[%s4738_s25 + $0x18] sm:$0xff]  ;;  %v4496_v6 = vld [vmem:[%s6246_s8] sm:$0xff]  }
  0x3f   : > { %4223 = vmatprep.mubr.msk.bf16.mxu0 %vm736_vm1, %v4482_v17  ;;  %4252 = vmatpush3.bf16.msra.mxu0 %v4481_v5  ;;  %v947_v5 = vpack.c.bf16 %v4914_v4, %v4911_v3 }
  0x40   : > { %4285 = vmatprep.subr.bf16.mxu1 %v4496_v6 }
  0x41   : > { %4286 = vmatpush3.bf16.msra.mxu1 %v4496_v6 }
  0x44   : > { %4266 = vmatmul.mubr.msk.bf16.gmra.mrb[8].mxu1 %vm970_vm2, %v953_v30  ;;  %v4938_v30 = vld [vmem:[%s6251_s13] sm:$0x1f] }
  0x45   : > { %4269 = vmatprep.mubr.msk.bf16.mxu1 %vm970_vm2, %v954_v31 }
  0x46   : > { %4224 = vmatmul.mubr.msk.bf16.gmra.mrb[4].mxu0 %vm736_vm1, %v4483_v24 }
  0x47   : > { %4227 = vmatprep.mubr.msk.bf16.mxu0 %vm736_vm1, %v4484_v25  ;;  %v4933_v25 = vsub.s32 0, %v4922_v20 }
  0x49   : > { %6295 = vst [vmem:[#allocation9_spill] sm:$0xff] %v4933_v25  ;;  %v4942_v37 = vrot.slane %v4938_v30, %v4933_v25 }
  0x4c   : > { %4270 = vmatmul.mubr.msk.bf16.gmra.mrb[12].mxu1 %vm970_vm2, %v955_v38 }
  0x4d   : > { %4273 = vmatprep.mubr.msk.bf16.mxu1 %vm970_vm2, %v956_v39 }
  0x4e   : > { %4228 = vmatmul.mubr.msk.bf16.gmra.mrb[8].mxu0 %vm736_vm1, %v4485_v32 }
  0x4f   : > { %4231 = vmatprep.mubr.msk.bf16.mxu0 %vm736_vm1, %v4486_v33 }
  0x54   : > { %4274 = vmatmul.mubr.msk.bf16.gmra.mrb[16].mxu1 %vm970_vm2, %v957_v46 }
  0x55   : > { %4277 = vmatprep.mubr.msk.bf16.mxu1 %vm970_vm2, %v958_v47 }
  0x56   : > { %4232 = vmatmul.mubr.msk.bf16.gmra.mrb[12].mxu0 %vm736_vm1, %v4487_v40 }
  0x57   : > { %4235 = vmatprep.mubr.msk.bf16.mxu0 %vm736_vm1, %v4488_v43 }
  0x5c   : > { %4278 = vmatmul.mubr.msk.bf16.gmra.mrb[20].mxu1 %vm970_vm2, %v959_v54 }
  0x5d   : > { %4281 = vmatprep.mubr.msk.bf16.mxu1 %vm970_vm2, %v960_v55 }
  0x5e   : > { %4236 = vmatmul.mubr.msk.bf16.gmra.mrb[16].mxu0 %vm736_vm1, %v4489_v48 }
  0x5f   : > { %4239 = vmatprep.mubr.msk.bf16.mxu0 %vm736_vm1, %v4490_v51 }
  0x64   : > { %4282 = vmatmul.mubr.msk.bf16.gmra.mrb[24].mxu1 %vm970_vm2, %v961_v60 }
  0x66   : > { %4240 = vmatmul.mubr.msk.bf16.gmra.mrb[20].mxu0 %vm736_vm1, %v4491_v56 }
  0x67   : > { %4243 = vmatprep.mubr.msk.bf16.mxu0 %vm736_vm1, %v4492_v59 }
  0x6e   : > { %4244 = vmatmul.mubr.msk.bf16.gmra.mrb[24].mxu0 %vm736_vm1, %v4493_v61 }
  0x6f   : > { %4247 = vmatprep.mubr.msk.bf16.mxu0 %vm736_vm1, %v4494_v62 }
  0x76   : > { %4248 = vmatmul.mubr.msk.bf16.gmra.mrb[28].mxu0 %vm736_vm1, %v4495_v1 }
  0x77   : > { %4253 = vmatprep.mubr.msk.bf16.mxu0 %vm970_vm2, %v946_v2 }
  0x7e   : > { %4254 = vmatmul.mubr.msk.bf16.vlgmr.msra.gmra.mrb[32].mxu0 %vm970_vm2, %v947_v5 }
 0x107   : > { %v4259_v9 = vpop.f32.mrb[0].mxu1 }
 0x108   : > { %v1069_v15 = vpop.f32.mrb[1].mxu1 }
 0x109   : > { %v4260_v16 = vpop.f32.mrb[2].mxu1 }
 0x10a   : > { %v1072_v17 = vpop.f32.mrb[3].mxu1 }
 0x10f   : > { %v4263_v29 = vpop.f32.mrb[4].mxu1 }
 0x110   : > { %v1085_v31 = vpop.f32.mrb[5].mxu1 }
 0x111   : > { %v4924_v21 = vpop.f32.mrb[0].mxu0  ;;  %v4264_v32 = vpop.f32.mrb[6].mxu1 }
 0x112   : > { %v4926_v22 = vpop.f32.mrb[1].mxu0  ;;  %v1088_v33 = vpop.f32.mrb[7].mxu1 }
 0x113   : > { %v4928_v23 = vpop.f32.mrb[2].mxu0 }
 0x114   : > { %v4930_v24 = vpop.f32.mrb[3].mxu0 }
 0x117   : > { %v4267_v52 = vpop.f32.mrb[8].mxu1 }
 0x118   : > { %v1101_v55 = vpop.f32.mrb[9].mxu1 }
 0x119   : > { %v4944_v38 = vpop.f32.mrb[4].mxu0  ;;  %v4268_v59 = vpop.f32.mrb[10].mxu1 }
 0x11a   : > { %6296 = vst [vmem:[#allocation10_spill] sm:$0xff] %v4944_v38  ;;  %v1186_v39 = vadd.f32 %v4259_v9, %v4944_v38  ;;  %v4947_v40 = vpop.f32.mrb[5].mxu0  ;;  %v1104_v61 = vpop.f32.mrb[11].mxu1 }
 0x11b   : > { %6297 = vst [vmem:[#allocation11_spill] sm:$0xff] %v4947_v40  ;;  %v1184_v43 = vadd.f32 %v1069_v15, %v4947_v40  ;;  %v4950_v46 = vpop.f32.mrb[6].mxu0 }
 0x11c   : > { %6298 = vst [vmem:[#allocation12_spill] sm:$0xff] %v4950_v46  ;;  %v1222_v47 = vadd.f32 %v4942_v37, %v1186_v39  ;;  %v1187_v48 = vadd.f32 %v4260_v16, %v4950_v46  ;;  %v4954_v51 = vpop.f32.mrb[7].mxu0 }
 0x11d   : > { %6299 = vst [vmem:[#allocation13_spill] sm:$0xff] %v4954_v51  ;;  %v1220_v53 = vadd.f32 %v4942_v37, %v1184_v43  ;;  %v1185_v54 = vadd.f32 %v1072_v17, %v4954_v51 }
 0x11e   : > { %v1223_v56 = vadd.f32 %v4942_v37, %v1187_v48  ;;  %v1254_v62 = vmax.f32 %v1222_v47, 0.0 }
 0x11f   : > { %v1221_v60 = vadd.f32 %v4942_v37, %v1185_v54  ;;  %v1252_v2 = vmax.f32 %v1220_v53, 0.0  ;;  %v4271_v53 = vpop.f32.mrb[12].mxu1 }
 0x120   : > { %v1255_v1 = vmax.f32 %v1223_v56, 0.0 }
 0x121   : > { %v1253_v5 = vmax.f32 %v1221_v60, 0.0  ;;  %v4960_v6 = vpop.f32.mrb[8].mxu0 }
 0x122   : > { %6300 = vst [vmem:[#allocation14_spill] sm:$0xff] %v4960_v6  ;;  %v4962_v9 = vpack.c.bf16 %v1255_v1, %v1254_v62  ;;  %v1190_v12 = vadd.f32 %v4263_v29, %v4960_v6  ;;  %v4965_v15 = vpop.f32.mrb[9].mxu0  ;;  %v1117_v29 = vpop.f32.mrb[13].mxu1 }
 0x123   : > { %6301 = vst [vmem:[#allocation15_spill] sm:$0xff] %v4965_v15  ;;  %v4967_v16 = vpack.c.bf16 %v1253_v5, %v1252_v2  ;;  %v1188_v17 = vadd.f32 %v1085_v31, %v4965_v15  ;;  %v4970_v39 = vpop.f32.mrb[10].mxu0  ;;  %v4272_v62 = vpop.f32.mrb[14].mxu1 }
 0x124   : > { %6302 = vst [vmem:[#allocation16_spill] sm:$0xff] %v4970_v39  ;;  %v1226_v43 = vadd.f32 %v4942_v37, %v1190_v12  ;;  %v1191_v47 = vadd.f32 %v4264_v32, %v4970_v39  ;;  %v4974_v48 = vpop.f32.mrb[11].mxu0  ;;  %v1120_v31 = vpop.f32.mrb[15].mxu1 }
 0x125   : > { %6303 = vst [vmem:[#allocation17_spill] sm:$0xff] %v4974_v48  ;;  %v1224_v54 = vadd.f32 %v4942_v37, %v1188_v17  ;;  %v1189_v56 = vadd.f32 %v1088_v33, %v4974_v48 }
 0x126   : > { %v1227_v60 = vadd.f32 %v4942_v37, %v1191_v47  ;;  %v1258_v2 = vmax.f32 %v1226_v43, 0.0 }
 0x127   : > { %v1225_v1 = vadd.f32 %v4942_v37, %v1189_v56  ;;  %v1256_v6 = vmax.f32 %v1224_v54, 0.0 }
 0x128   : > { %v1259_v5 = vmax.f32 %v1227_v60, 0.0  ;;  %v4275_v60 = vpop.f32.mrb[16].mxu1 }
 0x129   : > { %v1257_v12 = vmax.f32 %v1225_v1, 0.0  ;;  %v4980_v15 = vpop.f32.mrb[12].mxu0 }
 0x12a   : > { %6304 = vst [vmem:[#allocation18_spill] sm:$0xff] %v4980_v15  ;;  %v4982_v32 = vpack.c.bf16 %v1259_v5, %v1258_v2  ;;  %v1194_v39 = vadd.f32 %v4267_v52, %v4980_v15  ;;  %v4985_v17 = vpop.f32.mrb[13].mxu0  ;;  %v1133_v52 = vpop.f32.mrb[17].mxu1 }
 0x12b   : > { %6305 = vst [vmem:[#allocation19_spill] sm:$0xff] %v4985_v17  ;;  %v4987_v33 = vpack.c.bf16 %v1257_v12, %v1256_v6  ;;  %v1192_v47 = vadd.f32 %v1101_v55, %v4985_v17  ;;  %v4990_v48 = vpop.f32.mrb[14].mxu0  ;;  %v4276_v6 = vpop.f32.mrb[18].mxu1 }
 0x12c   : > { %6306 = vst [vmem:[#allocation20_spill] sm:$0xff] %v4990_v48  ;;  %v1230_v56 = vadd.f32 %v4942_v37, %v1194_v39  ;;  %v1195_v43 = vadd.f32 %v4268_v59, %v4990_v48  ;;  %v4994_v54 = vpop.f32.mrb[15].mxu0  ;;  %v1136_v55 = vpop.f32.mrb[19].mxu1 }
 0x12d   : > { %6307 = vst [vmem:[#allocation21_spill] sm:$0xff] %v4994_v54  ;;  %v1228_v1 = vadd.f32 %v4942_v37, %v1192_v47  ;;  %v1193_v2 = vadd.f32 %v1104_v61, %v4994_v54 }
 0x12e   : > { %v1231_v5 = vadd.f32 %v4942_v37, %v1195_v43  ;;  %v1262_v15 = vmax.f32 %v1230_v56, 0.0 }
 0x12f   : > { %v1229_v12 = vadd.f32 %v4942_v37, %v1193_v2  ;;  %v1260_v38 = vmax.f32 %v1228_v1, 0.0 }
 0x130   : > { %v1263_v17 = vmax.f32 %v1231_v5, 0.0  ;;  %v4279_v5 = vpop.f32.mrb[20].mxu1 }
 0x131   : > { %v1261_v39 = vmax.f32 %v1229_v12, 0.0  ;;  %v5000_v46 = vpop.f32.mrb[16].mxu0 }
 0x132   : > { %6308 = vst [vmem:[#allocation22_spill] sm:$0xff] %v5000_v46  ;;  %v5002_v59 = vpack.c.bf16 %v1263_v17, %v1262_v15  ;;  %v1198_v48 = vadd.f32 %v4271_v53, %v5000_v46  ;;  %v5005_v47 = vpop.f32.mrb[17].mxu0  ;;  %v1149_v53 = vpop.f32.mrb[21].mxu1 }
 0x133   : > { %6309 = vst [vmem:[#allocation23_spill] sm:$0xff] %v5005_v47  ;;  %v5007_v61 = vpack.c.bf16 %v1261_v39, %v1260_v38  ;;  %v1196_v43 = vadd.f32 %v1117_v29, %v5005_v47  ;;  %v5010_v54 = vpop.f32.mrb[18].mxu0  ;;  %v4280_v38 = vpop.f32.mrb[22].mxu1 }
 0x134   : > { %6310 = vst [vmem:[#allocation24_spill] sm:$0xff] %v5010_v54  ;;  %v1234_v2 = vadd.f32 %v4942_v37, %v1198_v48  ;;  %v1199_v56 = vadd.f32 %v4272_v62, %v5010_v54  ;;  %v5014_v1 = vpop.f32.mrb[19].mxu0  ;;  %v1152_v29 = vpop.f32.mrb[23].mxu1 }
 0x135   : > { %6311 = vst [vmem:[#allocation25_spill] sm:$0xff] %v5014_v1  ;;  %v1232_v15 = vadd.f32 %v4942_v37, %v1196_v43  ;;  %v1197_v17 = vadd.f32 %v1120_v31, %v5014_v1 }
 0x136   : > { %v1235_v12 = vadd.f32 %v4942_v37, %v1199_v56  ;;  %v1266_v46 = vmax.f32 %v1234_v2, 0.0 }
 0x137   : > { %v1233_v39 = vadd.f32 %v4942_v37, %v1197_v17  ;;  %v1264_v40 = vmax.f32 %v1232_v15, 0.0 }
 0x138   : > { %v1267_v47 = vmax.f32 %v1235_v12, 0.0  ;;  %v4283_v12 = vpop.f32.mrb[24].mxu1 }
 0x139   : > { %v1265_v48 = vmax.f32 %v1233_v39, 0.0  ;;  %v5020_v51 = vpop.f32.mrb[20].mxu0 }
 0x13a   : > { %6312 = vst [vmem:[#allocation26_spill] sm:$0xff] %v5020_v51  ;;  %v5022_v62 = vpack.c.bf16 %v1267_v47, %v1266_v46  ;;  %v1202_v54 = vadd.f32 %v4275_v60, %v5020_v51  ;;  %v5025_v43 = vpop.f32.mrb[21].mxu0  ;;  %v1165_v60 = vpop.f32.mrb[25].mxu1 }
 0x13b   : > { %6313 = vst [vmem:[#allocation27_spill] sm:$0xff] %v5025_v43  ;;  %v5027_v31 = vpack.c.bf16 %v1265_v48, %v1264_v40  ;;  %v1200_v56 = vadd.f32 %v1133_v52, %v5025_v43  ;;  %v5030_v1 = vpop.f32.mrb[22].mxu0  ;;  %v4284_v40 = vpop.f32.mrb[26].mxu1 }
 0x13c   : > { %6314 = vst [vmem:[#allocation28_spill] sm:$0xff] %v5030_v1  ;;  %v1238_v17 = vadd.f32 %v4942_v37, %v1202_v54  ;;  %v1203_v2 = vadd.f32 %v4276_v6, %v5030_v1  ;;  %v5034_v15 = vpop.f32.mrb[23].mxu0  ;;  %v1168_v52 = vpop.f32.mrb[27].mxu1 }
 0x13d   : > { %6315 = vst [vmem:[#allocation29_spill] sm:$0xff] %v5034_v15  ;;  %v1236_v46 = vadd.f32 %v4942_v37, %v1200_v56  ;;  %v1201_v47 = vadd.f32 %v1136_v55, %v5034_v15 }
 0x13e   : > { %v1239_v39 = vadd.f32 %v4942_v37, %v1203_v2  ;;  %v1270_v51 = vmax.f32 %v1238_v17, 0.0 }
 0x13f   : > { %v1237_v48 = vadd.f32 %v4942_v37, %v1201_v47  ;;  %v1268_v25 = vmax.f32 %v1236_v46, 0.0 }
 0x140   : > { %v1271_v43 = vmax.f32 %v1239_v39, 0.0 }
 0x141   : > { %v1269_v54 = vmax.f32 %v1237_v48, 0.0  ;;  %v5040_v58 = vpop.f32.mrb[24].mxu0 }
 0x142   : > { %6316 = vst [vmem:[#allocation30_spill] sm:$0xff] %v5040_v58  ;;  %v5042_v6 = vpack.c.bf16 %v1271_v43, %v1270_v51  ;;  %v1206_v1 = vadd.f32 %v4279_v5, %v5040_v58  ;;  %v5045_v56 = vpop.f32.mrb[25].mxu0 }
 0x143   : > { %6317 = vst [vmem:[#allocation31_spill] sm:$0xff] %v5045_v56  ;;  %v1290_v55 = vpack.c.bf16 %v1269_v54, %v1268_v25  ;;  %v1204_v15 = vadd.f32 %v1149_v53, %v5045_v56  ;;  %v5048_v2 = vpop.f32.mrb[26].mxu0 }
 0x144   : > { %6318 = vst [vmem:[#allocation32_spill] sm:$0xff] %v5048_v2  ;;  %v1242_v47 = vadd.f32 %v4942_v37, %v1206_v1  ;;  %v1207_v17 = vadd.f32 %v4280_v38, %v5048_v2  ;;  %v5052_v39 = vpop.f32.mrb[27].mxu0 }
 0x145   : > { %v1240_v46 = vadd.f32 %v4942_v37, %v1204_v15  ;;  %v1205_v51 = vadd.f32 %v1152_v29, %v5052_v39 }
 0x146   : > { %v1243_v43 = vadd.f32 %v4942_v37, %v1207_v17  ;;  %v1274_v48 = vmax.f32 %v1242_v47, 0.0 }
 0x147   : > { %v1241_v5 = vadd.f32 %v4942_v37, %v1205_v51  ;;  %v1272_v54 = vmax.f32 %v1240_v46, 0.0 }
 0x148   : > { %v1275_v25 = vmax.f32 %v1243_v43, 0.0 }
 0x149   : > { %v1273_v53 = vmax.f32 %v1241_v5, 0.0  ;;  %v5058_v58 = vpop.f32.mrb[28].mxu0 }
 0x14a   : > { %6319 = vst [vmem:[#allocation33_spill] sm:$0xff] %v5058_v58  ;;  %v1293_v56 = vpack.c.bf16 %v1275_v25, %v1274_v48  ;;  %v1210_v1 = vadd.f32 %v4283_v12, %v5058_v58  ;;  %v5061_v38 = vpop.f32.mrb[29].mxu0 }
 0x14b   : > { %6320 = vst [vmem:[#allocation34_spill] sm:$0xff] %v5061_v38  ;;  %v1292_v2 = vpack.c.bf16 %v1273_v53, %v1272_v54  ;;  %v1208_v15 = vadd.f32 %v1165_v60, %v5061_v38  ;;  %v5064_v57 = vpop.f32.mrb[30].mxu0 }
 0x14c   : > { %6321 = vst [vmem:[#allocation35_spill] sm:$0xff] %v5064_v57  ;;  %v1246_v29 = vadd.f32 %v4942_v37, %v1210_v1  ;;  %v1211_v17 = vadd.f32 %v4284_v40, %v5064_v57  ;;  %v5068_v47 = vpop.f32.mrb[31].mxu0 }
 0x14d   : > { %v1244_v46 = vadd.f32 %v4942_v37, %v1208_v15  ;;  %v1209_v51 = vadd.f32 %v1168_v52, %v5068_v47 }
 0x14e   : > { %v1247_v43 = vadd.f32 %v4942_v37, %v1211_v17  ;;  %v1278_v5 = vmax.f32 %v1246_v29, 0.0 }
 0x14f   : > { %v1245_v12 = vadd.f32 %v4942_v37, %v1209_v51  ;;  %v1276_v25 = vmax.f32 %v1244_v46, 0.0 }
 0x150   : > { %v1279_v48 = vmax.f32 %v1247_v43, 0.0 }
 0x151   : > { %v1277_v60 = vmax.f32 %v1245_v12, 0.0  ;;  %v4255_v54 = vpop.f32.mrb[32].mxu0 }
 0x152   : > { %v1295_v53 = vpack.c.bf16 %v1279_v48, %v1278_v5  ;;  %v1182_v1 = vadd.f32 %v4255_v54, %v4924_v21  ;;  %v1053_v58 = vpop.f32.mrb[33].mxu0 }
 0x153   : > { %v1294_v40 = vpack.c.bf16 %v1277_v60, %v1276_v25  ;;  %v1180_v57 = vadd.f32 %v1053_v58, %v4926_v22  ;;  %v4256_v38 = vpop.f32.mrb[34].mxu0 }
 0x154   : > { %v1218_v15 = vadd.f32 %v4942_v37, %v1182_v1  ;;  %v1183_v52 = vadd.f32 %v4256_v38, %v4928_v23  ;;  %v1056_v17 = vpop.f32.mrb[35].mxu0 }
 0x155   : > { %v1216_v51 = vadd.f32 %v4942_v37, %v1180_v57  ;;  %v1181_v29 = vadd.f32 %v1056_v17, %v4930_v24  ;;  %v4497_v57 = vld [vmem:[%s6247_s9] sm:$0xff]  }
 0x156   : > { %v1219_v46 = vadd.f32 %v4942_v37, %v1183_v52  ;;  %v1250_v12 = vmax.f32 %v1218_v15, 0.0  ;;  %4319 = vmatprep.subr.bf16.mxu0 %v4497_v57 }
 0x157   : > { %v1217_v43 = vadd.f32 %v4942_v37, %v1181_v29  ;;  %v1248_v48 = vmax.f32 %v1216_v51, 0.0  ;;  %4320 = vmatpush3.bf16.msra.mxu0 %v4497_v57  ;;  %v5111_v37 = vsub.s32 1, %v4922_v20 }
 0x158   : > { %v1251_v5 = vmax.f32 %v1219_v46, 0.0 }
 0x159   : > { %v1249_v25 = vmax.f32 %v1217_v43, 0.0 }
 0x15a   : > { %v1281_v60 = vpack.c.bf16 %v1251_v5, %v1250_v12 }
 0x15b   : > { %v1280_v58 = vpack.c.bf16 %v1249_v25, %v1248_v48 }
 0x15d   : > { %4287 = vmatprep.mubr.msk.bf16.mxu1 %vm970_vm2, %v1280_v58 }
 0x15e   : > { %4288 = vmatmul.mubr.msk.bf16.vlgmr.msra.gmra.mrb[28].mxu1 %vm970_vm2, %v1281_v60 }
 0x15f   : > { %4291 = vmatprep.mubr.msk.bf16.mxu1 %vm970_vm2, %v4967_v16 }
 0x166   : > { %4292 = vmatmul.mubr.msk.bf16.gmra.mrb[32].mxu1 %vm970_vm2, %v4962_v9  ;;  %v5115_v9 = vrot.slane %v4938_v30, %v5111_v37 }
 0x167   : > { %4295 = vmatprep.mubr.msk.bf16.mxu1 %vm970_vm2, %v4987_v33 }
 0x16e   : > { %4296 = vmatmul.mubr.msk.bf16.gmra.mrb[36].mxu1 %vm970_vm2, %v4982_v32 }
 0x16f   : > { %4299 = vmatprep.mubr.msk.bf16.mxu1 %vm970_vm2, %v5007_v61 }
 0x176   : > { %4300 = vmatmul.mubr.msk.bf16.gmra.mrb[40].mxu1 %vm970_vm2, %v5002_v59 }
 0x177   : > { %4303 = vmatprep.mubr.msk.bf16.mxu1 %vm970_vm2, %v5027_v31 }
 0x17e   : > { %4304 = vmatmul.mubr.msk.bf16.gmra.mrb[44].mxu1 %vm970_vm2, %v5022_v62 }
 0x17f   : > { %4307 = vmatprep.mubr.msk.bf16.mxu1 %vm970_vm2, %v1290_v55 }
 0x186   : > { %4308 = vmatmul.mubr.msk.bf16.gmra.mrb[48].mxu1 %vm970_vm2, %v5042_v6 }
 0x187   : > { %4311 = vmatprep.mubr.msk.bf16.mxu1 %vm970_vm2, %v1292_v2 }
 0x18e   : > { %4312 = vmatmul.mubr.msk.bf16.gmra.mrb[52].mxu1 %vm970_vm2, %v1293_v56 }
 0x18f   : > { %4315 = vmatprep.mubr.msk.bf16.mxu1 %vm970_vm2, %v1294_v40 }
 0x196   : > { %4316 = vmatmul.mubr.msk.bf16.gmra.mrb[56].mxu1 %vm970_vm2, %v1295_v53 }
 0x231   : > { %v4289_v16 = vpop.f32.mrb[28].mxu1 }
 0x232   : > { %v1399_v32 = vadd.f32 %v4289_v16, %v5115_v9  ;;  %v1390_v33 = vpop.f32.mrb[29].mxu1 }
 0x233   : > { %v1391_v59 = vadd.f32 %v1390_v33, %v5115_v9  ;;  %v4290_v61 = vpop.f32.mrb[30].mxu1 }
 0x234   : > { %v1402_v62 = vadd.f32 %v4290_v61, %v5115_v9  ;;  %v1393_v31 = vpop.f32.mrb[31].mxu1  ;;  %v1519_v56 = vmax.f32 %v1399_v32, 0.0 }
 0x235   : > { %v1394_v6 = vadd.f32 %v1393_v31, %v5115_v9  ;;  %v1517_v2 = vmax.f32 %v1391_v59, 0.0 }
 0x236   : > { %v1520_v55 = vmax.f32 %v1402_v62, 0.0 }
 0x237   : > { %v1518_v38 = vmax.f32 %v1394_v6, 0.0 }
 0x238   : > { %v1550_v54 = vpack.c.bf16 %v1520_v55, %v1519_v56 }
 0x239   : > { %v1549_v53 = vpack.c.bf16 %v1518_v38, %v1517_v2  ;;  %v4293_v1 = vpop.f32.mrb[32].mxu1 }
 0x23a   : > { %v1415_v40 = vadd.f32 %v4293_v1, %v5115_v9  ;;  %v1406_v15 = vpop.f32.mrb[33].mxu1 }
 0x23b   : > { %v1407_v52 = vadd.f32 %v1406_v15, %v5115_v9  ;;  %v4294_v17 = vpop.f32.mrb[34].mxu1  ;;  %4321 = vmatprep.mubr.msk.bf16.mxu0 %vm970_vm2, %v1549_v53 }
 0x23c   : > { %v1418_v51 = vadd.f32 %v4294_v17, %v5115_v9  ;;  %v1409_v29 = vpop.f32.mrb[35].mxu1  ;;  %4322 = vmatmul.mubr.msk.bf16.vlgmr.msra.gmra.mrb[36].mxu0 %vm970_vm2, %v1550_v54  ;;  %v1523_v43 = vmax.f32 %v1415_v40, 0.0 }
 0x23d   : > { %v1410_v46 = vadd.f32 %v1409_v29, %v5115_v9  ;;  %v1521_v5 = vmax.f32 %v1407_v52, 0.0 }
 0x23e   : > { %v1524_v12 = vmax.f32 %v1418_v51, 0.0 }
 0x23f   : > { %v1522_v48 = vmax.f32 %v1410_v46, 0.0 }
 0x240   : > { %v1552_v25 = vpack.c.bf16 %v1524_v12, %v1523_v43 }
 0x241   : > { %v1551_v60 = vpack.c.bf16 %v1522_v48, %v1521_v5  ;;  %v4297_v58 = vpop.f32.mrb[36].mxu1 }
 0x242   : > { %v1431_v57 = vadd.f32 %v4297_v58, %v5115_v9  ;;  %v1422_v16 = vpop.f32.mrb[37].mxu1 }
 0x243   : > { %v1423_v32 = vadd.f32 %v1422_v16, %v5115_v9  ;;  %v4298_v33 = vpop.f32.mrb[38].mxu1  ;;  %4325 = vmatprep.mubr.msk.bf16.mxu0 %vm970_vm2, %v1551_v60 }
 0x244   : > { %v1434_v59 = vadd.f32 %v4298_v33, %v5115_v9  ;;  %v1425_v61 = vpop.f32.mrb[39].mxu1  ;;  %4326 = vmatmul.mubr.msk.bf16.gmra.mrb[40].mxu0 %vm970_vm2, %v1552_v25  ;;  %v1527_v31 = vmax.f32 %v1431_v57, 0.0 }
 0x245   : > { %v1426_v62 = vadd.f32 %v1425_v61, %v5115_v9  ;;  %v1525_v56 = vmax.f32 %v1423_v32, 0.0 }
 0x246   : > { %v1528_v6 = vmax.f32 %v1434_v59, 0.0 }
 0x247   : > { %v1526_v55 = vmax.f32 %v1426_v62, 0.0 }
 0x248   : > { %v1554_v2 = vpack.c.bf16 %v1528_v6, %v1527_v31 }
 0x249   : > { %v1553_v38 = vpack.c.bf16 %v1526_v55, %v1525_v56  ;;  %v4301_v54 = vpop.f32.mrb[40].mxu1 }
 0x24a   : > { %v1447_v53 = vadd.f32 %v4301_v54, %v5115_v9  ;;  %v1438_v1 = vpop.f32.mrb[41].mxu1 }
 0x24b   : > { %v1439_v40 = vadd.f32 %v1438_v1, %v5115_v9  ;;  %v4302_v15 = vpop.f32.mrb[42].mxu1  ;;  %4329 = vmatprep.mubr.msk.bf16.mxu0 %vm970_vm2, %v1553_v38 }
 0x24c   : > { %v1450_v52 = vadd.f32 %v4302_v15, %v5115_v9  ;;  %v1441_v17 = vpop.f32.mrb[43].mxu1  ;;  %4330 = vmatmul.mubr.msk.bf16.gmra.mrb[44].mxu0 %vm970_vm2, %v1554_v2  ;;  %v1531_v29 = vmax.f32 %v1447_v53, 0.0 }
 0x24d   : > { %v1442_v51 = vadd.f32 %v1441_v17, %v5115_v9  ;;  %v1529_v43 = vmax.f32 %v1439_v40, 0.0 }
 0x24e   : > { %v1532_v46 = vmax.f32 %v1450_v52, 0.0 }
 0x24f   : > { %v1530_v12 = vmax.f32 %v1442_v51, 0.0 }
 0x250   : > { %v1556_v5 = vpack.c.bf16 %v1532_v46, %v1531_v29 }
 0x251   : > { %v1555_v48 = vpack.c.bf16 %v1530_v12, %v1529_v43  ;;  %v4305_v25 = vpop.f32.mrb[44].mxu1 }
 0x252   : > { %v1463_v60 = vadd.f32 %v4305_v25, %v5115_v9  ;;  %v1454_v58 = vpop.f32.mrb[45].mxu1 }
 0x253   : > { %v1455_v57 = vadd.f32 %v1454_v58, %v5115_v9  ;;  %v4306_v16 = vpop.f32.mrb[46].mxu1  ;;  %4333 = vmatprep.mubr.msk.bf16.mxu0 %vm970_vm2, %v1555_v48 }
 0x254   : > { %v1466_v32 = vadd.f32 %v4306_v16, %v5115_v9  ;;  %v1457_v33 = vpop.f32.mrb[47].mxu1  ;;  %4334 = vmatmul.mubr.msk.bf16.gmra.mrb[48].mxu0 %vm970_vm2, %v1556_v5  ;;  %v1535_v61 = vmax.f32 %v1463_v60, 0.0 }
 0x255   : > { %v1458_v59 = vadd.f32 %v1457_v33, %v5115_v9  ;;  %v1533_v31 = vmax.f32 %v1455_v57, 0.0 }
 0x256   : > { %v1536_v62 = vmax.f32 %v1466_v32, 0.0 }
 0x257   : > { %v1534_v6 = vmax.f32 %v1458_v59, 0.0 }
 0x258   : > { %v1558_v56 = vpack.c.bf16 %v1536_v62, %v1535_v61 }
 0x259   : > { %v1557_v55 = vpack.c.bf16 %v1534_v6, %v1533_v31  ;;  %v4309_v2 = vpop.f32.mrb[48].mxu1 }
 0x25a   : > { %v1479_v38 = vadd.f32 %v4309_v2, %v5115_v9  ;;  %v1470_v54 = vpop.f32.mrb[49].mxu1 }
 0x25b   : > { %v1471_v53 = vadd.f32 %v1470_v54, %v5115_v9  ;;  %v4310_v1 = vpop.f32.mrb[50].mxu1  ;;  %4337 = vmatprep.mubr.msk.bf16.mxu0 %vm970_vm2, %v1557_v55 }
 0x25c   : > { %v1482_v40 = vadd.f32 %v4310_v1, %v5115_v9  ;;  %v1473_v15 = vpop.f32.mrb[51].mxu1  ;;  %4338 = vmatmul.mubr.msk.bf16.gmra.mrb[52].mxu0 %vm970_vm2, %v1558_v56  ;;  %v1539_v17 = vmax.f32 %v1479_v38, 0.0 }
 0x25d   : > { %v1474_v52 = vadd.f32 %v1473_v15, %v5115_v9  ;;  %v1537_v29 = vmax.f32 %v1471_v53, 0.0 }
 0x25e   : > { %v1540_v51 = vmax.f32 %v1482_v40, 0.0 }
 0x25f   : > { %v1538_v46 = vmax.f32 %v1474_v52, 0.0 }
 0x260   : > { %v1560_v43 = vpack.c.bf16 %v1540_v51, %v1539_v17 }
 0x261   : > { %v1559_v12 = vpack.c.bf16 %v1538_v46, %v1537_v29  ;;  %v4313_v5 = vpop.f32.mrb[52].mxu1 }
 0x262   : > { %v1495_v48 = vadd.f32 %v4313_v5, %v5115_v9  ;;  %v1486_v25 = vpop.f32.mrb[53].mxu1 }
 0x263   : > { %v1487_v60 = vadd.f32 %v1486_v25, %v5115_v9  ;;  %v4314_v58 = vpop.f32.mrb[54].mxu1  ;;  %4341 = vmatprep.mubr.msk.bf16.mxu0 %vm970_vm2, %v1559_v12 }
 0x264   : > { %v1498_v57 = vadd.f32 %v4314_v58, %v5115_v9  ;;  %v1489_v16 = vpop.f32.mrb[55].mxu1  ;;  %4342 = vmatmul.mubr.msk.bf16.gmra.mrb[56].mxu0 %vm970_vm2, %v1560_v43  ;;  %v1543_v33 = vmax.f32 %v1495_v48, 0.0  ;;  %v1569_v43 = vsub.s32 2, %v4922_v20 }
 0x265   : > { %v1490_v32 = vadd.f32 %v1489_v16, %v5115_v9  ;;  %v1541_v61 = vmax.f32 %v1487_v60, 0.0 }
 0x266   : > { %v1544_v59 = vmax.f32 %v1498_v57, 0.0  ;;  %v5169_v12 = vrot.slane %v4938_v30, %v1569_v43 }
 0x267   : > { %v1542_v62 = vmax.f32 %v1490_v32, 0.0 }
 0x268   : > { %v1562_v31 = vpack.c.bf16 %v1544_v59, %v1543_v33 }
 0x269   : > { %v1561_v6 = vpack.c.bf16 %v1542_v62, %v1541_v61  ;;  %v4317_v56 = vpop.f32.mrb[56].mxu1 }
 0x26a   : > { %v1511_v55 = vadd.f32 %v4317_v56, %v5115_v9  ;;  %v1502_v2 = vpop.f32.mrb[57].mxu1 }
 0x26b   : > { %v1503_v38 = vadd.f32 %v1502_v2, %v5115_v9  ;;  %v4318_v54 = vpop.f32.mrb[58].mxu1  ;;  %4345 = vmatprep.mubr.msk.bf16.mxu0 %vm970_vm2, %v1561_v6 }
 0x26c   : > { %v1514_v53 = vadd.f32 %v4318_v54, %v5115_v9  ;;  %v1505_v1 = vpop.f32.mrb[59].mxu1  ;;  %4346 = vmatmul.mubr.msk.bf16.gmra.mrb[60].mxu0 %vm970_vm2, %v1562_v31  ;;  %v1547_v15 = vmax.f32 %v1511_v55, 0.0 }
 0x26d   : > { %v1506_v40 = vadd.f32 %v1505_v1, %v5115_v9  ;;  %v1545_v17 = vmax.f32 %v1503_v38, 0.0 }
 0x26e   : > { %v1548_v52 = vmax.f32 %v1514_v53, 0.0 }
 0x26f   : > { %v1546_v51 = vmax.f32 %v1506_v40, 0.0 }
 0x270   : > { %v1564_v29 = vpack.c.bf16 %v1548_v52, %v1547_v15 }
 0x271   : > { %v1563_v46 = vpack.c.bf16 %v1546_v51, %v1545_v17 }
 0x273   : > { %4349 = vmatprep.mubr.msk.bf16.mxu0 %vm970_vm2, %v1563_v46 }
 0x274   : > { %4350 = vmatmul.mubr.msk.bf16.gmra.mrb[64].mxu0 %vm970_vm2, %v1564_v29 }
 0x30f   : > { %v4323_v5 = vpop.f32.mrb[36].mxu0 }
 0x310   : > { %v1668_v9 = vadd.f32 %v4323_v5, %v5169_v12  ;;  %v1659_v48 = vpop.f32.mrb[37].mxu0 }
 0x311   : > { %v1660_v25 = vadd.f32 %v1659_v48, %v5169_v12  ;;  %v4324_v60 = vpop.f32.mrb[38].mxu0 }
 0x312   : > { %v1671_v58 = vadd.f32 %v4324_v60, %v5169_v12  ;;  %v1662_v57 = vpop.f32.mrb[39].mxu0  ;;  %v5175_v16 = vadd.f32 %v1668_v9, %v4911_v3 }
 0x313   : > { %v1663_v32 = vadd.f32 %v1662_v57, %v5169_v12  ;;  %v5179_v33 = vadd.f32 %v1660_v25, %v4900_v63 }
 0x314   : > { %v1824_v30 = vsel %vm970_vm2, %v5175_v16, 0.0  ;;  %v5184_v59 = vadd.f32 %v1671_v58, %v4914_v4 }
 0x315   : > { %1825 = vadd.xlane.f32.xlu1 %v1824_v30  ;;  %v1818_v61 = vsel %vm970_vm2, %v5179_v33, 0.0  ;;  %v5189_v62 = vadd.f32 %v1663_v32, %v4903_v0 }
 0x316   : > { %1819 = vadd.xlane.f32.xlu0 %v1818_v61  ;;  %v1827_v63 = vsel %vm970_vm2, %v5184_v59, 0.0 }
 0x317   : > { %v4327_v3 = vpop.f32.mrb[40].mxu0  ;;  %v1821_v55 = vsel %vm970_vm2, %v5189_v62, 0.0 }
 0x318   : > { %v1675_v31 = vpop.f32.mrb[41].mxu0  ;;  %v1684_v6 = vadd.f32 %v4327_v3, %v5169_v12 }
 0x319   : > { %v1676_v56 = vadd.f32 %v1675_v31, %v5169_v12  ;;  %1828 = vadd.xlane.f32.xlu1 %v1827_v63  ;;  %v4328_v4 = vpop.f32.mrb[42].mxu0 }
 0x31a   : > { %v1678_v2 = vpop.f32.mrb[43].mxu0  ;;  %1822 = vadd.xlane.f32.xlu0 %v1821_v55  ;;  %v1687_v0 = vadd.f32 %v4328_v4, %v5169_v12  ;;  %v5208_v40 = vadd.f32 %v1684_v6, %v4772_v10 }
 0x31b   : > { %v1679_v38 = vadd.f32 %v1678_v2, %v5169_v12  ;;  %v5200_v54 = vadd.f32 %v1676_v56, %v4764_v7  ;;  %v4567_v56 = vld [vmem:[%s4738_s25 + $0x60] sm:$0xff]  ;;  %v4568_v2 = vld [vmem:[%s4738_s25 + $0x68] sm:$0xff] }
 0x31c   : > { %v5213_v17 = vadd.f32 %v1687_v0, %v4775_v11 }
 0x31d   : > { %v1830_v53 = vsel %vm970_vm2, %v5200_v54, 0.0  ;;  %v5205_v1 = vadd.f32 %v1679_v38, %v4767_v8  ;;  %v1836_v8 = vsel %vm970_vm2, %v5208_v40, 0.0 }
 0x31e   : > { %1831 = vadd.xlane.f32.xlu0 %v1830_v53  ;;  %v1839_v11 = vsel %vm970_vm2, %v5213_v17, 0.0 }
 0x31f   : > { %v4331_v15 = vpop.f32.mrb[44].mxu0  ;;  %v1833_v52 = vsel %vm970_vm2, %v5205_v1, 0.0 }
 0x320   : > { %v1691_v51 = vpop.f32.mrb[45].mxu0  ;;  %1834 = vadd.xlane.f32.xlu1 %v1833_v52  ;;  %v1700_v7 = vadd.f32 %v4331_v15, %v5169_v12 }
 0x321   : > { %v1692_v29 = vadd.f32 %v1691_v51, %v5169_v12  ;;  %v4332_v46 = vpop.f32.mrb[46].mxu0 }
 0x322   : > { %v1694_v10 = vpop.f32.mrb[47].mxu0  ;;  %1837 = vadd.xlane.f32.xlu0 %v1836_v8  ;;  %v1703_v5 = vadd.f32 %v4332_v46, %v5169_v12  ;;  %v5232_v58 = vadd.f32 %v1700_v7, %v4792_v18 }
 0x323   : > { %v1695_v9 = vadd.f32 %v1694_v10, %v5169_v12  ;;  %v5224_v48 = vadd.f32 %v1692_v29, %v4781_v13 }
 0x324   : > { %1840 = vadd.xlane.f32.xlu1 %v1839_v11  ;;  %v5237_v30 = vadd.f32 %v1703_v5, %v4796_v19  ;;  %v1848_v18 = vsel %vm970_vm2, %v5232_v58, 0.0 }
 0x325   : > { %v1842_v25 = vsel %vm970_vm2, %v5224_v48, 0.0  ;;  %v5229_v60 = vadd.f32 %v1695_v9, %v4784_v14 }
 0x326   : > { %1843 = vadd.xlane.f32.xlu0 %v1842_v25  ;;  %v1851_v19 = vsel %vm970_vm2, %v5237_v30, 0.0  ;;  %v4569_v25 = vld [vmem:[%s4738_s25 + $0x88] sm:$0xff] }
 0x327   : > { %v4335_v57 = vpop.f32.mrb[48].mxu0  ;;  %v1845_v32 = vsel %vm970_vm2, %v5229_v60, 0.0 }
 0x328   : > { %v1707_v13 = vpop.f32.mrb[49].mxu0  ;;  %1846 = vadd.xlane.f32.xlu1 %v1845_v32  ;;  %v1716_v61 = vadd.f32 %v4335_v57, %v5169_v12 }
 0x329   : > { %v1708_v14 = vadd.f32 %v1707_v13, %v5169_v12  ;;  %v4336_v3 = vpop.f32.mrb[50].mxu0 }
 0x32a   : > { %v1710_v31 = vpop.f32.mrb[51].mxu0  ;;  %1849 = vadd.xlane.f32.xlu0 %v1848_v18  ;;  %v1719_v63 = vadd.f32 %v4336_v3, %v5169_v12  ;;  %v5256_v38 = vadd.f32 %v1716_v61, %v4808_v26 }
 0x32b   : > { %v1711_v6 = vadd.f32 %v1710_v31, %v5169_v12  ;;  %v5248_v4 = vadd.f32 %v4567_v56, %v1708_v14 }
 0x32c   : > { %1852 = vadd.xlane.f32.xlu1 %v1851_v19  ;;  %v5261_v52 = vadd.f32 %v1719_v63, %v4812_v27  ;;  %v1860_v26 = vsel %vm970_vm2, %v5256_v38, 0.0 }
 0x32d   : > { %v1854_v55 = vsel %vm970_vm2, %v5248_v4, 0.0  ;;  %v5253_v0 = vadd.f32 %v4568_v2, %v1711_v6  ;;  %v4570_v2 = vld [vmem:[%s4738_s25 + $0xa8] sm:$0xff] }
 0x32e   : > { %1855 = vadd.xlane.f32.xlu0 %v1854_v55  ;;  %v1863_v27 = vsel %vm970_vm2, %v5261_v52, 0.0 }
 0x32f   : > { %v4339_v53 = vpop.f32.mrb[52].mxu0  ;;  %v1857_v15 = vsel %vm970_vm2, %v5253_v0, 0.0 }
 0x330   : > { %v1723_v51 = vpop.f32.mrb[53].mxu0  ;;  %1858 = vadd.xlane.f32.xlu1 %v1857_v15  ;;  %v1732_v7 = vadd.f32 %v4339_v53, %v5169_v12 }
 0x331   : > { %v1724_v29 = vadd.f32 %v1723_v51, %v5169_v12  ;;  %v4340_v46 = vpop.f32.mrb[54].mxu0 }
 0x332   : > { %v1726_v8 = vpop.f32.mrb[55].mxu0  ;;  %1861 = vadd.xlane.f32.xlu0 %v1860_v26  ;;  %v1735_v10 = vadd.f32 %v4340_v46, %v5169_v12  ;;  %v5280_v32 = vadd.f32 %v1732_v7, %v4828_v34 }
 0x333   : > { %v1727_v5 = vadd.f32 %v1726_v8, %v5169_v12  ;;  %v5272_v9 = vadd.f32 %v1724_v29, %v4815_v28 }
 0x334   : > { %1864 = vadd.xlane.f32.xlu1 %v1863_v27  ;;  %v5285_v14 = vadd.f32 %v1735_v10, %v4831_v35  ;;  %v1872_v34 = vsel %vm970_vm2, %v5280_v32, 0.0 }
 0x335   : > { %v1866_v11 = vsel %vm970_vm2, %v5272_v9, 0.0  ;;  %v5277_v57 = vadd.f32 %v4569_v25, %v1727_v5 }
 0x336   : > { %1867 = vadd.xlane.f32.xlu0 %v1866_v11  ;;  %v1875_v35 = vsel %vm970_vm2, %v5285_v14, 0.0 }
 0x337   : > { %v4343_v13 = vpop.f32.mrb[56].mxu0  ;;  %v1869_v61 = vsel %vm970_vm2, %v5277_v57, 0.0 }
 0x338   : > { %v1739_v28 = vpop.f32.mrb[57].mxu0  ;;  %1870 = vadd.xlane.f32.xlu1 %v1869_v61  ;;  %v1748_v3 = vadd.f32 %v4343_v13, %v5169_v12 }
 0x339   : > { %v1740_v18 = vadd.f32 %v1739_v28, %v5169_v12  ;;  %v4344_v31 = vpop.f32.mrb[58].mxu0 }
 0x33a   : > { %v1742_v63 = vpop.f32.mrb[59].mxu0  ;;  %1873 = vadd.xlane.f32.xlu0 %v1872_v34  ;;  %v1751_v6 = vadd.f32 %v4344_v31, %v5169_v12  ;;  %v5304_v15 = vadd.f32 %v1748_v3, %v4846_v41 }
 0x33b   : > { %v1743_v19 = vadd.f32 %v1742_v63, %v5169_v12  ;;  %v5296_v56 = vadd.f32 %v1740_v18, %v4834_v36 }
 0x33c   : > { %1876 = vadd.xlane.f32.xlu1 %v1875_v35  ;;  %v5309_v29 = vadd.f32 %v1751_v6, %v4849_v42  ;;  %v1884_v10 = vsel %vm970_vm2, %v5304_v15, 0.0  ;;  %v4571_v35 = vld [vmem:[%s4738_s25 + $0xe0] sm:$0xff] }
 0x33d   : > { %v1878_v55 = vsel %vm970_vm2, %v5296_v56, 0.0  ;;  %v5301_v53 = vadd.f32 %v4570_v2, %v1743_v19 }
 0x33e   : > { %1879 = vadd.xlane.f32.xlu0 %v1878_v55  ;;  %v1887_v42 = vsel %vm970_vm2, %v5309_v29, 0.0 }
 0x33f   : > { %v4347_v51 = vpop.f32.mrb[60].mxu0  ;;  %v1881_v7 = vsel %vm970_vm2, %v5301_v53, 0.0 }
 0x340   : > { %v1755_v36 = vpop.f32.mrb[61].mxu0  ;;  %1882 = vadd.xlane.f32.xlu1 %v1881_v7  ;;  %v1764_v46 = vadd.f32 %v4347_v51, %v5169_v12  ;;  %v4572_v51 = vld [vmem:[%s4738_s25 + $0xe8] sm:$0xff] }
 0x341   : > { %v1756_v26 = vadd.f32 %v1755_v36, %v5169_v12  ;;  %v4348_v8 = vpop.f32.mrb[62].mxu0  ;;  %v6322_v36 = vld [vmem:[#allocation7_spill] sm:$0xff] }
 0x342   : > { %v1758_v41 = vpop.f32.mrb[63].mxu0  ;;  %1885 = vadd.xlane.f32.xlu0 %v1884_v10  ;;  %v1767_v5 = vadd.f32 %v4348_v8, %v5169_v12  ;;  %v5328_v61 = vadd.f32 %v1764_v46, %v4868_v49 }
 0x343   : > { %v1759_v27 = vadd.f32 %v1758_v41, %v5169_v12  ;;  %v5320_v11 = vadd.f32 %v1756_v26, %v4853_v44  ;;  %v6323_v26 = vld [vmem:[#allocation8_spill] sm:$0xff] }
 0x344   : > { %1888 = vadd.xlane.f32.xlu1 %v1887_v42  ;;  %v5333_v18 = vadd.f32 %v1767_v5, %v4871_v50  ;;  %v1896_v49 = vsel %vm970_vm2, %v5328_v61, 0.0  ;;  %v4498_v5 = vld [vmem:[%s6248_s10] sm:$0xff]  }
 0x345   : > { %v1890_v25 = vsel %vm970_vm2, %v5320_v11, 0.0  ;;  %v5325_v13 = vadd.f32 %v1759_v27, %v4856_v45  ;;  %4353 = vmatprep.subr.bf16.mxu1 %v4498_v5 }
 0x346   : > { %1891 = vadd.xlane.f32.xlu0 %v1890_v25  ;;  %v1899_v50 = vsel %vm970_vm2, %v5333_v18, 0.0  ;;  %4354 = vmatpush3.bf16.msra.mxu1 %v4498_v5 }
 0x347   : > { %v4351_v28 = vpop.f32.mrb[64].mxu0  ;;  %v1893_v3 = vsel %vm970_vm2, %v5325_v13, 0.0 }
 0x348   : > { %v1771_v44 = vpop.f32.mrb[65].mxu0  ;;  %1894 = vadd.xlane.f32.xlu1 %v1893_v3  ;;  %v1780_v31 = vadd.f32 %v4351_v28, %v5169_v12 }
 0x349   : > { %v1772_v45 = vadd.f32 %v1771_v44, %v5169_v12  ;;  %v4352_v34 = vpop.f32.mrb[66].mxu0 }
 0x34a   : > { %v1783_v63 = vadd.f32 %v4352_v34, %v5169_v12  ;;  %v1774_v6 = vpop.f32.mrb[67].mxu0  ;;  %1897 = vadd.xlane.f32.xlu0 %v1896_v49  ;;  %v5352_v46 = vadd.f32 %v1780_v31, %v6322_v36 }
 0x34b   : > { %v1775_v19 = vadd.f32 %v1774_v6, %v5169_v12  ;;  %v5344_v55 = vadd.f32 %v4571_v35, %v1772_v45 }
 0x34c   : > { %1900 = vadd.xlane.f32.xlu1 %v1899_v50  ;;  %v5357_v8 = vadd.f32 %v1783_v63, %v6323_v26  ;;  %v1908_v10 = vsel %vm970_vm2, %v5352_v46, 0.0 }
 0x34d   : > { %v1902_v2 = vsel %vm970_vm2, %v5344_v55, 0.0  ;;  %v5349_v7 = vadd.f32 %v4572_v51, %v1775_v19 }
 0x34e   : > { %1903 = vadd.xlane.f32.xlu0 %v1902_v2  ;;  %v1911_v41 = vsel %vm970_vm2, %v5357_v8, 0.0 }
 0x34f   : > { %v1905_v12 = vsel %vm970_vm2, %v5349_v7, 0.0 }
 0x350   : > { %1906 = vadd.xlane.f32.xlu1 %v1905_v12 }
 0x352   : > { %1909 = vadd.xlane.f32.xlu0 %v1908_v10 }
 0x354   : > { %1912 = vadd.xlane.f32.xlu1 %v1911_v41 }
 0x3a2   : > { %v1826_v27 = vpop.xlane.xlu1 %1825 }
 0x3a3   : > { %v1917_v42 = vmul.f32 0.0625, %v1826_v27  ;;  %v1820_v25 = vpop.xlane.xlu0 %1819 }
 0x3a4   : > { %v1915_v28 = vmul.f32 0.0625, %v1820_v25 }
 0x3a5   : > { %v5367_v3 = vsub.f32 %v5175_v16, %v1917_v42 }
 0x3a6   : > { %v5370_v44 = vsub.f32 %v5179_v33, %v1915_v28  ;;  %v1829_v31 = vpop.xlane.xlu1 %1828 }
 0x3a7   : > { %v1918_v45 = vmul.f32 0.0625, %v1829_v31  ;;  %v1823_v34 = vpop.xlane.xlu0 %1822  ;;  %v1981_v16 = vmul.f32 %v5367_v3, %v5367_v3 }
 0x3a8   : > { %v1916_v49 = vmul.f32 0.0625, %v1823_v34  ;;  %v1979_v63 = vmul.f32 %v5370_v44, %v5370_v44 }
 0x3a9   : > { %v5375_v6 = vsub.f32 %v5184_v59, %v1918_v45  ;;  %v2017_v12 = vsel %vm970_vm2, %v1981_v16, 0.0 }
 0x3aa   : > { %v5378_v19 = vsub.f32 %v5189_v62, %v1916_v49  ;;  %v2011_v50 = vsel %vm970_vm2, %v1979_v63, 0.0 }
 0x3ab   : > { %2012 = vadd.xlane.f32.xlu0 %v2011_v50  ;;  %v1832_v33 = vpop.xlane.xlu0 %1831  ;;  %v1982_v36 = vmul.f32 %v5375_v6, %v5375_v6 }
 0x3ac   : > { %v1919_v35 = vmul.f32 0.0625, %v1832_v33  ;;  %v1980_v2 = vmul.f32 %v5378_v19, %v5378_v19 }
 0x3ad   : > { %v1835_v51 = vpop.xlane.xlu1 %1834  ;;  %v2020_v25 = vsel %vm970_vm2, %v1982_v36, 0.0 }
 0x3ae   : > { %v5388_v59 = vsub.f32 %v5200_v54, %v1919_v35  ;;  %v1920_v62 = vmul.f32 0.0625, %v1835_v51  ;;  %v2014_v26 = vsel %vm970_vm2, %v1980_v2, 0.0 }
 0x3af   : > { %2018 = vadd.xlane.f32.xlu0 %v2017_v12  ;;  %2015 = vadd.xlane.f32.xlu1 %v2014_v26  ;;  %v1838_v10 = vpop.xlane.xlu0 %1837 }
 0x3b0   : > { %v5393_v41 = vsub.f32 %v5205_v1, %v1920_v62  ;;  %v1921_v5 = vmul.f32 0.0625, %v1838_v10  ;;  %v1983_v27 = vmul.f32 %v5388_v59, %v5388_v59 }
 0x3b1   : > { %v1841_v42 = vpop.xlane.xlu1 %1840 }
 0x3b2   : > { %v5399_v54 = vsub.f32 %v5208_v40, %v1921_v5  ;;  %v1922_v28 = vmul.f32 0.0625, %v1841_v42  ;;  %v2023_v31 = vsel %vm970_vm2, %v1983_v27, 0.0  ;;  %v1984_v45 = vmul.f32 %v5393_v41, %v5393_v41 }
 0x3b3   : > { %2021 = vadd.xlane.f32.xlu1 %v2020_v25  ;;  %2024 = vadd.xlane.f32.xlu0 %v2023_v31  ;;  %v1844_v1 = vpop.xlane.xlu0 %1843 }
 0x3b4   : > { %v5405_v34 = vsub.f32 %v5213_v17, %v1922_v28  ;;  %v1923_v49 = vmul.f32 0.0625, %v1844_v1  ;;  %v1985_v63 = vmul.f32 %v5399_v54, %v5399_v54  ;;  %v2026_v40 = vsel %vm970_vm2, %v1984_v45, 0.0 }
 0x3b5   : > { %v1847_v50 = vpop.xlane.xlu1 %1846 }
 0x3b6   : > { %v5411_v16 = vsub.f32 %v5224_v48, %v1923_v49  ;;  %v1924_v33 = vmul.f32 0.0625, %v1847_v50  ;;  %v2029_v35 = vsel %vm970_vm2, %v1985_v63, 0.0  ;;  %v1986_v2 = vmul.f32 %v5405_v34, %v5405_v34 }
 0x3b7   : > { %2027 = vadd.xlane.f32.xlu1 %v2026_v40  ;;  %2030 = vadd.xlane.f32.xlu0 %v2029_v35  ;;  %v1850_v17 = vpop.xlane.xlu0 %1849 }
 0x3b8   : > { %v5417_v51 = vsub.f32 %v5229_v60, %v1924_v33  ;;  %v1925_v36 = vmul.f32 0.0625, %v1850_v17  ;;  %v1987_v62 = vmul.f32 %v5411_v16, %v5411_v16  ;;  %v2032_v48 = vsel %vm970_vm2, %v1986_v2, 0.0 }
 0x3b9   : > { %v1853_v12 = vpop.xlane.xlu1 %1852 }
 0x3ba   : > { %v5423_v26 = vsub.f32 %v5232_v58, %v1925_v36  ;;  %v1926_v10 = vmul.f32 0.0625, %v1853_v12  ;;  %v2035_v5 = vsel %vm970_vm2, %v1987_v62, 0.0  ;;  %v1988_v27 = vmul.f32 %v5417_v51, %v5417_v51 }
 0x3bb   : > { %2033 = vadd.xlane.f32.xlu1 %v2032_v48  ;;  %2036 = vadd.xlane.f32.xlu0 %v2035_v5  ;;  %v1856_v60 = vpop.xlane.xlu0 %1855 }
 0x3bc   : > { %v5429_v42 = vsub.f32 %v5237_v30, %v1926_v10  ;;  %v1927_v25 = vmul.f32 0.0625, %v1856_v60  ;;  %v1989_v28 = vmul.f32 %v5423_v26, %v5423_v26  ;;  %v2038_v58 = vsel %vm970_vm2, %v1988_v27, 0.0 }
 0x3bd   : > { %v1859_v31 = vpop.xlane.xlu1 %1858 }
 0x3be   : > { %v5435_v45 = vsub.f32 %v5248_v4, %v1927_v25  ;;  %v1928_v1 = vmul.f32 0.0625, %v1859_v31  ;;  %v2041_v49 = vsel %vm970_vm2, %v1989_v28, 0.0  ;;  %v1990_v63 = vmul.f32 %v5429_v42, %v5429_v42 }
 0x3bf   : > { %2039 = vadd.xlane.f32.xlu1 %v2038_v58  ;;  %2042 = vadd.xlane.f32.xlu0 %v2041_v49  ;;  %v1862_v30 = vpop.xlane.xlu0 %1861 }
 0x3c0   : > { %v5441_v50 = vsub.f32 %v5253_v0, %v1928_v1  ;;  %v1929_v40 = vmul.f32 0.0625, %v1862_v30  ;;  %v1991_v33 = vmul.f32 %v5435_v45, %v5435_v45  ;;  %v2044_v4 = vsel %vm970_vm2, %v1990_v63, 0.0 }
 0x3c1   : > { %v1865_v35 = vpop.xlane.xlu1 %1864 }
 0x3c2   : > { %v5447_v2 = vsub.f32 %v5256_v38, %v1929_v40  ;;  %v1930_v17 = vmul.f32 0.0625, %v1865_v35  ;;  %v2047_v36 = vsel %vm970_vm2, %v1991_v33, 0.0  ;;  %v1992_v62 = vmul.f32 %v5441_v50, %v5441_v50 }
 0x3c3   : > { %2045 = vadd.xlane.f32.xlu1 %v2044_v4  ;;  %2048 = vadd.xlane.f32.xlu0 %v2047_v36  ;;  %v1868_v0 = vpop.xlane.xlu0 %1867 }
 0x3c4   : > { %v5453_v12 = vsub.f32 %v5261_v52, %v1930_v17  ;;  %v1931_v48 = vmul.f32 0.0625, %v1868_v0  ;;  %v1993_v10 = vmul.f32 %v5447_v2, %v5447_v2  ;;  %v2050_v38 = vsel %vm970_vm2, %v1992_v62, 0.0 }
 0x3c5   : > { %v1871_v5 = vpop.xlane.xlu1 %1870 }
 0x3c6   : > { %v5459_v27 = vsub.f32 %v5272_v9, %v1931_v48  ;;  %v1932_v60 = vmul.f32 0.0625, %v1871_v5  ;;  %v2053_v25 = vsel %vm970_vm2, %v1993_v10, 0.0  ;;  %v1994_v28 = vmul.f32 %v5453_v12, %v5453_v12 }
 0x3c7   : > { %2051 = vadd.xlane.f32.xlu1 %v2050_v38  ;;  %2054 = vadd.xlane.f32.xlu0 %v2053_v25  ;;  %v1874_v52 = vpop.xlane.xlu0 %1873 }
 0x3c8   : > { %v5465_v31 = vsub.f32 %v5277_v57, %v1932_v60  ;;  %v1933_v58 = vmul.f32 0.0625, %v1874_v52  ;;  %v1995_v1 = vmul.f32 %v5459_v27, %v5459_v27  ;;  %v2056_v9 = vsel %vm970_vm2, %v1994_v28, 0.0 }
 0x3c9   : > { %v1877_v49 = vpop.xlane.xlu1 %1876 }
 0x3ca   : > { %v5471_v63 = vsub.f32 %v5280_v32, %v1933_v58  ;;  %v1934_v30 = vmul.f32 0.0625, %v1877_v49  ;;  %v2059_v40 = vsel %vm970_vm2, %v1995_v1, 0.0  ;;  %v1996_v33 = vmul.f32 %v5465_v31, %v5465_v31 }
 0x3cb   : > { %2057 = vadd.xlane.f32.xlu1 %v2056_v9  ;;  %2060 = vadd.xlane.f32.xlu0 %v2059_v40  ;;  %v1880_v57 = vpop.xlane.xlu0 %1879 }
 0x3cc   : > { %v5477_v35 = vsub.f32 %v5285_v14, %v1934_v30  ;;  %v1935_v4 = vmul.f32 0.0625, %v1880_v57  ;;  %v1997_v17 = vmul.f32 %v5471_v63, %v5471_v63  ;;  %v2062_v32 = vsel %vm970_vm2, %v1996_v33, 0.0 }
 0x3cd   : > { %v1883_v36 = vpop.xlane.xlu1 %1882 }
 0x3ce   : > { %v5483_v62 = vsub.f32 %v5296_v56, %v1935_v4  ;;  %v1936_v0 = vmul.f32 0.0625, %v1883_v36  ;;  %v2065_v48 = vsel %vm970_vm2, %v1997_v17, 0.0  ;;  %v1998_v10 = vmul.f32 %v5477_v35, %v5477_v35 }
 0x3cf   : > { %2063 = vadd.xlane.f32.xlu1 %v2062_v32  ;;  %2066 = vadd.xlane.f32.xlu0 %v2065_v48  ;;  %v1886_v14 = vpop.xlane.xlu0 %1885 }
 0x3d0   : > { %v5489_v5 = vsub.f32 %v5301_v53, %v1936_v0  ;;  %v1937_v38 = vmul.f32 0.0625, %v1886_v14  ;;  %v1999_v60 = vmul.f32 %v5483_v62, %v5483_v62  ;;  %v2068_v56 = vsel %vm970_vm2, %v1998_v10, 0.0 }
 0x3d1   : > { %v1889_v25 = vpop.xlane.xlu1 %1888 }
 0x3d2   : > { %v5495_v28 = vsub.f32 %v5304_v15, %v1937_v38  ;;  %v1938_v52 = vmul.f32 0.0625, %v1889_v25  ;;  %v2071_v58 = vsel %vm970_vm2, %v1999_v60, 0.0  ;;  %v2000_v1 = vmul.f32 %v5489_v5, %v5489_v5 }
 0x3d3   : > { %2069 = vadd.xlane.f32.xlu1 %v2068_v56  ;;  %2072 = vadd.xlane.f32.xlu0 %v2071_v58  ;;  %v1892_v53 = vpop.xlane.xlu0 %1891 }
 0x3d4   : > { %v5501_v49 = vsub.f32 %v5309_v29, %v1938_v52  ;;  %v1939_v9 = vmul.f32 0.0625, %v1892_v53  ;;  %v2001_v30 = vmul.f32 %v5495_v28, %v5495_v28  ;;  %v2074_v15 = vsel %vm970_vm2, %v2000_v1, 0.0 }
 0x3d5   : > { %v1895_v40 = vpop.xlane.xlu1 %1894 }
 0x3d6   : > { %v5507_v33 = vsub.f32 %v5320_v11, %v1939_v9  ;;  %v1940_v57 = vmul.f32 0.0625, %v1895_v40  ;;  %v2077_v4 = vsel %vm970_vm2, %v2001_v30, 0.0  ;;  %v2002_v17 = vmul.f32 %v5501_v49, %v5501_v49 }
 0x3d7   : > { %2075 = vadd.xlane.f32.xlu1 %v2074_v15  ;;  %2078 = vadd.xlane.f32.xlu0 %v2077_v4  ;;  %v1898_v29 = vpop.xlane.xlu0 %1897 }
 0x3d8   : > { %v5513_v36 = vsub.f32 %v5325_v13, %v1940_v57  ;;  %v1941_v32 = vmul.f32 0.0625, %v1898_v29  ;;  %v2003_v0 = vmul.f32 %v5507_v33, %v5507_v33  ;;  %v2080_v11 = vsel %vm970_vm2, %v2002_v17, 0.0 }
 0x3d9   : > { %v1901_v48 = vpop.xlane.xlu1 %1900 }
 0x3da   : > { %v5519_v10 = vsub.f32 %v5328_v61, %v1941_v32  ;;  %v1942_v14 = vmul.f32 0.0625, %v1901_v48  ;;  %v2083_v38 = vsel %vm970_vm2, %v2003_v0, 0.0  ;;  %v2004_v60 = vmul.f32 %v5513_v36, %v5513_v36 }
 0x3db   : > { %2081 = vadd.xlane.f32.xlu1 %v2080_v11  ;;  %2084 = vadd.xlane.f32.xlu0 %v2083_v38  ;;  %v1904_v13 = vpop.xlane.xlu0 %1903 }
 0x3dc   : > { %v5525_v25 = vsub.f32 %v5333_v18, %v1942_v14  ;;  %v1943_v56 = vmul.f32 0.0625, %v1904_v13  ;;  %v2005_v52 = vmul.f32 %v5519_v10, %v5519_v10  ;;  %v2086_v61 = vsel %vm970_vm2, %v2004_v60, 0.0 }
 0x3dd   : > { %v1907_v58 = vpop.xlane.xlu1 %1906 }
 0x3de   : > { %v5531_v1 = vsub.f32 %v5344_v55, %v1943_v56  ;;  %v1944_v53 = vmul.f32 0.0625, %v1907_v58  ;;  %v2089_v9 = vsel %vm970_vm2, %v2005_v52, 0.0  ;;  %v2006_v30 = vmul.f32 %v5525_v25, %v5525_v25 }
 0x3df   : > { %2087 = vadd.xlane.f32.xlu1 %v2086_v61  ;;  %2090 = vadd.xlane.f32.xlu0 %v2089_v9  ;;  %v1910_v18 = vpop.xlane.xlu0 %1909 }
 0x3e0   : > { %v5537_v40 = vsub.f32 %v5349_v7, %v1944_v53  ;;  %v1945_v15 = vmul.f32 0.0625, %v1910_v18  ;;  %v2007_v57 = vmul.f32 %v5531_v1, %v5531_v1  ;;  %v2092_v55 = vsel %vm970_vm2, %v2006_v30, 0.0 }
 0x3e1   : > { %v1913_v4 = vpop.xlane.xlu1 %1912 }
 0x3e2   : > { %v5543_v17 = vsub.f32 %v5352_v46, %v1945_v15  ;;  %v1946_v29 = vmul.f32 0.0625, %v1913_v4  ;;  %v2095_v32 = vsel %vm970_vm2, %v2007_v57, 0.0  ;;  %v2008_v0 = vmul.f32 %v5537_v40, %v5537_v40 }
 0x3e3   : > { %2093 = vadd.xlane.f32.xlu1 %v2092_v55  ;;  %2096 = vadd.xlane.f32.xlu0 %v2095_v32  ;;  %v2237_v4 = vsub.s32 3, %v4922_v20  ;;  %v2273_v32 = vsub.s32 4, %v4922_v20 }
 0x3e4   : > { %v5549_v7 = vsub.f32 %v5357_v8, %v1946_v29  ;;  %v2009_v48 = vmul.f32 %v5543_v17, %v5543_v17  ;;  %v2098_v11 = vsel %vm970_vm2, %v2008_v0, 0.0 }
 0x3e6   : > { %v2101_v14 = vsel %vm970_vm2, %v2009_v48, 0.0  ;;  %v2010_v46 = vmul.f32 %v5549_v7, %v5549_v7 }
 0x3e7   : > { %2099 = vadd.xlane.f32.xlu1 %v2098_v11  ;;  %2102 = vadd.xlane.f32.xlu0 %v2101_v14 }
 0x3e8   : > { %v2104_v38 = vsel %vm970_vm2, %v2010_v46, 0.0  ;;  %v4573_v46 = vld [vmem:[%s6251_s13] sm:$0x1f] }
 0x3eb   : > { %2105 = vadd.xlane.f32.xlu1 %v2104_v38  ;;  %v5565_v38 = vrot.slane %v4573_v46, %v2237_v4 }
 0x438   : > { %v2013_v60 = vpop.xlane.xlu0 %2012 }
 0x439   : > { %v2107_v13 = vmul.f32 0.0625, %v2013_v60 }
 0x43b   : > { %v2139_v56 = vadd.f32 1e-05, %v2107_v13 }
 0x43c   : > { %v2016_v8 = vpop.xlane.xlu1 %2015  ;;  %v2019_v52 = vpop.xlane.xlu0 %2018 }
 0x43d   : > { %4503 = vrsqrt.f32 %v2139_v56  ;;  %v2108_v58 = vmul.f32 0.0625, %v2016_v8  ;;  %v2109_v61 = vmul.f32 0.0625, %v2019_v52  ;;  %v5570_v52 = vrot.slane %v4573_v46, %v2273_v32 }
 0x43f   : > { %v2140_v53 = vadd.f32 1e-05, %v2108_v58  ;;  %v2141_v9 = vadd.f32 1e-05, %v2109_v61 }
 0x440   : > { %v2022_v30 = vpop.xlane.xlu1 %2021  ;;  %v2025_v18 = vpop.xlane.xlu0 %2024 }
 0x441   : > { %4505 = vrsqrt.f32 %v2140_v53  ;;  %v2110_v15 = vmul.f32 0.0625, %v2022_v30  ;;  %v2111_v57 = vmul.f32 0.0625, %v2025_v18 }
 0x442   : > { %4507 = vrsqrt.f32 %v2141_v9 }
 0x443   : > { %v2142_v55 = vadd.f32 1e-05, %v2110_v15  ;;  %v2143_v29 = vadd.f32 1e-05, %v2111_v57 }
 0x444   : > { %v2028_v0 = vpop.xlane.xlu1 %2027  ;;  %v2031_v48 = vpop.xlane.xlu0 %2030 }
 0x445   : > { %4509 = vrsqrt.f32 %v2142_v55  ;;  %v2112_v11 = vmul.f32 0.0625, %v2028_v0  ;;  %v2113_v14 = vmul.f32 0.0625, %v2031_v48 }
 0x446   : > { %4511 = vrsqrt.f32 %v2143_v29 }
 0x447   : > { %v4504_v60 = vpop.eup %4503  ;;  %v2144_v13 = vadd.f32 1e-05, %v2112_v11  ;;  %v2145_v56 = vadd.f32 1e-05, %v2113_v14 }
 0x448   : > { %v2203_v8 = vmul.f32 %v4504_v60, %v5370_v44  ;;  %v2034_v58 = vpop.xlane.xlu1 %2033  ;;  %v2037_v61 = vpop.xlane.xlu0 %2036 }
 0x449   : > { %4513 = vrsqrt.f32 %v2144_v13  ;;  %v2114_v53 = vmul.f32 0.0625, %v2034_v58  ;;  %v2115_v9 = vmul.f32 0.0625, %v2037_v61 }
 0x44a   : > { %4515 = vrsqrt.f32 %v2145_v56  ;;  %v2239_v30 = vmul.f32 %v5565_v38, %v2203_v8 }
 0x44b   : > { %v4506_v18 = vpop.eup %4505  ;;  %v2146_v15 = vadd.f32 1e-05, %v2114_v53  ;;  %v2147_v57 = vadd.f32 1e-05, %v2115_v9 }
 0x44c   : > { %v4508_v55 = vpop.eup %4507  ;;  %v2204_v29 = vmul.f32 %v4506_v18, %v5378_v19  ;;  %v2040_v44 = vpop.xlane.xlu1 %2039  ;;  %v2275_v48 = vadd.f32 %v5570_v52, %v2239_v30 }
 0x44d   : > { %v2043_v0 = vpop.xlane.xlu0 %2042  ;;  %v2205_v11 = vmul.f32 %v4508_v55, %v5367_v3  ;;  %4517 = vrsqrt.f32 %v2146_v15  ;;  %v2116_v14 = vmul.f32 0.0625, %v2040_v44 }
 0x44e   : > { %v2117_v46 = vmul.f32 0.0625, %v2043_v0  ;;  %4519 = vrsqrt.f32 %v2147_v57  ;;  %v2240_v60 = vmul.f32 %v5565_v38, %v2204_v29  ;;  %2307 = vst.msk [vmem:[%s4743_s28] sm:$0xff] %vm970_vm2, %v2275_v48 }
 0x44f   : > { %v4510_v13 = vpop.eup %4509  ;;  %v2241_v56 = vmul.f32 %v5565_v38, %v2205_v11  ;;  %v2148_v8 = vadd.f32 1e-05, %v2116_v14 }
 0x450   : > { %v2149_v19 = vadd.f32 1e-05, %v2117_v46  ;;  %v4512_v58 = vpop.eup %4511  ;;  %v2206_v61 = vmul.f32 %v4510_v13, %v5375_v6  ;;  %v2046_v53 = vpop.xlane.xlu1 %2045  ;;  %v2276_v9 = vadd.f32 %v5570_v52, %v2240_v60 }
 0x451   : > { %v2049_v3 = vpop.xlane.xlu0 %2048  ;;  %v2277_v30 = vadd.f32 %v5570_v52, %v2241_v56  ;;  %v2207_v18 = vmul.f32 %v4512_v58, %v5388_v59  ;;  %4521 = vrsqrt.f32 %v2148_v8  ;;  %v2118_v15 = vmul.f32 0.0625, %v2046_v53 }
 0x452   : > { %v2242_v57 = vmul.f32 %v5565_v38, %v2206_v61  ;;  %4523 = vrsqrt.f32 %v2149_v19  ;;  %v2119_v55 = vmul.f32 0.0625, %v2049_v3  ;;  %2308 = vst.msk [vmem:[%s4743_s28 + $0x8] sm:$0xff] %vm970_vm2, %v2276_v9  ;;  %v2339_v29 = vpack.c.bf16 %v2276_v9, %v2275_v48 }
 0x453   : > { %v4514_v44 = vpop.eup %4513  ;;  %2309 = vst.msk [vmem:[%s4743_s28 + $0x10] sm:$0xff] %vm970_vm2, %v2277_v30  ;;  %v2150_v6 = vadd.f32 1e-05, %v2118_v15  ;;  %v2243_v0 = vmul.f32 %v5565_v38, %v2207_v18 }
 0x454   : > { %v4516_v11 = vpop.eup %4515  ;;  %v2278_v14 = vadd.f32 %v5570_v52, %v2242_v57  ;;  %v2208_v59 = vmul.f32 %v4514_v44, %v5393_v41  ;;  %v2151_v46 = vadd.f32 1e-05, %v2119_v55  ;;  %v2052_v60 = vpop.xlane.xlu1 %2051  ;;  %4355 = vmatprep.mubr.msk.bf16.mxu1 %vm970_vm2, %v2339_v29 }
 0x455   : > { %v2055_v13 = vpop.xlane.xlu0 %2054  ;;  %v2209_v56 = vmul.f32 %v4516_v11, %v5399_v54  ;;  %4525 = vrsqrt.f32 %v2150_v6  ;;  %v2120_v48 = vmul.f32 0.0625, %v2052_v60  ;;  %v2279_v61 = vadd.f32 %v5570_v52, %v2243_v0 }
 0x456   : > { %v2121_v8 = vmul.f32 0.0625, %v2055_v13  ;;  %2310 = vst.msk [vmem:[%s4743_s28 + $0x18] sm:$0xff] %vm970_vm2, %v2278_v14  ;;  %4527 = vrsqrt.f32 %v2151_v46  ;;  %v2340_v19 = vpack.c.bf16 %v2278_v14, %v2277_v30  ;;  %v2244_v58 = vmul.f32 %v5565_v38, %v2208_v59 }
 0x457   : > { %v4518_v41 = vpop.eup %4517  ;;  %v2152_v53 = vadd.f32 1e-05, %v2120_v48  ;;  %v2245_v9 = vmul.f32 %v5565_v38, %v2209_v56  ;;  %2311 = vst.msk [vmem:[%s4743_s28 + $0x20] sm:$0xff] %vm970_vm2, %v2279_v61 }
 0x458   : > { %v2153_v3 = vadd.f32 1e-05, %v2121_v8  ;;  %v4520_v18 = vpop.eup %4519  ;;  %v2210_v54 = vmul.f32 %v4518_v41, %v5405_v34  ;;  %v2058_v15 = vpop.xlane.xlu1 %2057  ;;  %4356 = vmatmul.mubr.msk.bf16.vlgmr.msra.gmra.mrb[60].mxu1 %vm970_vm2, %v2340_v19  ;;  %v2280_v55 = vadd.f32 %v5570_v52, %v2244_v58 }
 0x459   : > { %v2061_v57 = vpop.xlane.xlu0 %2060  ;;  %v2211_v30 = vmul.f32 %v4520_v18, %v5411_v16  ;;  %4529 = vrsqrt.f32 %v2152_v53  ;;  %v2122_v29 = vmul.f32 0.0625, %v2058_v15  ;;  %v2281_v0 = vadd.f32 %v5570_v52, %v2245_v9 }
 0x45a   : > { %v2123_v44 = vmul.f32 0.0625, %v2061_v57  ;;  %4531 = vrsqrt.f32 %v2153_v3  ;;  %2312 = vst.msk [vmem:[%s4743_s28 + $0x28] sm:$0xff] %vm970_vm2, %v2280_v55  ;;  %v2341_v6 = vpack.c.bf16 %v2280_v55, %v2279_v61  ;;  %v2246_v34 = vmul.f32 %v5565_v38, %v2210_v54 }
 0x45b   : > { %v4522_v11 = vpop.eup %4521  ;;  %v2154_v14 = vadd.f32 1e-05, %v2122_v29  ;;  %v2247_v46 = vmul.f32 %v5565_v38, %v2211_v30  ;;  %2313 = vst.msk [vmem:[%s4743_s28 + $0x30] sm:$0xff] %vm970_vm2, %v2281_v0 }
 0x45c   : > { %v2155_v59 = vadd.f32 1e-05, %v2123_v44  ;;  %v4524_v60 = vpop.eup %4523  ;;  %v2212_v16 = vmul.f32 %v4522_v11, %v5417_v51  ;;  %v2064_v13 = vpop.xlane.xlu1 %2063  ;;  %4359 = vmatprep.mubr.msk.bf16.mxu1 %vm970_vm2, %v2341_v6  ;;  %v2282_v48 = vadd.f32 %v5570_v52, %v2246_v34 }
 0x45d   : > { %v2067_v56 = vpop.xlane.xlu0 %2066  ;;  %v2213_v8 = vmul.f32 %v4524_v60, %v5423_v26  ;;  %4533 = vrsqrt.f32 %v2154_v14  ;;  %v2124_v19 = vmul.f32 0.0625, %v2064_v13  ;;  %v2283_v41 = vadd.f32 %v5570_v52, %v2247_v46 }
 0x45e   : > { %v2125_v58 = vmul.f32 0.0625, %v2067_v56  ;;  %4535 = vrsqrt.f32 %v2155_v59  ;;  %2314 = vst.msk [vmem:[%s4743_s28 + $0x38] sm:$0xff] %vm970_vm2, %v2282_v48  ;;  %v2342_v61 = vpack.c.bf16 %v2282_v48, %v2281_v0  ;;  %v2248_v51 = vmul.f32 %v5565_v38, %v2212_v16 }
 0x45f   : > { %v4526_v53 = vpop.eup %4525  ;;  %v2156_v3 = vadd.f32 1e-05, %v2124_v19  ;;  %v2249_v18 = vmul.f32 %v5565_v38, %v2213_v8  ;;  %2315 = vst.msk [vmem:[%s4743_s28 + $0x40] sm:$0xff] %vm970_vm2, %v2283_v41 }
 0x460   : > { %v2157_v9 = vadd.f32 1e-05, %v2125_v58  ;;  %v4528_v54 = vpop.eup %4527  ;;  %v2214_v26 = vmul.f32 %v4526_v53, %v5429_v42  ;;  %v2070_v15 = vpop.xlane.xlu1 %2069  ;;  %4360 = vmatmul.mubr.msk.bf16.gmra.mrb[64].mxu1 %vm970_vm2, %v2342_v61  ;;  %v2284_v55 = vadd.f32 %v5570_v52, %v2248_v51 }
 0x461   : > { %v2073_v57 = vpop.xlane.xlu0 %2072  ;;  %v2215_v30 = vmul.f32 %v4528_v54, %v5435_v45  ;;  %4537 = vrsqrt.f32 %v2156_v3  ;;  %v2126_v29 = vmul.f32 0.0625, %v2070_v15  ;;  %v2285_v34 = vadd.f32 %v5570_v52, %v2249_v18 }
 0x462   : > { %v2127_v44 = vmul.f32 0.0625, %v2073_v57  ;;  %4539 = vrsqrt.f32 %v2157_v9  ;;  %2316 = vst.msk [vmem:[%s4743_s28 + $0x48] sm:$0xff] %vm970_vm2, %v2284_v55  ;;  %v2343_v6 = vpack.c.bf16 %v2284_v55, %v2283_v41  ;;  %v2250_v42 = vmul.f32 %v5565_v38, %v2214_v26 }
 0x463   : > { %v4530_v0 = vpop.eup %4529  ;;  %v2158_v11 = vadd.f32 1e-05, %v2126_v29  ;;  %v2251_v59 = vmul.f32 %v5565_v38, %v2215_v30  ;;  %2317 = vst.msk [vmem:[%s4743_s28 + $0x50] sm:$0xff] %vm970_vm2, %v2285_v34 }
 0x464   : > { %v2159_v14 = vadd.f32 1e-05, %v2127_v44  ;;  %v4532_v46 = vpop.eup %4531  ;;  %v2216_v45 = vmul.f32 %v4530_v0, %v5441_v50  ;;  %v2076_v60 = vpop.xlane.xlu1 %2075  ;;  %4363 = vmatprep.mubr.msk.bf16.mxu1 %vm970_vm2, %v2343_v6  ;;  %v2286_v13 = vadd.f32 %v5570_v52, %v2250_v42 }
 0x465   : > { %v2079_v16 = vpop.xlane.xlu0 %2078  ;;  %v2217_v56 = vmul.f32 %v4532_v46, %v5447_v2  ;;  %4541 = vrsqrt.f32 %v2158_v11  ;;  %v2128_v48 = vmul.f32 0.0625, %v2076_v60  ;;  %v2287_v58 = vadd.f32 %v5570_v52, %v2251_v59 }
 0x466   : > { %v2129_v8 = vmul.f32 0.0625, %v2079_v16  ;;  %4543 = vrsqrt.f32 %v2159_v14  ;;  %2318 = vst.msk [vmem:[%s4743_s28 + $0x58] sm:$0xff] %vm970_vm2, %v2286_v13  ;;  %v2344_v19 = vpack.c.bf16 %v2286_v13, %v2285_v34  ;;  %v2252_v50 = vmul.f32 %v5565_v38, %v2216_v45 }
 0x467   : > { %v4534_v61 = vpop.eup %4533  ;;  %v2160_v51 = vadd.f32 1e-05, %v2128_v48  ;;  %v2253_v53 = vmul.f32 %v5565_v38, %v2217_v56  ;;  %2319 = vst.msk [vmem:[%s4743_s28 + $0x60] sm:$0xff] %vm970_vm2, %v2287_v58 }
 0x468   : > { %v2161_v41 = vadd.f32 1e-05, %v2129_v8  ;;  %v4536_v3 = vpop.eup %4535  ;;  %v2218_v2 = vmul.f32 %v4534_v61, %v5453_v12  ;;  %v2082_v9 = vpop.xlane.xlu1 %2081  ;;  %4364 = vmatmul.mubr.msk.bf16.gmra.mrb[68].mxu1 %vm970_vm2, %v2344_v19  ;;  %v2288_v54 = vadd.f32 %v5570_v52, %v2252_v50 }
 0x469   : > { %v2085_v18 = vpop.xlane.xlu0 %2084  ;;  %v2219_v26 = vmul.f32 %v4536_v3, %v5459_v27  ;;  %4545 = vrsqrt.f32 %v2160_v51  ;;  %v2130_v15 = vmul.f32 0.0625, %v2082_v9  ;;  %v2289_v30 = vadd.f32 %v5570_v52, %v2253_v53 }
 0x46a   : > { %v2131_v57 = vmul.f32 0.0625, %v2085_v18  ;;  %4547 = vrsqrt.f32 %v2161_v41  ;;  %2320 = vst.msk [vmem:[%s4743_s28 + $0x68] sm:$0xff] %vm970_vm2, %v2288_v54  ;;  %v2345_v55 = vpack.c.bf16 %v2288_v54, %v2287_v58  ;;  %v2254_v12 = vmul.f32 %v5565_v38, %v2218_v2 }
 0x46b   : > { %v4538_v29 = vpop.eup %4537  ;;  %v2162_v44 = vadd.f32 1e-05, %v2130_v15  ;;  %v2255_v42 = vmul.f32 %v5565_v38, %v2219_v26  ;;  %2321 = vst.msk [vmem:[%s4743_s28 + $0x70] sm:$0xff] %vm970_vm2, %v2289_v30 }
 0x46c   : > { %v2163_v6 = vadd.f32 1e-05, %v2131_v57  ;;  %v4540_v34 = vpop.eup %4539  ;;  %v2220_v27 = vmul.f32 %v4538_v29, %v5465_v31  ;;  %v2088_v0 = vpop.xlane.xlu1 %2087  ;;  %4367 = vmatprep.mubr.msk.bf16.mxu1 %vm970_vm2, %v2345_v55  ;;  %v2290_v14 = vadd.f32 %v5570_v52, %v2254_v12 }
 0x46d   : > { %v2091_v11 = vpop.xlane.xlu0 %2090  ;;  %v2221_v59 = vmul.f32 %v4540_v34, %v5471_v63  ;;  %4549 = vrsqrt.f32 %v2162_v44  ;;  %v2132_v46 = vmul.f32 0.0625, %v2088_v0  ;;  %v2291_v16 = vadd.f32 %v5570_v52, %v2255_v42 }
 0x46e   : > { %v2133_v45 = vmul.f32 0.0625, %v2091_v11  ;;  %4551 = vrsqrt.f32 %v2163_v6  ;;  %2322 = vst.msk [vmem:[%s4743_s28 + $0x78] sm:$0xff] %vm970_vm2, %v2290_v14  ;;  %v2346_v60 = vpack.c.bf16 %v2290_v14, %v2289_v30  ;;  %v2256_v31 = vmul.f32 %v5565_v38, %v2220_v27 }
 0x46f   : > { %v4542_v13 = vpop.eup %4541  ;;  %v2164_v56 = vadd.f32 1e-05, %v2132_v46  ;;  %v2257_v8 = vmul.f32 %v5565_v38, %v2221_v59  ;;  %2323 = vst.msk [vmem:[%s4743_s28 + $0x80] sm:$0xff] %vm970_vm2, %v2291_v16 }
 0x470   : > { %v2165_v48 = vadd.f32 1e-05, %v2133_v45  ;;  %v4544_v19 = vpop.eup %4543  ;;  %v2222_v63 = vmul.f32 %v4542_v13, %v5477_v35  ;;  %v2094_v50 = vpop.xlane.xlu1 %2093  ;;  %4368 = vmatmul.mubr.msk.bf16.gmra.mrb[72].mxu1 %vm970_vm2, %v2346_v60  ;;  %v2292_v61 = vadd.f32 %v5570_v52, %v2256_v31 }
 0x471   : > { %v2097_v58 = vpop.xlane.xlu0 %2096  ;;  %v2223_v51 = vmul.f32 %v4544_v19, %v5483_v62  ;;  %4553 = vrsqrt.f32 %v2164_v56  ;;  %v2134_v41 = vmul.f32 0.0625, %v2094_v50  ;;  %v2293_v2 = vadd.f32 %v5570_v52, %v2257_v8 }
 0x472   : > { %v2135_v53 = vmul.f32 0.0625, %v2097_v58  ;;  %4555 = vrsqrt.f32 %v2165_v48  ;;  %2324 = vst.msk [vmem:[%s4743_s28 + $0x88] sm:$0xff] %vm970_vm2, %v2292_v61  ;;  %v2347_v3 = vpack.c.bf16 %v2292_v61, %v2291_v16  ;;  %v2258_v35 = vmul.f32 %v5565_v38, %v2222_v63 }
 0x473   : > { %v4546_v9 = vpop.eup %4545  ;;  %v2166_v18 = vadd.f32 1e-05, %v2134_v41  ;;  %v2259_v26 = vmul.f32 %v5565_v38, %v2223_v51  ;;  %2325 = vst.msk [vmem:[%s4743_s28 + $0x90] sm:$0xff] %vm970_vm2, %v2293_v2 }
 0x474   : > { %v2167_v54 = vadd.f32 1e-05, %v2135_v53  ;;  %v4548_v15 = vpop.eup %4547  ;;  %v2224_v62 = vmul.f32 %v4546_v9, %v5489_v5  ;;  %v2100_v57 = vpop.xlane.xlu1 %2099  ;;  %4371 = vmatprep.mubr.msk.bf16.mxu1 %vm970_vm2, %v2347_v3  ;;  %v2294_v12 = vadd.f32 %v5570_v52, %v2258_v35 }
 0x475   : > { %v2103_v55 = vpop.xlane.xlu0 %2102  ;;  %v2225_v30 = vmul.f32 %v4548_v15, %v5495_v28  ;;  %4557 = vrsqrt.f32 %v2166_v18  ;;  %v2136_v29 = vmul.f32 0.0625, %v2100_v57  ;;  %v2295_v42 = vadd.f32 %v5570_v52, %v2259_v26 }
 0x476   : > { %v2137_v44 = vmul.f32 0.0625, %v2103_v55  ;;  %4559 = vrsqrt.f32 %v2167_v54  ;;  %2326 = vst.msk [vmem:[%s4743_s28 + $0x98] sm:$0xff] %vm970_vm2, %v2294_v12  ;;  %v2348_v6 = vpack.c.bf16 %v2294_v12, %v2293_v2  ;;  %v2260_v5 = vmul.f32 %v5565_v38, %v2224_v62 }
 0x477   : > { %v4550_v34 = vpop.eup %4549  ;;  %v2168_v27 = vadd.f32 1e-05, %v2136_v29  ;;  %v2261_v11 = vmul.f32 %v5565_v38, %v2225_v30  ;;  %2327 = vst.msk [vmem:[%s4743_s28 + $0xa0] sm:$0xff] %vm970_vm2, %v2295_v42 }
 0x478   : > { %v2169_v0 = vadd.f32 1e-05, %v2137_v44  ;;  %v4552_v14 = vpop.eup %4551  ;;  %v2226_v28 = vmul.f32 %v4550_v34, %v5501_v49  ;;  %v2106_v59 = vpop.xlane.xlu1 %2105  ;;  %4372 = vmatmul.mubr.msk.bf16.gmra.mrb[76].mxu1 %vm970_vm2, %v2348_v6  ;;  %v2296_v46 = vadd.f32 %v5570_v52, %v2260_v5 }
 0x479   : > { %v2227_v45 = vmul.f32 %v4552_v14, %v5507_v33  ;;  %4561 = vrsqrt.f32 %v2168_v27  ;;  %v2138_v60 = vmul.f32 0.0625, %v2106_v59  ;;  %v2297_v31 = vadd.f32 %v5570_v52, %v2261_v11 }
 0x47a   : > { %4563 = vrsqrt.f32 %v2169_v0  ;;  %2328 = vst.msk [vmem:[%s4743_s28 + $0xa8] sm:$0xff] %vm970_vm2, %v2296_v46  ;;  %v2349_v16 = vpack.c.bf16 %v2296_v46, %v2295_v42  ;;  %v2262_v49 = vmul.f32 %v5565_v38, %v2226_v28  ;;  %v5750_v42 = vld [vmem:[%s6252_s14] sm:$0x1f] }
 0x47b   : > { %v4554_v13 = vpop.eup %4553  ;;  %v2170_v56 = vadd.f32 1e-05, %v2138_v60  ;;  %2329 = vst.msk [vmem:[%s4743_s28 + $0xb0] sm:$0xff] %vm970_vm2, %v2297_v31  ;;  %v2263_v48 = vmul.f32 %v5565_v38, %v2227_v45  ;;  %v6324_v0 = vld [vmem:[#allocation9_spill] sm:$0xff] }
 0x47c   : > { %v4556_v8 = vpop.eup %4555  ;;  %v2228_v33 = vmul.f32 %v4554_v13, %v5513_v36  ;;  %4375 = vmatprep.mubr.msk.bf16.mxu1 %vm970_vm2, %v2349_v16  ;;  %v2298_v19 = vadd.f32 %v5570_v52, %v2262_v49 }
 0x47d   : > { %v2229_v63 = vmul.f32 %v4556_v8, %v5519_v10  ;;  %4565 = vrsqrt.f32 %v2170_v56  ;;  %v2299_v50 = vadd.f32 %v5570_v52, %v2263_v48 }
 0x47e   : > { %2330 = vst.msk [vmem:[%s4743_s28 + $0xb8] sm:$0xff] %vm970_vm2, %v2298_v19  ;;  %v2350_v58 = vpack.c.bf16 %v2298_v19, %v2297_v31  ;;  %v2264_v61 = vmul.f32 %v5565_v38, %v2228_v33 }
 0x47f   : > { %v4558_v51 = vpop.eup %4557  ;;  %2331 = vst.msk [vmem:[%s4743_s28 + $0xc0] sm:$0xff] %vm970_vm2, %v2299_v50  ;;  %v2265_v36 = vmul.f32 %v5565_v38, %v2229_v63 }
 0x480   : > { %v4560_v41 = vpop.eup %4559  ;;  %v2230_v53 = vmul.f32 %v4558_v51, %v5525_v25  ;;  %4376 = vmatmul.mubr.msk.bf16.gmra.mrb[80].mxu1 %vm970_vm2, %v2350_v58  ;;  %v2300_v10 = vadd.f32 %v5570_v52, %v2264_v61 }
 0x481   : > { %v2231_v3 = vmul.f32 %v4560_v41, %v5531_v1  ;;  %v2301_v35 = vadd.f32 %v5570_v52, %v2265_v36 }
 0x482   : > { %2332 = vst.msk [vmem:[%s4743_s28 + $0xc8] sm:$0xff] %vm970_vm2, %v2300_v10  ;;  %v2351_v2 = vpack.c.bf16 %v2300_v10, %v2299_v50  ;;  %v2266_v9 = vmul.f32 %v5565_v38, %v2230_v53 }
 0x483   : > { %v4562_v18 = vpop.eup %4561  ;;  %2333 = vst.msk [vmem:[%s4743_s28 + $0xd0] sm:$0xff] %vm970_vm2, %v2301_v35  ;;  %v2267_v25 = vmul.f32 %v5565_v38, %v2231_v3 }
 0x484   : > { %v4564_v54 = vpop.eup %4563  ;;  %v2232_v26 = vmul.f32 %v4562_v18, %v5537_v40  ;;  %4379 = vmatprep.mubr.msk.bf16.mxu1 %vm970_vm2, %v2351_v2  ;;  %v2302_v1 = vadd.f32 %v5570_v52, %v2266_v9  ;;  %v4499_v18 = vld [vmem:[%s6249_s11] sm:$0xff]  }
 0x485   : > { %v2233_v15 = vmul.f32 %v4564_v54, %v5543_v17  ;;  %v2303_v62 = vadd.f32 %v5570_v52, %v2267_v25  ;;  %4387 = vmatprep.subr.bf16.mxu0 %v4499_v18  ;;  %v4500_v25 = vld [vmem:[%s6249_s11 + $0x8] sm:$0xff]  }
 0x486   : > { %2334 = vst.msk [vmem:[%s4743_s28 + $0xd8] sm:$0xff] %vm970_vm2, %v2302_v1  ;;  %v2352_v57 = vpack.c.bf16 %v2302_v1, %v2301_v35  ;;  %v2268_v55 = vmul.f32 %v5565_v38, %v2232_v26  ;;  %4388 = vmatpush3.bf16.msra.mxu0 %v4499_v18 }
 0x487   : > { %v4566_v12 = vpop.eup %4565  ;;  %2335 = vst.msk [vmem:[%s4743_s28 + $0xe0] sm:$0xff] %vm970_vm2, %v2303_v62  ;;  %v2269_v40 = vmul.f32 %v5565_v38, %v2233_v15  ;;  %4389 = vmatprep.subr.bf16.mxu0 %v4500_v25 }
 0x488   : > { %v2234_v30 = vmul.f32 %v4566_v12, %v5549_v7  ;;  %4380 = vmatmul.mubr.msk.bf16.gmra.mrb[84].mxu1 %vm970_vm2, %v2352_v57  ;;  %v2304_v29 = vadd.f32 %v5570_v52, %v2268_v55 }
 0x489   : > { %v2305_v17 = vadd.f32 %v5570_v52, %v2269_v40 }
 0x48a   : > { %2336 = vst.msk [vmem:[%s4743_s28 + $0xe8] sm:$0xff] %vm970_vm2, %v2304_v29  ;;  %v2353_v44 = vpack.c.bf16 %v2304_v29, %v2303_v62  ;;  %v2270_v6 = vmul.f32 %v5565_v38, %v2234_v30  ;;  %4390 = vmatpush3.bf16.msra.mxu0 %v4500_v25 }
 0x48b   : > { %2337 = vst.msk [vmem:[%s4743_s28 + $0xf0] sm:$0xff] %vm970_vm2, %v2305_v17 }
 0x48c   : > { %4383 = vmatprep.mubr.msk.bf16.mxu1 %vm970_vm2, %v2353_v44  ;;  %v2306_v5 = vadd.f32 %v5570_v52, %v2270_v6  ;;  %v2735_v52 = vrot.slane %v5750_v42, %v6324_v0 }
 0x48e   : > { %2338 = vst.msk [vmem:[%s4743_s28 + $0xf8] sm:$0xff] %vm970_vm2, %v2306_v5  ;;  %v2354_v7 = vpack.c.bf16 %v2306_v5, %v2305_v17  ;;  %s6353_s28 = sld [smem:[#allocation37_spill]] (!%p4050_p11) }
 0x490   : > { %4384 = vmatmul.mubr.msk.bf16.gmra.mrb[88].mxu1 %vm970_vm2, %v2354_v7 }
 0x52b   : > { %v4357_v34 = vpop.f32.mrb[60].mxu1 }
 0x52c   : > { %2608 = vrot.lane.b32.xlu1 %v4357_v34, %s4620_s20  ;;  %v2445_v38 = vpop.f32.mrb[61].mxu1 }
 0x52d   : > { %2604 = vrot.lane.b32.xlu0 %v2445_v38, %s4620_s20  ;;  %v4358_v27 = vpop.f32.mrb[62].mxu1 }
 0x52e   : > { %v2448_v11 = vpop.f32.mrb[63].mxu1 }
 0x530   : > { %2606 = vrot.lane.b32.xlu1 %v2448_v11, %s4620_s20 }
 0x531   : > { %2737 = vrot.lane.b32.xlu0 %v2735_v52, %s4620_s20  ;;  %v6326_v52 = vld [vmem:[#allocation11_spill] sm:$0xff] }
 0x533   : > { %v4361_v14 = vpop.f32.mrb[64].mxu1 }
 0x534   : > { %2610 = vrot.lane.b32.xlu1 %v4358_v27, %s4620_s20  ;;  %v2461_v28 = vpop.f32.mrb[65].mxu1 }
 0x535   : > { %v4362_v59 = vpop.f32.mrb[66].mxu1 }
 0x536   : > { %v2464_v46 = vpop.f32.mrb[67].mxu1 }
 0x537   : > { %2614 = vrot.lane.b32.xlu0 %v2464_v46, %s4620_s20 }
 0x538   : > { %2612 = vrot.lane.b32.xlu1 %v2461_v28, %s4620_s20 }
 0x53b   : > { %2618 = vrot.lane.b32.xlu0 %v4362_v59, %s4620_s20  ;;  %v4365_v45 = vpop.f32.mrb[68].mxu1 }
 0x53c   : > { %2616 = vrot.lane.b32.xlu1 %v4361_v14, %s4620_s20  ;;  %v2477_v60 = vpop.f32.mrb[69].mxu1 }
 0x53d   : > { %v4366_v31 = vpop.f32.mrb[70].mxu1 }
 0x53e   : > { %v2480_v16 = vpop.f32.mrb[71].mxu1 }
 0x53f   : > { %2622 = vrot.lane.b32.xlu0 %v2480_v16, %s4620_s20 }
 0x540   : > { %2620 = vrot.lane.b32.xlu1 %v2477_v60, %s4620_s20 }
 0x543   : > { %2626 = vrot.lane.b32.xlu0 %v4366_v31, %s4620_s20  ;;  %v4369_v49 = vpop.f32.mrb[72].mxu1 }
 0x544   : > { %2624 = vrot.lane.b32.xlu1 %v4365_v45, %s4620_s20  ;;  %v2493_v13 = vpop.f32.mrb[73].mxu1  ;;  %v6327_v45 = vld [vmem:[#allocation12_spill] sm:$0xff] }
 0x545   : > { %v4370_v56 = vpop.f32.mrb[74].mxu1 }
 0x546   : > { %v2496_v48 = vpop.f32.mrb[75].mxu1 }
 0x547   : > { %2630 = vrot.lane.b32.xlu0 %v2496_v48, %s4620_s20 }
 0x548   : > { %2628 = vrot.lane.b32.xlu1 %v2493_v13, %s4620_s20 }
 0x54b   : > { %2634 = vrot.lane.b32.xlu0 %v4370_v56, %s4620_s20  ;;  %v4373_v8 = vpop.f32.mrb[76].mxu1 }
 0x54c   : > { %2632 = vrot.lane.b32.xlu1 %v4369_v49, %s4620_s20  ;;  %v2509_v33 = vpop.f32.mrb[77].mxu1  ;;  %v6328_v49 = vld [vmem:[#allocation10_spill] sm:$0xff] }
 0x54d   : > { %v4374_v19 = vpop.f32.mrb[78].mxu1 }
 0x54e   : > { %v2512_v63 = vpop.f32.mrb[79].mxu1 }
 0x54f   : > { %2638 = vrot.lane.b32.xlu0 %v2512_v63, %s4620_s20  ;;  %v6329_v63 = vld [vmem:[#allocation17_spill] sm:$0xff] }
 0x550   : > { %2636 = vrot.lane.b32.xlu1 %v2509_v33, %s4620_s20 }
 0x553   : > { %2642 = vrot.lane.b32.xlu0 %v4374_v19, %s4620_s20  ;;  %v4377_v50 = vpop.f32.mrb[80].mxu1 }
 0x554   : > { %2640 = vrot.lane.b32.xlu1 %v4373_v8, %s4620_s20  ;;  %v2525_v58 = vpop.f32.mrb[81].mxu1 }
 0x555   : > { %v4378_v61 = vpop.f32.mrb[82].mxu1 }
 0x556   : > { %v2528_v51 = vpop.f32.mrb[83].mxu1 }
 0x557   : > { %2646 = vrot.lane.b32.xlu0 %v2528_v51, %s4620_s20  ;;  %v6330_v51 = vld [vmem:[#allocation15_spill] sm:$0xff] }
 0x558   : > { %2644 = vrot.lane.b32.xlu1 %v2525_v58, %s4620_s20 }
 0x55b   : > { %2650 = vrot.lane.b32.xlu0 %v4378_v61, %s4620_s20  ;;  %v4381_v36 = vpop.f32.mrb[84].mxu1 }
 0x55c   : > { %2648 = vrot.lane.b32.xlu1 %v4377_v50, %s4620_s20  ;;  %v2541_v41 = vpop.f32.mrb[85].mxu1 }
 0x55d   : > { %v4382_v53 = vpop.f32.mrb[86].mxu1 }
 0x55e   : > { %v2544_v10 = vpop.f32.mrb[87].mxu1 }
 0x55f   : > { %2654 = vrot.lane.b32.xlu0 %v2544_v10, %s4620_s20 }
 0x560   : > { %2652 = vrot.lane.b32.xlu1 %v2541_v41, %s4620_s20 }
 0x563   : > { %2658 = vrot.lane.b32.xlu0 %v4382_v53, %s4620_s20  ;;  %v4385_v3 = vpop.f32.mrb[88].mxu1 }
 0x564   : > { %2656 = vrot.lane.b32.xlu1 %v4381_v36, %s4620_s20  ;;  %v2557_v35 = vpop.f32.mrb[89].mxu1 }
 0x565   : > { %v4386_v2 = vpop.f32.mrb[90].mxu1 }
 0x566   : > { %v2560_v9 = vpop.f32.mrb[91].mxu1 }
 0x567   : > { %2662 = vrot.lane.b32.xlu0 %v2560_v9, %s4620_s20 }
 0x568   : > { %2660 = vrot.lane.b32.xlu1 %v2557_v35, %s4620_s20 }
 0x56b   : > { %2666 = vrot.lane.b32.xlu0 %v4386_v2, %s4620_s20  ;;  %v6331_v2 = vld [vmem:[#allocation16_spill] sm:$0xff] }
 0x56c   : > { %2664 = vrot.lane.b32.xlu1 %v4385_v3, %s4620_s20 }
 0x59e   : > { %v2609_v54 = vpop.permute.xlu1 %2608 }
 0x59f   : > { %v2605_v26 = vpop.permute.xlu0 %2604  ;;  %v2702_v12 = vadd.f32 %v4924_v21, %v2609_v54  ;;  %v6332_v54 = vld [vmem:[#allocation14_spill] sm:$0xff] }
 0x5a0   : > { %v2700_v1 = vadd.f32 %v2605_v26, %v4926_v22 }
 0x5a2   : > { %v2607_v15 = vpop.permute.xlu1 %2606 }
 0x5a3   : > { %v2701_v62 = vadd.f32 %v2607_v15, %v4930_v24  ;;  %v5795_v57 = vpop.permute.xlu0 %2737  ;;  %v6325_v24 = vld [vmem:[#allocation13_spill] sm:$0xff] }
 0x5a4   : > { %v2740_v55 = vadd.f32 %v5795_v57, %v2700_v1  ;;  %v2742_v6 = vadd.f32 %v5795_v57, %v2702_v12 }
 0x5a5   : > { %v2741_v40 = vadd.f32 %v5795_v57, %v2701_v62 }
 0x5a6   : > { %v2611_v30 = vpop.permute.xlu1 %2610  ;;  %v2772_v29 = vmax.f32 %v2740_v55, 0.0  ;;  %v2774_v21 = vmax.f32 %v2742_v6, 0.0 }
 0x5a7   : > { %v2703_v17 = vadd.f32 %v4928_v23, %v2611_v30  ;;  %v2773_v44 = vmax.f32 %v2741_v40, 0.0  ;;  %v6333_v40 = vld [vmem:[#allocation21_spill] sm:$0xff] }
 0x5a9   : > { %v2743_v22 = vadd.f32 %v5795_v57, %v2703_v17  ;;  %v2615_v5 = vpop.permute.xlu0 %2614  ;;  %v2804_v7 = vpack.c.bf16 %v2773_v44, %v2772_v29  ;;  %v6334_v44 = vld [vmem:[#allocation19_spill] sm:$0xff] }
 0x5aa   : > { %v2705_v34 = vadd.f32 %v2615_v5, %v6325_v24  ;;  %v2613_v38 = vpop.permute.xlu1 %2612 }
 0x5ab   : > { %v2775_v27 = vmax.f32 %v2743_v22, 0.0  ;;  %v2704_v11 = vadd.f32 %v2613_v38, %v6326_v52  ;;  %2844 = vrot.lane.b32.xlu1 %v2804_v7, %s4621_s21  ;;  %v6335_v38 = vld [vmem:[#allocation20_spill] sm:$0xff] }
 0x5ac   : > { %v2745_v14 = vadd.f32 %v5795_v57, %v2705_v34 }
 0x5ad   : > { %v2744_v23 = vadd.f32 %v5795_v57, %v2704_v11  ;;  %v2619_v28 = vpop.permute.xlu0 %2618  ;;  %v2805_v59 = vpack.c.bf16 %v2775_v27, %v2774_v21  ;;  %v6336_v21 = vld [vmem:[#allocation18_spill] sm:$0xff] }
 0x5ae   : > { %v2777_v46 = vmax.f32 %v2745_v14, 0.0  ;;  %v2707_v60 = vadd.f32 %v6327_v45, %v2619_v28  ;;  %v2617_v31 = vpop.permute.xlu1 %2616 }
 0x5af   : > { %v2776_v16 = vmax.f32 %v2744_v23, 0.0  ;;  %v2706_v13 = vadd.f32 %v6328_v49, %v2617_v31  ;;  %2846 = vrot.lane.b32.xlu0 %v2805_v59, %s4621_s21 }
 0x5b0   : > { %v2747_v56 = vadd.f32 %v5795_v57, %v2707_v60  ;;  %v6337_v60 = vld [vmem:[#allocation25_spill] sm:$0xff] }
 0x5b1   : > { %v2806_v48 = vpack.c.bf16 %v2777_v46, %v2776_v16  ;;  %v2746_v8 = vadd.f32 %v5795_v57, %v2706_v13  ;;  %v2623_v33 = vpop.permute.xlu0 %2622  ;;  %v6338_v13 = vld [vmem:[#allocation23_spill] sm:$0xff] }
 0x5b2   : > { %v2779_v19 = vmax.f32 %v2747_v56, 0.0  ;;  %v2709_v50 = vadd.f32 %v2623_v33, %v6329_v63  ;;  %v2621_v58 = vpop.permute.xlu1 %2620 }
 0x5b3   : > { %v2778_v61 = vmax.f32 %v2746_v8, 0.0  ;;  %v2708_v36 = vadd.f32 %v2621_v58, %v6330_v51  ;;  %2848 = vrot.lane.b32.xlu1 %v2806_v48, %s4621_s21 }
 0x5b4   : > { %v2749_v41 = vadd.f32 %v5795_v57, %v2709_v50  ;;  %v6339_v50 = vld [vmem:[#allocation24_spill] sm:$0xff] }
 0x5b5   : > { %v2807_v53 = vpack.c.bf16 %v2779_v19, %v2778_v61  ;;  %v2748_v10 = vadd.f32 %v5795_v57, %v2708_v36  ;;  %v2627_v3 = vpop.permute.xlu0 %2626  ;;  %v6340_v36 = vld [vmem:[#allocation22_spill] sm:$0xff] }
 0x5b6   : > { %v2781_v35 = vmax.f32 %v2749_v41, 0.0  ;;  %v2711_v9 = vadd.f32 %v6331_v2, %v2627_v3  ;;  %v2625_v18 = vpop.permute.xlu1 %2624 }
 0x5b7   : > { %v2780_v25 = vmax.f32 %v2748_v10, 0.0  ;;  %v2710_v26 = vadd.f32 %v6332_v54, %v2625_v18  ;;  %2850 = vrot.lane.b32.xlu0 %v2807_v53, %s4621_s21 }
 0x5b8   : > { %v2751_v1 = vadd.f32 %v5795_v57, %v2711_v9  ;;  %v6341_v9 = vld [vmem:[#allocation29_spill] sm:$0xff] }
 0x5b9   : > { %v2808_v15 = vpack.c.bf16 %v2781_v35, %v2780_v25  ;;  %v2750_v62 = vadd.f32 %v5795_v57, %v2710_v26  ;;  %v2631_v55 = vpop.permute.xlu0 %2630  ;;  %v6342_v26 = vld [vmem:[#allocation27_spill] sm:$0xff] }
 0x5ba   : > { %v2783_v12 = vmax.f32 %v2751_v1, 0.0  ;;  %v2713_v30 = vadd.f32 %v2631_v55, %v6333_v40  ;;  %v2629_v29 = vpop.permute.xlu1 %2628 }
 0x5bb   : > { %v2782_v17 = vmax.f32 %v2750_v62, 0.0  ;;  %v2712_v6 = vadd.f32 %v2629_v29, %v6334_v44  ;;  %2852 = vrot.lane.b32.xlu1 %v2808_v15, %s4621_s21 }
 0x5bc   : > { %v2753_v22 = vadd.f32 %v5795_v57, %v2713_v30  ;;  %v6343_v30 = vld [vmem:[#allocation28_spill] sm:$0xff] }
 0x5bd   : > { %v2809_v5 = vpack.c.bf16 %v2783_v12, %v2782_v17  ;;  %v2752_v7 = vadd.f32 %v5795_v57, %v2712_v6  ;;  %v2635_v24 = vpop.permute.xlu0 %2634  ;;  %v6344_v6 = vld [vmem:[#allocation26_spill] sm:$0xff] }
 0x5be   : > { %v2785_v34 = vmax.f32 %v2753_v22, 0.0  ;;  %v2715_v27 = vadd.f32 %v6335_v38, %v2635_v24  ;;  %v2633_v52 = vpop.permute.xlu1 %2632 }
 0x5bf   : > { %v2784_v11 = vmax.f32 %v2752_v7, 0.0  ;;  %v2714_v14 = vadd.f32 %v6336_v21, %v2633_v52  ;;  %2854 = vrot.lane.b32.xlu0 %v2809_v5, %s4621_s21  ;;  %v6345_v21 = vld [vmem:[#allocation31_spill] sm:$0xff] }
 0x5c0   : > { %v2755_v23 = vadd.f32 %v5795_v57, %v2715_v27 }
 0x5c1   : > { %v2810_v28 = vpack.c.bf16 %v2785_v34, %v2784_v11  ;;  %v2754_v59 = vadd.f32 %v5795_v57, %v2714_v14  ;;  %v2639_v46 = vpop.permute.xlu0 %2638 }
 0x5c2   : > { %v2787_v45 = vmax.f32 %v2755_v23, 0.0  ;;  %v2717_v31 = vadd.f32 %v2639_v46, %v6337_v60  ;;  %v2637_v16 = vpop.permute.xlu1 %2636  ;;  %v6346_v60 = vld [vmem:[#allocation32_spill] sm:$0xff] }
 0x5c3   : > { %v2786_v49 = vmax.f32 %v2754_v59, 0.0  ;;  %v2716_v56 = vadd.f32 %v2637_v16, %v6338_v13  ;;  %2856 = vrot.lane.b32.xlu1 %v2810_v28, %s4621_s21  ;;  %v6347_v13 = vld [vmem:[#allocation30_spill] sm:$0xff] }
 0x5c4   : > { %v2757_v48 = vadd.f32 %v5795_v57, %v2717_v31 }
 0x5c5   : > { %v2811_v8 = vpack.c.bf16 %v2787_v45, %v2786_v49  ;;  %v2756_v33 = vadd.f32 %v5795_v57, %v2716_v56  ;;  %v2643_v19 = vpop.permute.xlu0 %2642 }
 0x5c6   : > { %v2789_v63 = vmax.f32 %v2757_v48, 0.0  ;;  %v2719_v58 = vadd.f32 %v6339_v50, %v2643_v19  ;;  %v2641_v61 = vpop.permute.xlu1 %2640 }
 0x5c7   : > { %v2788_v51 = vmax.f32 %v2756_v33, 0.0  ;;  %v2718_v41 = vadd.f32 %v6340_v36, %v2641_v61  ;;  %2858 = vrot.lane.b32.xlu0 %v2811_v8, %s4621_s21 }
 0x5c8   : > { %v2759_v53 = vadd.f32 %v5795_v57, %v2719_v58  ;;  %v4501_v58 = vld [vmem:[%s6250_s12] sm:$0xff]  }
 0x5c9   : > { %v2812_v10 = vpack.c.bf16 %v2789_v63, %v2788_v51  ;;  %v2758_v3 = vadd.f32 %v5795_v57, %v2718_v41  ;;  %v2647_v35 = vpop.permute.xlu0 %2646  ;;  %v6348_v51 = vld [vmem:[#allocation34_spill] sm:$0xff]  ;;  %4423 = vmatprep.subr.bf16.mxu1 %v4501_v58 }
 0x5ca   : > { %v2791_v2 = vmax.f32 %v2759_v53, 0.0  ;;  %v2721_v18 = vadd.f32 %v2647_v35, %v6341_v9  ;;  %v2645_v25 = vpop.permute.xlu1 %2644  ;;  %4424 = vmatpush3.bf16.msra.mxu1 %v4501_v58 }
 0x5cb   : > { %v2790_v54 = vmax.f32 %v2758_v3, 0.0  ;;  %v2720_v1 = vadd.f32 %v2645_v25, %v6342_v26  ;;  %2860 = vrot.lane.b32.xlu1 %v2812_v10, %s4621_s21  ;;  %v6350_v25 = vld [vmem:[#allocation33_spill] sm:$0xff] }
 0x5cc   : > { %v2761_v15 = vadd.f32 %v5795_v57, %v2721_v18 }
 0x5cd   : > { %v2813_v62 = vpack.c.bf16 %v2791_v2, %v2790_v54  ;;  %v2760_v55 = vadd.f32 %v5795_v57, %v2720_v1  ;;  %v2651_v12 = vpop.permute.xlu0 %2650 }
 0x5ce   : > { %v2793_v40 = vmax.f32 %v2761_v15, 0.0  ;;  %v2723_v29 = vadd.f32 %v6343_v30, %v2651_v12  ;;  %v2649_v17 = vpop.permute.xlu1 %2648 }
 0x5cf   : > { %v2792_v44 = vmax.f32 %v2760_v55, 0.0  ;;  %v2722_v22 = vadd.f32 %v6344_v6, %v2649_v17  ;;  %2862 = vrot.lane.b32.xlu0 %v2813_v62, %s4621_s21 }
 0x5d0   : > { %v2763_v5 = vadd.f32 %v5795_v57, %v2723_v29 }
 0x5d1   : > { %v2814_v7 = vpack.c.bf16 %v2793_v40, %v2792_v44  ;;  %v2762_v24 = vadd.f32 %v5795_v57, %v2722_v22  ;;  %v2655_v34 = vpop.permute.xlu0 %2654 }
 0x5d2   : > { %v2795_v38 = vmax.f32 %v2763_v5, 0.0  ;;  %v2725_v27 = vadd.f32 %v2655_v34, %v5052_v39  ;;  %v2653_v52 = vpop.permute.xlu1 %2652 }
 0x5d3   : > { %v2794_v11 = vmax.f32 %v2762_v24, 0.0  ;;  %v2724_v14 = vadd.f32 %v2653_v52, %v6345_v21  ;;  %2864 = vrot.lane.b32.xlu1 %v2814_v7, %s4621_s21  ;;  %v4502_v21 = vld [vmem:[%s6250_s12 + $0x8] sm:$0xff]  }
 0x5d4   : > { %v2765_v23 = vadd.f32 %v5795_v57, %v2725_v27  ;;  %4425 = vmatprep.subr.bf16.mxu1 %v4502_v21 }
 0x5d5   : > { %v2815_v28 = vpack.c.bf16 %v2795_v38, %v2794_v11  ;;  %v2764_v59 = vadd.f32 %v5795_v57, %v2724_v14  ;;  %v2659_v46 = vpop.permute.xlu0 %2658  ;;  %4426 = vmatpush3.bf16.msra.mxu1 %v4502_v21  ;;  %v5899_v14 = vrot.slane %v5750_v42, %v5111_v37 }
 0x5d6   : > { %v2797_v45 = vmax.f32 %v2765_v23, 0.0  ;;  %v2727_v31 = vadd.f32 %v6346_v60, %v2659_v46  ;;  %v2657_v16 = vpop.permute.xlu1 %2656 }
 0x5d7   : > { %v2796_v49 = vmax.f32 %v2764_v59, 0.0  ;;  %v2726_v56 = vadd.f32 %v6347_v13, %v2657_v16  ;;  %2866 = vrot.lane.b32.xlu0 %v2815_v28, %s4621_s21 }
 0x5d8   : > { %v2767_v39 = vadd.f32 %v5795_v57, %v2727_v31 }
 0x5d9   : > { %v2816_v48 = vpack.c.bf16 %v2797_v45, %v2796_v49  ;;  %v2766_v8 = vadd.f32 %v5795_v57, %v2726_v56  ;;  %v2663_v33 = vpop.permute.xlu0 %2662 }
 0x5da   : > { %v2799_v19 = vmax.f32 %v2767_v39, 0.0  ;;  %v2729_v63 = vadd.f32 %v2663_v33, %v5068_v47  ;;  %v2661_v50 = vpop.permute.xlu1 %2660  ;;  %v6349_v47 = vld [vmem:[#allocation35_spill] sm:$0xff] }
 0x5db   : > { %v2798_v61 = vmax.f32 %v2766_v8, 0.0  ;;  %v2728_v36 = vadd.f32 %v2661_v50, %v6348_v51  ;;  %2868 = vrot.lane.b32.xlu1 %v2816_v48, %s4621_s21 }
 0x5dc   : > { %v2769_v41 = vadd.f32 %v5795_v57, %v2729_v63 }
 0x5dd   : > { %v2817_v53 = vpack.c.bf16 %v2799_v19, %v2798_v61  ;;  %v2768_v10 = vadd.f32 %v5795_v57, %v2728_v36  ;;  %v2667_v3 = vpop.permute.xlu0 %2666 }
 0x5de   : > { %v2801_v35 = vmax.f32 %v2769_v41, 0.0  ;;  %v2731_v2 = vadd.f32 %v6349_v47, %v2667_v3  ;;  %v2665_v9 = vpop.permute.xlu1 %2664 }
 0x5df   : > { %v2800_v18 = vmax.f32 %v2768_v10, 0.0  ;;  %v2730_v54 = vadd.f32 %v6350_v25, %v2665_v9  ;;  %2870 = vrot.lane.b32.xlu0 %v2817_v53, %s4621_s21 }
 0x5e0   : > { %v2771_v26 = vadd.f32 %v5795_v57, %v2731_v2 }
 0x5e1   : > { %v2818_v1 = vpack.c.bf16 %v2801_v35, %v2800_v18  ;;  %v2770_v15 = vadd.f32 %v5795_v57, %v2730_v54 }
 0x5e2   : > { %v2803_v62 = vmax.f32 %v2771_v26, 0.0 }
 0x5e3   : > { %v2802_v55 = vmax.f32 %v2770_v15, 0.0  ;;  %2872 = vrot.lane.b32.xlu1 %v2818_v1, %s4621_s21 }
 0x5e5   : > { %v2819_v12 = vpack.c.bf16 %v2803_v62, %v2802_v55 }
 0x5e7   : > { %2874 = vrot.lane.b32.xlu0 %v2819_v12, %s4621_s21  ;;  %s6354_s21 = sld [smem:[#allocation38_spill]] (!%p4050_p11) }
 0x61d   : > { %v2845_v40 = vpop.permute.xlu1 %2844 }
 0x61e   : > { %4391 = vmatprep.mubr.msk.bf16.mxu0 %vm2888_vm3, %v2845_v40 }
 0x621   : > { %v2847_v30 = vpop.permute.xlu0 %2846 }
 0x622   : > { %4392 = vmatmul.mubr.msk.bf16.vlgmr.msra.gmra.mrb[68].mxu0 %vm2888_vm3, %v2847_v30 }
 0x625   : > { %v2849_v29 = vpop.permute.xlu1 %2848 }
 0x626   : > { %4395 = vmatprep.mubr.msk.bf16.mxu0 %vm2888_vm3, %v2849_v29 }
 0x629   : > { %v2851_v17 = vpop.permute.xlu0 %2850 }
 0x62a   : > { %4396 = vmatmul.mubr.msk.bf16.gmra.mrb[72].mxu0 %vm2888_vm3, %v2851_v17 }
 0x62d   : > { %v2853_v57 = vpop.permute.xlu1 %2852 }
 0x62e   : > { %4399 = vmatprep.mubr.msk.bf16.mxu0 %vm2888_vm3, %v2853_v57 }
 0x631   : > { %v2855_v44 = vpop.permute.xlu0 %2854 }
 0x632   : > { %4400 = vmatmul.mubr.msk.bf16.gmra.mrb[76].mxu0 %vm2888_vm3, %v2855_v44 }
 0x635   : > { %v2857_v6 = vpop.permute.xlu1 %2856 }
 0x636   : > { %4403 = vmatprep.mubr.msk.bf16.mxu0 %vm2888_vm3, %v2857_v6 }
 0x639   : > { %v2859_v22 = vpop.permute.xlu0 %2858 }
 0x63a   : > { %4404 = vmatmul.mubr.msk.bf16.gmra.mrb[80].mxu0 %vm2888_vm3, %v2859_v22 }
 0x63d   : > { %v2861_v5 = vpop.permute.xlu1 %2860 }
 0x63e   : > { %4407 = vmatprep.mubr.msk.bf16.mxu0 %vm2888_vm3, %v2861_v5 }
 0x641   : > { %v2863_v7 = vpop.permute.xlu0 %2862 }
 0x642   : > { %4408 = vmatmul.mubr.msk.bf16.gmra.mrb[84].mxu0 %vm2888_vm3, %v2863_v7 }
 0x645   : > { %v2865_v24 = vpop.permute.xlu1 %2864 }
 0x646   : > { %4411 = vmatprep.mubr.msk.bf16.mxu0 %vm2888_vm3, %v2865_v24 }
 0x649   : > { %v2867_v34 = vpop.permute.xlu0 %2866 }
 0x64a   : > { %4412 = vmatmul.mubr.msk.bf16.gmra.mrb[88].mxu0 %vm2888_vm3, %v2867_v34 }
 0x64d   : > { %v2869_v38 = vpop.permute.xlu1 %2868 }
 0x64e   : > { %4415 = vmatprep.mubr.msk.bf16.mxu0 %vm2888_vm3, %v2869_v38 }
 0x651   : > { %v2871_v27 = vpop.permute.xlu0 %2870 }
 0x652   : > { %4416 = vmatmul.mubr.msk.bf16.gmra.mrb[92].mxu0 %vm2888_vm3, %v2871_v27 }
 0x655   : > { %v2873_v52 = vpop.permute.xlu1 %2872 }
 0x656   : > { %4419 = vmatprep.mubr.msk.bf16.mxu0 %vm2888_vm3, %v2873_v52 }
 0x659   : > { %v2875_v11 = vpop.permute.xlu0 %2874 }
 0x65a   : > { %4420 = vmatmul.mubr.msk.bf16.gmra.mrb[96].mxu0 %vm2888_vm3, %v2875_v11 }
 0x6f5   : > { %v4393_v23 = vpop.f32.mrb[68].mxu0 }
 0x6f6   : > { %v2980_v28 = vadd.f32 %v4393_v23, %v5899_v14  ;;  %v2971_v59 = vpop.f32.mrb[69].mxu0 }
 0x6f7   : > { %v2972_v46 = vadd.f32 %v2971_v59, %v5899_v14  ;;  %v4394_v45 = vpop.f32.mrb[70].mxu0 }
 0x6f8   : > { %v2983_v60 = vadd.f32 %v4394_v45, %v5899_v14  ;;  %v2974_v31 = vpop.f32.mrb[71].mxu0  ;;  %v3100_v49 = vmax.f32 %v2980_v28, 0.0 }
 0x6f9   : > { %v2975_v16 = vadd.f32 %v2974_v31, %v5899_v14  ;;  %v3098_v56 = vmax.f32 %v2972_v46, 0.0 }
 0x6fa   : > { %v3101_v13 = vmax.f32 %v2983_v60, 0.0 }
 0x6fb   : > { %v3099_v39 = vmax.f32 %v2975_v16, 0.0 }
 0x6fc   : > { %v3131_v48 = vpack.c.bf16 %v3101_v13, %v3100_v49 }
 0x6fd   : > { %v3130_v8 = vpack.c.bf16 %v3099_v39, %v3098_v56  ;;  %v4397_v33 = vpop.f32.mrb[72].mxu0 }
 0x6fe   : > { %v2996_v19 = vadd.f32 %v4397_v33, %v5899_v14  ;;  %v2987_v63 = vpop.f32.mrb[73].mxu0 }
 0x6ff   : > { %v2988_v50 = vadd.f32 %v2987_v63, %v5899_v14  ;;  %v4398_v58 = vpop.f32.mrb[74].mxu0  ;;  %4427 = vmatprep.mubr.msk.bf16.mxu1 %vm2888_vm3, %v3130_v8 }
 0x700   : > { %v2999_v61 = vadd.f32 %v4398_v58, %v5899_v14  ;;  %v2990_v51 = vpop.f32.mrb[75].mxu0  ;;  %4428 = vmatmul.mubr.msk.bf16.vlgmr.msra.gmra.mrb[92].mxu1 %vm2888_vm3, %v3131_v48  ;;  %v3104_v41 = vmax.f32 %v2996_v19, 0.0 }
 0x701   : > { %v2991_v36 = vadd.f32 %v2990_v51, %v5899_v14  ;;  %v3102_v10 = vmax.f32 %v2988_v50, 0.0 }
 0x702   : > { %v3105_v53 = vmax.f32 %v2999_v61, 0.0 }
 0x703   : > { %v3103_v3 = vmax.f32 %v2991_v36, 0.0 }
 0x704   : > { %v3133_v35 = vpack.c.bf16 %v3105_v53, %v3104_v41 }
 0x705   : > { %v3132_v47 = vpack.c.bf16 %v3103_v3, %v3102_v10  ;;  %v4401_v2 = vpop.f32.mrb[76].mxu0 }
 0x706   : > { %v3012_v9 = vadd.f32 %v4401_v2, %v5899_v14  ;;  %v3003_v18 = vpop.f32.mrb[77].mxu0 }
 0x707   : > { %v3004_v25 = vadd.f32 %v3003_v18, %v5899_v14  ;;  %v4402_v54 = vpop.f32.mrb[78].mxu0  ;;  %4431 = vmatprep.mubr.msk.bf16.mxu1 %vm2888_vm3, %v3132_v47 }
 0x708   : > { %v3015_v26 = vadd.f32 %v4402_v54, %v5899_v14  ;;  %v3006_v1 = vpop.f32.mrb[79].mxu0  ;;  %4432 = vmatmul.mubr.msk.bf16.gmra.mrb[96].mxu1 %vm2888_vm3, %v3133_v35  ;;  %v3108_v62 = vmax.f32 %v3012_v9, 0.0 }
 0x709   : > { %v3007_v15 = vadd.f32 %v3006_v1, %v5899_v14  ;;  %v3106_v12 = vmax.f32 %v3004_v25, 0.0 }
 0x70a   : > { %v3109_v55 = vmax.f32 %v3015_v26, 0.0 }
 0x70b   : > { %v3107_v40 = vmax.f32 %v3007_v15, 0.0 }
 0x70c   : > { %v3135_v30 = vpack.c.bf16 %v3109_v55, %v3108_v62 }
 0x70d   : > { %v3134_v29 = vpack.c.bf16 %v3107_v40, %v3106_v12  ;;  %v4405_v17 = vpop.f32.mrb[80].mxu0 }
 0x70e   : > { %v3028_v57 = vadd.f32 %v4405_v17, %v5899_v14  ;;  %v3019_v44 = vpop.f32.mrb[81].mxu0 }
 0x70f   : > { %v3020_v6 = vadd.f32 %v3019_v44, %v5899_v14  ;;  %v4406_v22 = vpop.f32.mrb[82].mxu0  ;;  %4435 = vmatprep.mubr.msk.bf16.mxu1 %vm2888_vm3, %v3134_v29 }
 0x710   : > { %v3031_v5 = vadd.f32 %v4406_v22, %v5899_v14  ;;  %v3022_v7 = vpop.f32.mrb[83].mxu0  ;;  %4436 = vmatmul.mubr.msk.bf16.gmra.mrb[100].mxu1 %vm2888_vm3, %v3135_v30  ;;  %v3112_v34 = vmax.f32 %v3028_v57, 0.0 }
 0x711   : > { %v3023_v24 = vadd.f32 %v3022_v7, %v5899_v14  ;;  %v3110_v27 = vmax.f32 %v3020_v6, 0.0 }
 0x712   : > { %v3113_v38 = vmax.f32 %v3031_v5, 0.0 }
 0x713   : > { %v3111_v52 = vmax.f32 %v3023_v24, 0.0 }
 0x714   : > { %v3137_v11 = vpack.c.bf16 %v3113_v38, %v3112_v34 }
 0x715   : > { %v3136_v21 = vpack.c.bf16 %v3111_v52, %v3110_v27  ;;  %v4409_v23 = vpop.f32.mrb[84].mxu0 }
 0x716   : > { %v3044_v28 = vadd.f32 %v4409_v23, %v5899_v14  ;;  %v3035_v59 = vpop.f32.mrb[85].mxu0  ;;  %v3375_v23 = vld [vmem:[%s4728_s17] sm:$0x3]  ;;  %s3498_s17 = sld [smem:[#allocation4 + %s4718_s27]] }
 0x717   : > { %v3036_v46 = vadd.f32 %v3035_v59, %v5899_v14  ;;  %v4410_v45 = vpop.f32.mrb[86].mxu0  ;;  %4439 = vmatprep.mubr.msk.bf16.mxu1 %vm2888_vm3, %v3136_v21  ;;  %v5952_v59 = vrot.slane %v3375_v23, %v6324_v0 }
 0x718   : > { %v3047_v60 = vadd.f32 %v4410_v45, %v5899_v14  ;;  %v3038_v31 = vpop.f32.mrb[87].mxu0  ;;  %4440 = vmatmul.mubr.msk.bf16.gmra.mrb[104].mxu1 %vm2888_vm3, %v3137_v11  ;;  %v3116_v49 = vmax.f32 %v3044_v28, 0.0  ;;  %v3378_v28 = vadd.s32 8, %v4922_v20 }
 0x719   : > { %v3039_v16 = vadd.f32 %v3038_v31, %v5899_v14  ;;  %v3114_v56 = vmax.f32 %v3036_v46, 0.0  ;;  %v5955_v46 = vrot.slane %v3375_v23, %v5111_v37  ;;  %vm3390_vm7 = vcmp.eq.s32.totalorder %v4922_v20, %v5952_v59 }
 0x71a   : > { %v3117_v13 = vmax.f32 %v3047_v60, 0.0  ;;  %vm3392_vm5 = vcmp.eq.s32.totalorder %v3378_v28, %v5952_v59  ;;  %v5971_v37 = vrot.slane %v5750_v42, %v1569_v43 }
 0x71b   : > { %v3115_v39 = vmax.f32 %v3039_v16, 0.0  ;;  %vm3391_vm4 = vcmp.eq.s32.totalorder %v4922_v20, %v5955_v46  ;;  %vm3393_vm6 = vcmp.eq.s32.totalorder %v3378_v28, %v5955_v46  ;;  %vm5964_vm9 = vmpackc.low %vm3392_vm5, %vm3390_vm7 }
 0x71c   : > { %v3139_v48 = vpack.c.bf16 %v3117_v13, %v3116_v49  ;;  %vm4038_vm8 = vmpackc.low %vm3393_vm6, %vm3391_vm4  ;;  %s3499_s29 = scalar_lea.vmem [#allocation2], %s3498_s17 }
 0x71d   : > { %v3138_v8 = vpack.c.bf16 %v3115_v39, %v3114_v56  ;;  %v4413_v33 = vpop.f32.mrb[88].mxu0 }
 0x71e   : > { %v3060_v19 = vadd.f32 %v4413_v33, %v5899_v14  ;;  %v3051_v63 = vpop.f32.mrb[89].mxu0 }
 0x71f   : > { %v3052_v50 = vadd.f32 %v3051_v63, %v5899_v14  ;;  %v4414_v58 = vpop.f32.mrb[90].mxu0  ;;  %4443 = vmatprep.mubr.msk.bf16.mxu1 %vm2888_vm3, %v3138_v8 }
 0x720   : > { %v3063_v61 = vadd.f32 %v4414_v58, %v5899_v14  ;;  %v3054_v51 = vpop.f32.mrb[91].mxu0  ;;  %4444 = vmatmul.mubr.msk.bf16.gmra.mrb[108].mxu1 %vm2888_vm3, %v3139_v48  ;;  %v3120_v41 = vmax.f32 %v3060_v19, 0.0 }
 0x721   : > { %v3055_v36 = vadd.f32 %v3054_v51, %v5899_v14  ;;  %v3118_v10 = vmax.f32 %v3052_v50, 0.0 }
 0x722   : > { %v3121_v53 = vmax.f32 %v3063_v61, 0.0 }
 0x723   : > { %v3119_v3 = vmax.f32 %v3055_v36, 0.0 }
 0x724   : > { %v3141_v35 = vpack.c.bf16 %v3121_v53, %v3120_v41 }
 0x725   : > { %v3140_v47 = vpack.c.bf16 %v3119_v3, %v3118_v10  ;;  %v4417_v2 = vpop.f32.mrb[92].mxu0 }
 0x726   : > { %v3076_v9 = vadd.f32 %v4417_v2, %v5899_v14  ;;  %v3067_v18 = vpop.f32.mrb[93].mxu0 }
 0x727   : > { %v3068_v25 = vadd.f32 %v3067_v18, %v5899_v14  ;;  %v4418_v54 = vpop.f32.mrb[94].mxu0  ;;  %4447 = vmatprep.mubr.msk.bf16.mxu1 %vm2888_vm3, %v3140_v47 }
 0x728   : > { %v3079_v26 = vadd.f32 %v4418_v54, %v5899_v14  ;;  %v3070_v1 = vpop.f32.mrb[95].mxu0  ;;  %4448 = vmatmul.mubr.msk.bf16.gmra.mrb[112].mxu1 %vm2888_vm3, %v3141_v35  ;;  %v3124_v62 = vmax.f32 %v3076_v9, 0.0 }
 0x729   : > { %v3071_v15 = vadd.f32 %v3070_v1, %v5899_v14  ;;  %v3122_v12 = vmax.f32 %v3068_v25, 0.0 }
 0x72a   : > { %v3125_v55 = vmax.f32 %v3079_v26, 0.0 }
 0x72b   : > { %v3123_v40 = vmax.f32 %v3071_v15, 0.0 }
 0x72c   : > { %v3143_v30 = vpack.c.bf16 %v3125_v55, %v3124_v62 }
 0x72d   : > { %v3142_v29 = vpack.c.bf16 %v3123_v40, %v3122_v12  ;;  %v4421_v17 = vpop.f32.mrb[96].mxu0 }
 0x72e   : > { %v3092_v57 = vadd.f32 %v4421_v17, %v5899_v14  ;;  %v3083_v44 = vpop.f32.mrb[97].mxu0 }
 0x72f   : > { %v3084_v6 = vadd.f32 %v3083_v44, %v5899_v14  ;;  %v4422_v22 = vpop.f32.mrb[98].mxu0  ;;  %4451 = vmatprep.mubr.msk.bf16.mxu1 %vm2888_vm3, %v3142_v29 }
 0x730   : > { %v3095_v5 = vadd.f32 %v4422_v22, %v5899_v14  ;;  %v3086_v7 = vpop.f32.mrb[99].mxu0  ;;  %4452 = vmatmul.mubr.msk.bf16.gmra.mrb[116].mxu1 %vm2888_vm3, %v3143_v30  ;;  %v3128_v34 = vmax.f32 %v3092_v57, 0.0 }
 0x731   : > { %v3087_v24 = vadd.f32 %v3086_v7, %v5899_v14  ;;  %v3126_v27 = vmax.f32 %v3084_v6, 0.0  ;;  %v4622_v14 = vmov 1.0|1.0  }
 0x732   : > { %v3129_v38 = vmax.f32 %v3095_v5, 0.0  ;;  %4039 = vmatprep.mubr.msk.bf16.mxu0 %vm4038_vm8, %v4622_v14 }
 0x733   : > { %v3127_v52 = vmax.f32 %v3087_v24, 0.0 }
 0x734   : > { %v3145_v11 = vpack.c.bf16 %v3129_v38, %v3128_v34 }
 0x735   : > { %v3144_v21 = vpack.c.bf16 %v3127_v52, %v3126_v27 }
 0x737   : > { %4455 = vmatprep.mubr.msk.bf16.mxu1 %vm2888_vm3, %v3144_v21 }
 0x738   : > { %4456 = vmatmul.mubr.msk.bf16.gmra.mrb[120].mxu1 %vm2888_vm3, %v3145_v11 }
 0x7d3   : > { %v4429_v45 = vpop.f32.mrb[92].mxu1 }
 0x7d4   : > { %v3257_v60 = vadd.f32 %v4429_v45, %v5971_v37  ;;  %v3248_v31 = vpop.f32.mrb[93].mxu1 }
 0x7d5   : > { %v3249_v16 = vadd.f32 %v3248_v31, %v5971_v37  ;;  %v4430_v49 = vpop.f32.mrb[94].mxu1 }
 0x7d6   : > { %v3260_v13 = vadd.f32 %v4430_v49, %v5971_v37  ;;  %v3251_v56 = vpop.f32.mrb[95].mxu1 }
 0x7d7   : > { %v3252_v39 = vadd.f32 %v3251_v56, %v5971_v37 }
 0x7d8   : > { %v3427_v48 = vpack.c.bf16 %v3260_v13, %v3257_v60 }
 0x7d9   : > { %v3426_v8 = vpack.c.bf16 %v3252_v39, %v3249_v16 }
 0x7db   : > { %v4433_v33 = vpop.f32.mrb[96].mxu1 }
 0x7dc   : > { %v5978_v19 = vadd.f32 %v4433_v33, %v5971_v37  ;;  %v3264_v43 = vpop.f32.mrb[97].mxu1 }
 0x7dd   : > { %v3265_v63 = vadd.f32 %v3264_v43, %v5971_v37  ;;  %v4434_v50 = vpop.f32.mrb[98].mxu1 }
 0x7de   : > { %v3276_v58 = vadd.f32 %v4434_v50, %v5971_v37  ;;  %v3267_v61 = vpop.f32.mrb[99].mxu1 }
 0x7df   : > { %v3268_v51 = vadd.f32 %v3267_v61, %v5971_v37 }
 0x7e0   : > { %v3429_v36 = vpack.c.bf16 %v3276_v58, %v5978_v19 }
 0x7e1   : > { %v3428_v41 = vpack.c.bf16 %v3268_v51, %v3265_v63 }
 0x7e3   : > { %v4437_v53 = vpop.f32.mrb[100].mxu1 }
 0x7e4   : > { %v5985_v10 = vadd.f32 %v4437_v53, %v5971_v37  ;;  %v3280_v3 = vpop.f32.mrb[101].mxu1 }
 0x7e5   : > { %v3281_v35 = vadd.f32 %v3280_v3, %v5971_v37  ;;  %v4438_v47 = vpop.f32.mrb[102].mxu1 }
 0x7e6   : > { %v5989_v2 = vadd.f32 %v4438_v47, %v5971_v37  ;;  %v3283_v9 = vpop.f32.mrb[103].mxu1 }
 0x7e7   : > { %v3284_v18 = vadd.f32 %v3283_v9, %v5971_v37  ;;  %v3380_v9 = vadd.s32 24, %v4922_v20 }
 0x7e8   : > { %v3431_v25 = vpack.c.bf16 %v5989_v2, %v5985_v10 }
 0x7e9   : > { %v3430_v54 = vpack.c.bf16 %v3284_v18, %v3281_v35  ;;  %vm3397_vm11 = vcmp.eq.s32.totalorder %v3380_v9, %v5955_v46  ;;  %v3381_v18 = vadd.s32 32, %v4922_v20  ;;  %vm3396_vm14 = vcmp.eq.s32.totalorder %v3380_v9, %v5952_v59  ;;  %v3602_v9 = vld [vmem:[%s6353_s28 + $0x18] sm:$0xff] (!%p4050_p11) }
 0x7eb   : > { %v4441_v26 = vpop.f32.mrb[104].mxu1  ;;  %vm3399_vm15 = vcmp.eq.s32.totalorder %v3381_v18, %v5955_v46  ;;  %vm3398_vm2 = vcmp.eq.s32.totalorder %v3381_v18, %v5952_v59 }
 0x7ec   : > { %v5995_v1 = vadd.f32 %v4441_v26, %v5971_v37  ;;  %v3296_v15 = vpop.f32.mrb[105].mxu1  ;;  %vm4046_vm1 = vmpackc.low %vm3399_vm15, %vm3399_vm15 }
 0x7ed   : > { %v3297_v62 = vadd.f32 %v3296_v15, %v5971_v37  ;;  %v4442_v55 = vpop.f32.mrb[106].mxu1  ;;  %vm4048_vm4 = vmpackc.low %vm3398_vm2, %vm3398_vm2 }
 0x7ee   : > { %v5999_v12 = vadd.f32 %v4442_v55, %v5971_v37  ;;  %v3299_v40 = vpop.f32.mrb[107].mxu1 }
 0x7ef   : > { %v3300_v30 = vadd.f32 %v3299_v40, %v5971_v37  ;;  %v3502_v40 = vld [vmem:[%s3499_s29 + $0x10] sm:$0xff] }
 0x7f0   : > { %v3433_v29 = vpack.c.bf16 %v5999_v12, %v5995_v1 }
 0x7f1   : > { %v3432_v17 = vpack.c.bf16 %v3300_v30, %v3297_v62 }
 0x7f3   : > { %v4445_v57 = vpop.f32.mrb[108].mxu1 }
 0x7f4   : > { %v3321_v44 = vadd.f32 %v4445_v57, %v5971_v37  ;;  %v3312_v6 = vpop.f32.mrb[109].mxu1 }
 0x7f5   : > { %v3313_v22 = vadd.f32 %v3312_v6, %v5971_v37  ;;  %v4446_v5 = vpop.f32.mrb[110].mxu1 }
 0x7f6   : > { %v3324_v7 = vadd.f32 %v4446_v5, %v5971_v37  ;;  %v3315_v24 = vpop.f32.mrb[111].mxu1 }
 0x7f7   : > { %v3316_v34 = vadd.f32 %v3315_v24, %v5971_v37 }
 0x7f8   : > { %v3435_v38 = vpack.c.bf16 %v3324_v7, %v3321_v44  ;;  %v3504_v7 = vld [vmem:[%s3499_s29 + $0x20] sm:$0xff] }
 0x7f9   : > { %v3434_v27 = vpack.c.bf16 %v3316_v34, %v3313_v22 }
 0x7fb   : > { %v4449_v52 = vpop.f32.mrb[112].mxu1  ;;  %4177 = vmatprep.subr.bf16.mxu0 %v3434_v27 }
 0x7fc   : > { %v3337_v11 = vadd.f32 %v4449_v52, %v5971_v37  ;;  %v3328_v21 = vpop.f32.mrb[113].mxu1  ;;  %4178 = vmatpush3.bf16.msra.mxu0 %v3426_v8  ;;  %v3531_v52 = vld [vmem:[%s6243_s5 + $0x10] sm:$0xff] (!%p4050_p11) }
 0x7fd   : > { %v3329_v23 = vadd.f32 %v3328_v21, %v5971_v37  ;;  %v4450_v28 = vpop.f32.mrb[114].mxu1  ;;  %4179 = vmatprep.subr.bf16.mxu0 %v3435_v38  ;;  %v4623_v21 = vmov (!%p4050_p11), 0  }
 0x7fe   : > { %v3340_v45 = vadd.f32 %v4450_v28, %v5971_v37  ;;  %v3331_v60 = vpop.f32.mrb[115].mxu1  ;;  %4575 = vset.pattern.permute.xlu1 (!%p4050_p11), %v4623_v21  ;;  %4574 = vset.pattern.permute.xlu0 (!%p4050_p11), %v4623_v21  ;;  %v3530_v28 = vld [vmem:[%s6243_s5 + $0x8] sm:$0xff] (!%p4050_p11) }
 0x7ff   : > { %v3332_v31 = vadd.f32 %v3331_v60, %v5971_v37  ;;  %3551 = vperm.xlu1 (!%p4050_p11), %4575, %v3531_v52   ;;  %v3533_v60 = vld [vmem:[%s6243_s5 + $0x20] sm:$0xff] (!%p4050_p11) }
 0x800   : > { %v3437_v16 = vpack.c.bf16 %v3340_v45, %v3337_v11  ;;  %4180 = vmatpush3.bf16.msra.mxu0 %v3427_v48  ;;  %v3529_v11 = vld [vmem:[%s6243_s5] sm:$0xff] (!%p4050_p11)  ;;  %v3534_v45 = vld [vmem:[%s6243_s5 + $0x28] sm:$0xff] (!%p4050_p11) }
 0x801   : > { %v3436_v49 = vpack.c.bf16 %v3332_v31, %v3329_v23  ;;  %3541 = vperm.xlu0 (!%p4050_p11), %4574, %v3529_v11   ;;  %v3532_v23 = vld [vmem:[%s6243_s5 + $0x18] sm:$0xff] (!%p4050_p11)  ;;  %v3607_v52 = vld [vmem:[%s6353_s28 + $0x40] sm:$0xff] (!%p4050_p11) }
 0x802   : > { %v3536_v31 = vld [vmem:[%s6243_s5 + $0x38] sm:$0xff] (!%p4050_p11) }
 0x803   : > { %v4453_v13 = vpop.f32.mrb[116].mxu1  ;;  %4181 = vmatprep.subr.bf16.mxu0 %v3436_v49  ;;  %3556 = vperm.xlu1 (!%p4050_p11), %4575, %v3532_v23   ;;  %v3538_v49 = vld [vmem:[%s6243_s5 + $0x48] sm:$0xff] (!%p4050_p11) }
 0x804   : > { %v3353_v56 = vadd.f32 %v4453_v13, %v5971_v37  ;;  %v3344_v39 = vpop.f32.mrb[117].mxu1  ;;  %4182 = vmatpush3.bf16.msra.mxu0 %v3428_v41  ;;  %v3537_v13 = vld [vmem:[%s6243_s5 + $0x40] sm:$0xff] (!%p4050_p11) }
 0x805   : > { %v3345_v8 = vadd.f32 %v3344_v39, %v5971_v37  ;;  %v4454_v33 = vpop.f32.mrb[118].mxu1  ;;  %4183 = vmatprep.subr.bf16.mxu0 %v3437_v16  ;;  %3546 = vperm.xlu0 (!%p4050_p11), %4574, %v3530_v28   ;;  %v3535_v16 = vld [vmem:[%s6243_s5 + $0x30] sm:$0xff] (!%p4050_p11) }
 0x806   : > { %v3356_v19 = vadd.f32 %v4454_v33, %v5971_v37  ;;  %v3347_v43 = vpop.f32.mrb[119].mxu1 }
 0x807   : > { %v3348_v63 = vadd.f32 %v3347_v43, %v5971_v37  ;;  %3566 = vperm.xlu1 (!%p4050_p11), %4575, %v3534_v45   ;;  %v3601_v43 = vld [vmem:[%s6353_s28 + $0x10] sm:$0xff] (!%p4050_p11)  ;;  %v3608_v45 = vld [vmem:[%s6353_s28 + $0x48] sm:$0xff] (!%p4050_p11) }
 0x808   : > { %v3439_v50 = vpack.c.bf16 %v3356_v19, %v3353_v56  ;;  %4184 = vmatpush3.bf16.msra.mxu0 %v3429_v36  ;;  %v3379_v36 = vadd.s32 16, %v4922_v20  ;;  %v3599_v19 = vld [vmem:[%s6353_s28] sm:$0xff] (!%p4050_p11) }
 0x809   : > { %v3438_v58 = vpack.c.bf16 %v3348_v63, %v3345_v8  ;;  %3561 = vperm.xlu0 (!%p4050_p11), %4574, %v3533_v60  }
 0x80a   : > { %vm3395_vm10 = vcmp.eq.s32.totalorder %v3379_v36, %v5955_v46  ;;  %vm3394_vm13 = vcmp.eq.s32.totalorder %v3379_v36, %v5952_v59  ;;  %v3501_v46 = vld [vmem:[%s3499_s29 + $0x8] sm:$0xff] }
 0x80b   : > { %v4457_v48 = vpop.f32.mrb[120].mxu1  ;;  %4185 = vmatprep.subr.bf16.mxu0 %v3438_v58  ;;  %vm4042_vm12 = vmpackc.low %vm3397_vm11, %vm3395_vm10  ;;  %3576 = vperm.xlu1 (!%p4050_p11), %4575, %v3536_v31  }
 0x80c   : > { %v3369_v61 = vadd.f32 %v4457_v48, %v5971_v37  ;;  %v3360_v51 = vpop.f32.mrb[121].mxu1  ;;  %4186 = vmatpush3.bf16.msra.mxu0 %v3430_v54  ;;  %vm4044_vm0 = vmpackc.low %vm3396_vm14, %vm3394_vm13 }
 0x80d   : > { %v3361_v41 = vadd.f32 %v3360_v51, %v5971_v37  ;;  %v4458_v53 = vpop.f32.mrb[122].mxu1  ;;  %4187 = vmatprep.subr.bf16.mxu0 %v3439_v50  ;;  %3571 = vperm.xlu0 (!%p4050_p11), %4574, %v3535_v16  }
 0x80e   : > { %v3372_v10 = vadd.f32 %v4458_v53, %v5971_v37  ;;  %v3363_v3 = vpop.f32.mrb[123].mxu1 }
 0x80f   : > { %v3364_v35 = vadd.f32 %v3363_v3, %v5971_v37  ;;  %3586 = vperm.xlu1 (!%p4050_p11), %4575, %v3538_v49  }
 0x810   : > { %v3441_v47 = vpack.c.bf16 %v3372_v10, %v3369_v61  ;;  %4188 = vmatpush3.bf16.msra.mxu0 %v3431_v25  ;;  %v3500_v25 = vld [vmem:[%s3499_s29] sm:$0xff]  ;;  %v3600_v10 = vld [vmem:[%s6353_s28 + $0x8] sm:$0xff] (!%p4050_p11) }
 0x811   : > { %v3440_v2 = vpack.c.bf16 %v3364_v35, %v3361_v41  ;;  %3581 = vperm.xlu0 (!%p4050_p11), %4574, %v3537_v13  }
 0x813   : > { %4189 = vmatprep.subr.bf16.mxu0 %v3440_v2 }
 0x814   : > { %4190 = vmatpush3.bf16.msra.mxu0 %v3432_v17  ;;  %v3503_v17 = vld [vmem:[%s3499_s29 + $0x18] sm:$0xff] }
 0x815   : > { %4191 = vmatprep.subr.bf16.mxu0 %v3441_v47 }
 0x818   : > { %4192 = vmatpush3.bf16.msra.mxu0 %v3433_v29 }
 0x81b   : > { %4041 = vmatmul.mubr.msk.bf16.vlgmr.msra.gmra.mrb[100].mxu0 %vm5964_vm9, %v4622_v14 }
 0x81c   : > { %4043 = vmatprep.mubr.msk.bf16.mxu0 %vm4042_vm12, %v4622_v14 }
 0x823   : > { %4045 = vmatmul.mubr.msk.bf16.gmra.mrb[104].mxu0 %vm4044_vm0, %v4622_v14 }
 0x824   : > { %4047 = vmatprep.mubr.msk.bf16.mxu0 %vm4046_vm1, %v4622_v14 }
 0x82b   : > { %4049 = vmatmul.mubr.msk.bf16.gmra.mrb[108].mxu0 %vm4048_vm4, %v4622_v14 }
 0x87e   : > { %v3552_v8 = vpop.permute.xlu1 (!%p4050_p11), %3551 }
 0x880   : > { %v3542_v33 = vpop.permute.xlu0 (!%p4050_p11), %3541 }
 0x882   : > { %v3557_v41 = vpop.permute.xlu1 (!%p4050_p11), %3556 }
 0x884   : > { %v3547_v53 = vpop.permute.xlu0 (!%p4050_p11), %3546 }
 0x8ee   : > { %v4193_v0 = vpop.f32.mrb[100].mxu0 }
 0x8ef   : > { %v4194_v37 = vpop.f32.mrb[101].mxu0 }
 0x8f0   : > { %v4195_v54 = vadd.f32 %v4194_v37, %v4193_v0  ;;  %v4196_v26 = vpop.f32.mrb[102].mxu0  ;;  %v3567_v37 = vpop.permute.xlu1 (!%p4050_p11), %3566 }
 0x8f1   : > { %v4197_v1 = vpop.f32.mrb[103].mxu0 }
 0x8f2   : > { %v3505_v15 = vadd.f32 %v4195_v54, %v3500_v25  ;;  %v4198_v62 = vadd.f32 %v4197_v1, %v4196_v26  ;;  %v3562_v25 = vpop.permute.xlu0 (!%p4050_p11), %3561  ;;  %v3603_v54 = vld [vmem:[%s6353_s28 + $0x20] sm:$0xff] (!%p4050_p11) }
 0x8f4   : > { %3510 = vst.msk [vmem:[%s3499_s29] sm:$0xff] %vm2888_vm3, %v3505_v15  ;;  %v3506_v55 = vadd.f32 %v4198_v62, %v3501_v46  ;;  %v3604_v62 = vld [vmem:[%s6353_s28 + $0x28] sm:$0xff] (!%p4050_p11) }
 0x8f6   : > { %3511 = vst.msk [vmem:[%s3499_s29 + $0x8] sm:$0xff] %vm2888_vm3, %v3506_v55  ;;  %v4199_v59 = vpop.f32.mrb[104].mxu0 }
 0x8f7   : > { %v4200_v12 = vpop.f32.mrb[105].mxu0 }
 0x8f8   : > { %v4201_v14 = vadd.f32 %v4200_v12, %v4199_v59  ;;  %v4202_v30 = vpop.f32.mrb[106].mxu0 }
 0x8f9   : > { %v4203_v29 = vpop.f32.mrb[107].mxu0 }
 0x8fa   : > { %v3507_v57 = vadd.f32 %v4201_v14, %v3502_v40  ;;  %v4204_v44 = vadd.f32 %v4203_v29, %v4202_v30  ;;  %v3577_v40 = vpop.permute.xlu1 (!%p4050_p11), %3576  ;;  %v3572_v14 = vpop.permute.xlu0 (!%p4050_p11), %3571  ;;  %v3605_v30 = vld [vmem:[%s6353_s28 + $0x30] sm:$0xff] (!%p4050_p11) }
 0x8fc   : > { %3512 = vst.msk [vmem:[%s3499_s29 + $0x10] sm:$0xff] %vm2888_vm3, %v3507_v57  ;;  %v3508_v6 = vadd.f32 %v4204_v44, %v3503_v17 }
 0x8fe   : > { %3513 = vst.msk [vmem:[%s3499_s29 + $0x18] sm:$0xff] %vm2888_vm3, %v3508_v6  ;;  %v4205_v22 = vpop.f32.mrb[108].mxu0  ;;  %3518 = sbr.rel (%p4050_p11) target bundleno = 2654 (0xa5e), region = 84 }
 0x8ff   : > { %v4206_v5 = vpop.f32.mrb[109].mxu0 }
 0x900   : > { %v4207_v24 = vadd.f32 %v4206_v5, %v4205_v22  ;;  %v4208_v34 = vpop.f32.mrb[110].mxu0 }
 0x901   : > { %v4209_v38 = vpop.f32.mrb[111].mxu0  ;;  %v3587_v34 = vpop.permute.xlu1 (!%p4050_p11), %3586 }
 0x902   : > { %v3509_v27 = vadd.f32 %v4207_v24, %v3504_v7  ;;  %v3606_v7 = vld [vmem:[%s6353_s28 + $0x38] sm:$0xff] (!%p4050_p11)  ;;  %v3582_v38 = vpop.permute.xlu0 (!%p4050_p11), %3581 }
 0x904   : > { %3514 = vst.msk [vmem:[%s3499_s29 + $0x20] sm:$0xff] %vm2888_vm3, %v3509_v27 }
 0x90b   : > { %v3521_v56 = vld [vmem:[#allocation2 + $0x10] sm:$0xff]  ;;  %v3519_v39 = vld [vmem:[#allocation2] sm:$0xff]  ;;  %v3522_v58 = vld [vmem:[#allocation2 + $0x18] sm:$0xff] }
 0x90c   : > { %v3591_v63 = vmul.f32 %v3552_v8, %v3521_v56  ;;  %v3589_v50 = vmul.f32 %v3542_v33, %v3519_v39  ;;  %v3520_v48 = vld [vmem:[#allocation2 + $0x8] sm:$0xff]  ;;  %v3592_v3 = vmul.f32 %v3557_v41, %v3522_v58  ;;  %v3523_v36 = vld [vmem:[#allocation2 + $0x20] sm:$0xff]  ;;  %v3526_v55 = vld [vmem:[#allocation2 + $0x38] sm:$0xff] }
 0x90d   : > { %v3590_v35 = vmul.f32 %v3547_v53, %v3520_v48  ;;  %v3524_v2 = vld [vmem:[#allocation2 + $0x28] sm:$0xff]  ;;  %v3593_v1 = vmul.f32 %v3562_v25, %v3523_v36  ;;  %v3525_v59 = vld [vmem:[#allocation2 + $0x30] sm:$0xff]  ;;  %v3596_v17 = vmul.f32 %v3577_v40, %v3526_v55  ;;  %v3527_v5 = vld [vmem:[#allocation2 + $0x40] sm:$0xff] }
 0x90e   : > { %v3609_v61 = vadd.f32 %v3599_v19, %v3589_v50  ;;  %v6079_v51 = vadd.f32 %v3601_v43, %v3591_v63  ;;  %v3594_v26 = vmul.f32 %v3567_v37, %v3524_v2  ;;  %v3612_v15 = vadd.f32 %v3602_v9, %v3592_v3  ;;  %v3528_v22 = vld [vmem:[#allocation2 + $0x48] sm:$0xff] }
 0x90f   : > { %v3610_v18 = vadd.f32 %v3600_v10, %v3590_v35  ;;  %v3613_v12 = vadd.f32 %v3603_v54, %v3593_v1  ;;  %v3595_v57 = vmul.f32 %v3572_v14, %v3525_v59  ;;  %v3598_v11 = vmul.f32 %v3587_v34, %v3528_v22 }
 0x910   : > { %v3619_v47 = vsel %vm2888_vm3, %v3609_v61, 0.0  ;;  %v3625_v0 = vsel %vm2888_vm3, %v6079_v51, 0.0  ;;  %v3614_v29 = vadd.f32 %v3604_v62, %v3594_v26  ;;  %v3628_v6 = vsel %vm2888_vm3, %v3612_v15, 0.0 }
 0x911   : > { %3620 = vadd.xlane.f32.xlu0 %v3619_v47  ;;  %v3622_v46 = vsel %vm2888_vm3, %v3610_v18, 0.0  ;;  %v3631_v44 = vsel %vm2888_vm3, %v3613_v12, 0.0  ;;  %v3615_v24 = vadd.f32 %v3605_v30, %v3595_v57  ;;  %v3597_v21 = vmul.f32 %v3582_v38, %v3527_v5 }
 0x912   : > { %3623 = vadd.xlane.f32.xlu1 %v3622_v46  ;;  %v3634_v27 = vsel %vm2888_vm3, %v3614_v29, 0.0  ;;  %v3616_v28 = vadd.f32 %v3606_v7, %v3596_v17  ;;  %v3618_v49 = vadd.f32 %v3608_v45, %v3598_v11 }
 0x913   : > { %v3637_v23 = vsel %vm2888_vm3, %v3615_v24, 0.0  ;;  %v3617_v60 = vadd.f32 %v3607_v52, %v3597_v21 }
 0x914   : > { %v3640_v16 = vsel %vm2888_vm3, %v3616_v28, 0.0  ;;  %v3646_v13 = vsel %vm2888_vm3, %v3618_v49, 0.0 }
 0x915   : > { %3626 = vadd.xlane.f32.xlu0 %v3625_v0  ;;  %v3643_v31 = vsel %vm2888_vm3, %v3617_v60, 0.0 }
 0x916   : > { %3632 = vadd.xlane.f32.xlu1 %v3631_v44 }
 0x919   : > { %3629 = vadd.xlane.f32.xlu0 %v3628_v6 }
 0x91a   : > { %3638 = vadd.xlane.f32.xlu1 %v3637_v23 }
 0x91d   : > { %3635 = vadd.xlane.f32.xlu0 %v3634_v27 }
 0x91e   : > { %3644 = vadd.xlane.f32.xlu1 %v3643_v31 }
 0x921   : > { %3641 = vadd.xlane.f32.xlu0 %v3640_v16 }
 0x925   : > { %3647 = vadd.xlane.f32.xlu0 %v3646_v13 }
 0x99e   : > { %v3621_v56 = vpop.xlane.xlu0 %3620 }
 0x99f   : > { %v3650_v39 = vmul.f32 0.03125, %v3621_v56  ;;  %v3624_v33 = vpop.xlane.xlu1 %3623 }
 0x9a0   : > { %v3651_v43 = vmul.f32 0.03125, %v3624_v33 }
 0x9a1   : > { %v6116_v8 = vsub.f32 %v3609_v61, %v3650_v39 }
 0x9a2   : > { %v3627_v19 = vpop.xlane.xlu0 %3626  ;;  %v6120_v58 = vsub.f32 %v3610_v18, %v3651_v43 }
 0x9a3   : > { %v3652_v63 = vmul.f32 0.03125, %v3627_v19  ;;  %v3670_v50 = vmul.f32 %v6116_v8, %v6116_v8  ;;  %v3633_v53 = vpop.xlane.xlu1 %3632 }
 0x9a4   : > { %v3654_v3 = vmul.f32 0.03125, %v3633_v53  ;;  %v3671_v35 = vmul.f32 %v6120_v58, %v6120_v58 }
 0x9a5   : > { %v6123_v48 = vsub.f32 %v6079_v51, %v3652_v63  ;;  %v3680_v41 = vsel %vm2888_vm3, %v3670_v50, 0.0 }
 0x9a6   : > { %3681 = vadd.xlane.f32.xlu1 %v3680_v41  ;;  %v3630_v10 = vpop.xlane.xlu0 %3629  ;;  %v6130_v2 = vsub.f32 %v3613_v12, %v3654_v3  ;;  %v3683_v51 = vsel %vm2888_vm3, %v3671_v35, 0.0 }
 0x9a7   : > { %v3653_v61 = vmul.f32 0.03125, %v3630_v10  ;;  %v3672_v47 = vmul.f32 %v6123_v48, %v6123_v48  ;;  %v3639_v18 = vpop.xlane.xlu1 %3638  ;;  %3684 = vadd.xlane.f32.xlu0 %v3683_v51  ;;  %v6170_v10 = vrot.slane %v5750_v42, %v2237_v4 }
 0x9a8   : > { %v3656_v37 = vmul.f32 0.03125, %v3639_v18  ;;  %v3674_v54 = vmul.f32 %v6130_v2, %v6130_v2 }
 0x9a9   : > { %v6132_v36 = vsub.f32 %v3612_v15, %v3653_v61  ;;  %v3686_v9 = vsel %vm2888_vm3, %v3672_v47, 0.0  ;;  %v3767_v47 = vrot.slane %v5750_v42, %v2273_v32 }
 0x9aa   : > { %3687 = vadd.xlane.f32.xlu1 %v3686_v9  ;;  %v3636_v0 = vpop.xlane.xlu0 %3635  ;;  %v6140_v1 = vsub.f32 %v3615_v24, %v3656_v37  ;;  %v3692_v15 = vsel %vm2888_vm3, %v3674_v54, 0.0 }
 0x9ab   : > { %v3655_v25 = vmul.f32 0.03125, %v3636_v0  ;;  %v3673_v26 = vmul.f32 %v6132_v36, %v6132_v36  ;;  %v3645_v55 = vpop.xlane.xlu1 %3644 }
 0x9ac   : > { %v3658_v12 = vmul.f32 0.03125, %v3645_v55  ;;  %v3676_v14 = vmul.f32 %v6140_v1, %v6140_v1 }
 0x9ad   : > { %v6142_v46 = vsub.f32 %v3614_v29, %v3655_v25  ;;  %v3689_v62 = vsel %vm2888_vm3, %v3673_v26, 0.0 }
 0x9ae   : > { %3693 = vadd.xlane.f32.xlu1 %v3692_v15  ;;  %3690 = vadd.xlane.f32.xlu0 %v3689_v62  ;;  %v3642_v59 = vpop.xlane.xlu0 %3641  ;;  %v6150_v17 = vsub.f32 %v3617_v60, %v3658_v12  ;;  %v3698_v57 = vsel %vm2888_vm3, %v3676_v14, 0.0 }
 0x9af   : > { %v3657_v40 = vmul.f32 0.03125, %v3642_v59  ;;  %v3675_v30 = vmul.f32 %v6142_v46, %v6142_v46 }
 0x9b0   : > { %v3678_v5 = vmul.f32 %v6150_v17, %v6150_v17 }
 0x9b1   : > { %v6152_v29 = vsub.f32 %v3616_v28, %v3657_v40  ;;  %v3695_v44 = vsel %vm2888_vm3, %v3675_v30, 0.0 }
 0x9b2   : > { %3699 = vadd.xlane.f32.xlu1 %v3698_v57  ;;  %3696 = vadd.xlane.f32.xlu0 %v3695_v44  ;;  %v3648_v6 = vpop.xlane.xlu0 %3647  ;;  %v3704_v34 = vsel %vm2888_vm3, %v3678_v5, 0.0 }
 0x9b3   : > { %v3659_v22 = vmul.f32 0.03125, %v3648_v6  ;;  %v3677_v7 = vmul.f32 %v6152_v29, %v6152_v29 }
 0x9b5   : > { %v6160_v24 = vsub.f32 %v3618_v49, %v3659_v22  ;;  %v3701_v38 = vsel %vm2888_vm3, %v3677_v7, 0.0 }
 0x9b6   : > { %3705 = vadd.xlane.f32.xlu1 %v3704_v34  ;;  %3702 = vadd.xlane.f32.xlu0 %v3701_v38 }
 0x9b7   : > { %v3679_v27 = vmul.f32 %v6160_v24, %v6160_v24 }
 0x9b9   : > { %v3707_v52 = vsel %vm2888_vm3, %v3679_v27, 0.0 }
 0x9ba   : > { %3708 = vadd.xlane.f32.xlu0 %v3707_v52 }
 0xa33   : > { %v3682_v11 = vpop.xlane.xlu1 %3681 }
 0xa34   : > { %v3710_v21 = vmul.f32 0.03125, %v3682_v11  ;;  %v3685_v45 = vpop.xlane.xlu0 %3684 }
 0xa35   : > { %v3711_v31 = vmul.f32 0.03125, %v3685_v45 }
 0xa36   : > { %v3720_v23 = vadd.f32 1e-05, %v3710_v21 }
 0xa37   : > { %v3688_v28 = vpop.xlane.xlu1 %3687  ;;  %v3721_v49 = vadd.f32 1e-05, %v3711_v31 }
 0xa38   : > { %4576 = vrsqrt.f32 %v3720_v23  ;;  %v3712_v60 = vmul.f32 0.03125, %v3688_v28 }
 0xa3a   : > { %v3722_v16 = vadd.f32 1e-05, %v3712_v60 }
 0xa3b   : > { %v3694_v13 = vpop.xlane.xlu1 %3693  ;;  %v3691_v56 = vpop.xlane.xlu0 %3690 }
 0xa3c   : > { %4578 = vrsqrt.f32 %v3722_v16  ;;  %v3714_v39 = vmul.f32 0.03125, %v3694_v13  ;;  %v3713_v33 = vmul.f32 0.03125, %v3691_v56 }
 0xa3d   : > { %4580 = vrsqrt.f32 %v3721_v49 }
 0xa3e   : > { %v3724_v19 = vadd.f32 1e-05, %v3714_v39  ;;  %v3723_v43 = vadd.f32 1e-05, %v3713_v33 }
 0xa3f   : > { %v3700_v63 = vpop.xlane.xlu1 %3699  ;;  %v3697_v50 = vpop.xlane.xlu0 %3696 }
 0xa40   : > { %4582 = vrsqrt.f32 %v3724_v19  ;;  %v3716_v41 = vmul.f32 0.03125, %v3700_v63  ;;  %v3715_v53 = vmul.f32 0.03125, %v3697_v50 }
 0xa41   : > { %4584 = vrsqrt.f32 %v3723_v43 }
 0xa42   : > { %v4577_v3 = vpop.eup %4576  ;;  %v3726_v61 = vadd.f32 1e-05, %v3716_v41  ;;  %v3725_v35 = vadd.f32 1e-05, %v3715_v53 }
 0xa43   : > { %v3740_v51 = vmul.f32 %v4577_v3, %v6116_v8  ;;  %v3706_v9 = vpop.xlane.xlu1 %3705  ;;  %v3703_v18 = vpop.xlane.xlu0 %3702 }
 0xa44   : > { %4586 = vrsqrt.f32 %v3726_v61  ;;  %v3718_v0 = vmul.f32 0.03125, %v3706_v9  ;;  %v3717_v37 = vmul.f32 0.03125, %v3703_v18 }
 0xa45   : > { %v3754_v25 = vmul.f32 %v6170_v10, %v3740_v51  ;;  %4588 = vrsqrt.f32 %v3725_v35 }
 0xa46   : > { %v4579_v4 = vpop.eup %4578  ;;  %v3728_v54 = vadd.f32 1e-05, %v3718_v0  ;;  %v3727_v26 = vadd.f32 1e-05, %v3717_v37 }
 0xa47   : > { %v4581_v15 = vpop.eup %4580  ;;  %v3768_v62 = vadd.f32 %v3767_v47, %v3754_v25  ;;  %v3742_v55 = vmul.f32 %v4579_v4, %v6123_v48  ;;  %v3709_v20 = vpop.xlane.xlu0 %3708 }
 0xa48   : > { %v3741_v32 = vmul.f32 %v4581_v15, %v6120_v58  ;;  %4590 = vrsqrt.f32 %v3728_v54  ;;  %v3719_v42 = vmul.f32 0.03125, %v3709_v20 }
 0xa49   : > { %3778 = vst.msk [vmem:[%s6354_s21] sm:$0xff] %vm2888_vm3, %v3768_v62  ;;  %v3756_v8 = vmul.f32 %v6170_v10, %v3742_v55  ;;  %4592 = vrsqrt.f32 %v3727_v26 }
 0xa4a   : > { %v4583_v59 = vpop.eup %4582  ;;  %v3755_v12 = vmul.f32 %v6170_v10, %v3741_v32  ;;  %v3729_v40 = vadd.f32 1e-05, %v3719_v42 }
 0xa4b   : > { %v4585_v14 = vpop.eup %4584  ;;  %v3770_v30 = vadd.f32 %v3767_v47, %v3756_v8  ;;  %v3744_v48 = vmul.f32 %v4583_v59, %v6130_v2 }
 0xa4c   : > { %v3769_v57 = vadd.f32 %v3767_v47, %v3755_v12  ;;  %v3743_v58 = vmul.f32 %v4585_v14, %v6132_v36  ;;  %4594 = vrsqrt.f32 %v3729_v40 }
 0xa4d   : > { %3780 = vst.msk [vmem:[%s6354_s21 + $0x10] sm:$0xff] %vm2888_vm3, %v3770_v30  ;;  %v3758_v44 = vmul.f32 %v6170_v10, %v3744_v48 }
 0xa4e   : > { %v4587_v6 = vpop.eup %4586  ;;  %3779 = vst.msk [vmem:[%s6354_s21 + $0x8] sm:$0xff] %vm2888_vm3, %v3769_v57  ;;  %v3757_v22 = vmul.f32 %v6170_v10, %v3743_v58 }
 0xa4f   : > { %v4589_v2 = vpop.eup %4588  ;;  %v3772_v5 = vadd.f32 %v3767_v47, %v3758_v44  ;;  %v3746_v36 = vmul.f32 %v4587_v6, %v6140_v1 }
 0xa50   : > { %v3771_v7 = vadd.f32 %v3767_v47, %v3757_v22  ;;  %v3745_v34 = vmul.f32 %v4589_v2, %v6142_v46 }
 0xa51   : > { %3782 = vst.msk [vmem:[%s6354_s21 + $0x20] sm:$0xff] %vm2888_vm3, %v3772_v5  ;;  %v3760_v38 = vmul.f32 %v6170_v10, %v3746_v36 }
 0xa52   : > { %v4591_v27 = vpop.eup %4590  ;;  %3781 = vst.msk [vmem:[%s6354_s21 + $0x18] sm:$0xff] %vm2888_vm3, %v3771_v7  ;;  %v3759_v52 = vmul.f32 %v6170_v10, %v3745_v34 }
 0xa53   : > { %v4593_v11 = vpop.eup %4592  ;;  %v3774_v1 = vadd.f32 %v3767_v47, %v3760_v38  ;;  %v3748_v21 = vmul.f32 %v4591_v27, %v6150_v17 }
 0xa54   : > { %v3773_v46 = vadd.f32 %v3767_v47, %v3759_v52  ;;  %v3747_v23 = vmul.f32 %v4593_v11, %v6152_v29 }
 0xa55   : > { %3784 = vst.msk [vmem:[%s6354_s21 + $0x30] sm:$0xff] %vm2888_vm3, %v3774_v1  ;;  %v3762_v28 = vmul.f32 %v6170_v10, %v3748_v21 }
 0xa56   : > { %v4595_v45 = vpop.eup %4594  ;;  %3783 = vst.msk [vmem:[%s6354_s21 + $0x28] sm:$0xff] %vm2888_vm3, %v3773_v46  ;;  %v3761_v60 = vmul.f32 %v6170_v10, %v3747_v23 }
 0xa57   : > { %v3776_v31 = vadd.f32 %v3767_v47, %v3762_v28  ;;  %v3749_v17 = vmul.f32 %v4595_v45, %v6160_v24 }
 0xa58   : > { %v3775_v16 = vadd.f32 %v3767_v47, %v3761_v60 }
 0xa59   : > { %3786 = vst.msk [vmem:[%s6354_s21 + $0x40] sm:$0xff] %vm2888_vm3, %v3776_v31  ;;  %v3763_v29 = vmul.f32 %v6170_v10, %v3749_v17 }
 0xa5a   : > { %3785 = vst.msk [vmem:[%s6354_s21 + $0x38] sm:$0xff] %vm2888_vm3, %v3775_v16 }
 0xa5b   : > { %v3777_v49 = vadd.f32 %v3767_v47, %v3763_v29 }
 0xa5d   : > { %3787 = vst.msk [vmem:[%s6354_s21 + $0x48] sm:$0xff] %vm2888_vm3, %v3777_v49 }
 0xa5e PF: > { %s6355_s25 = sld [smem:[#allocation6_spill]] }
 0xa64   : > { %s33_s26 = sadd.s32 1, %s6355_s25  }
 0xa65   : > { %p30_p12 = scmp.ge.s32.totalorder %s33_s26, 5  }
 0xa67   :  { %32 = sbr.rel (!%p30_p12) target bundleno = 23 (0x17), region = 129 }

</bundles_post_ra>
